<compile_context>
chip_gen: v7x
topology: tpu7x:2x2x1
jax: 0.10.0
libtpu: 0.0.40
codegen_flags: <defaults>
</compile_context>

<pallas_src>
import functools
import math

import jax
import jax.numpy as jnp
from jax import lax
from jax.experimental import pallas as pl
from jax.experimental.pallas import tpu as pltpu

F32 = jnp.float32
BF16 = jnp.bfloat16
LN_EPS = 1e-5

_VMEM_LIMIT_CACHE = None


def _vmem_limit():
    """Per-call scoped VMEM budget: ~90% of physical, capped 8 MiB below it.
    56 MiB fallback is safe on every generation (v7x physical is 64 MiB)."""
    global _VMEM_LIMIT_CACHE
    if _VMEM_LIMIT_CACHE is None:
        limit = 56 * 1024 * 1024
        try:
            cap = int(pltpu.get_tpu_info().vmem_capacity_bytes)
            limit = min(cap - 8 * 1024 * 1024, int(cap * 0.9))
        except Exception:
            pass
        _VMEM_LIMIT_CACHE = int(limit)
    return _VMEM_LIMIT_CACHE


# ----------------------------------------------------------------------------
# helpers
# ----------------------------------------------------------------------------

def _pick_tile(dim, cap, align):
    """Largest tile <= cap dividing dim; prefers 2*align (256-aligned for MXU
    dims) then align.  Falls back to the full dim (always a legal block)."""
    if dim <= cap:
        return dim
    for a in (2 * align, align):
        t = (cap // a) * a
        while t >= a:
            if dim % t == 0:
                return t
            t -= a
    return dim


def _ln(x, g, b, eps=LN_EPS):
    """LayerNorm over the last dim (f32 math)."""
    mean = jnp.mean(x, axis=-1, keepdims=True)
    xc = x - mean
    var = jnp.mean(xc * xc, axis=-1, keepdims=True)
    return xc * lax.rsqrt(var + eps) * g + b


# ----------------------------------------------------------------------------
# generic tiled linear  y = x @ W + b   (used for the embedding projection)
# ----------------------------------------------------------------------------

def _linear_kernel(x_ref, w_ref, b_ref, o_ref, acc_ref):
    k = pl.program_id(2)

    @pl.when(k == 0)
    def _():
        acc_ref[...] = jnp.zeros_like(acc_ref)

    acc_ref[...] += jnp.dot(x_ref[...].astype(BF16), w_ref[...],
                            preferred_element_type=jnp.float32)

    @pl.when(k == pl.num_programs(2) - 1)
    def _():
        o_ref[...] = (acc_ref[...] + b_ref[...]).astype(o_ref.dtype)


def linear(x, w, b, *, out_dtype=BF16, tm_cap=256, tn_cap=1024, tk_cap=1024):
    M, K = x.shape
    N = w.shape[1]
    tm = _pick_tile(M, tm_cap, 8)
    tn = _pick_tile(N, tn_cap, 128)
    tk = _pick_tile(K, tk_cap, 128)
    return pl.pallas_call(
        _linear_kernel,
        out_shape=jax.ShapeDtypeStruct((M, N), out_dtype),
        grid=(M // tm, N // tn, K // tk),
        in_specs=[
            pl.BlockSpec((tm, tk), lambda i, j, k: (i, k)),
            pl.BlockSpec((tk, tn), lambda i, j, k: (k, j)),
            pl.BlockSpec((1, tn), lambda i, j, k: (0, j)),
        ],
        out_specs=pl.BlockSpec((tm, tn), lambda i, j, k: (i, j)),
        scratch_shapes=[pltpu.VMEM((tm, tn), jnp.float32)],
        compiler_params=pltpu.CompilerParams(
            dimension_semantics=("parallel", "parallel", "arbitrary"),
            vmem_limit_bytes=_vmem_limit()),
    )(x, w, b)


# ----------------------------------------------------------------------------
# fused multi-head attention block:
#   Q/KV projections -> per-head softmax attention -> out proj (accumulated
#   per head, lane-dense) -> residual -> LayerNorm
# grid = (B, Sq//tq) — both axes parallel (megacore on v7x).
# Self-attn variant takes a single (1, S, D) input (no duplicate DMA).
# ----------------------------------------------------------------------------

def _mha_kernel(*refs, num_heads, nq, tq, is_self):
    if is_self:
        (x_ref, wq_ref, bq_ref, wkv_ref, bkv_ref,
         wo_ref, bo_ref, g_ref, b_ref, o_ref) = refs
        kv_in = x_ref[0]                               # (Sk, D) bf16
        if nq == 1:
            q_in = kv_in                               # full sequence == tile
        else:
            row0 = pl.multiple_of(pl.program_id(1) * tq, 8)
            q_in = x_ref[0, pl.ds(row0, tq), :]        # (tq, D) bf16
    else:
        (q_ref, kv_ref, wq_ref, bq_ref, wkv_ref, bkv_ref,
         wo_ref, bo_ref, g_ref, b_ref, o_ref) = refs
        q_in = q_ref[0]                                # (tq, D) bf16
        kv_in = kv_ref[0]                              # (Sk, D) bf16

    D = wq_ref.shape[0]
    Dh = D // num_heads

    # projections: bf16 x bf16 on the MXU, f32 accumulate.  The 1/sqrt(Dh)
    # softmax scale is pre-folded into wq at parameter-packing time.
    q = jnp.dot(q_in.astype(BF16), wq_ref[...],
                preferred_element_type=jnp.float32) + bq_ref[...]
    kv = jnp.dot(kv_in.astype(BF16), wkv_ref[...],
                 preferred_element_type=jnp.float32) + bkv_ref[...]
    k = kv[:, :D]
    v = kv[:, D:]

    acc = jnp.zeros((q.shape[0], D), jnp.float32)
    for h in range(num_heads):
        lo, hi = h * Dh, (h + 1) * Dh
        qh = q[:, lo:hi].astype(BF16)
        kh = k[:, lo:hi].astype(BF16)
        vh = v[:, lo:hi].astype(BF16)
        s = lax.dot_general(qh, kh, (((1,), (1,)), ((), ())),
                            preferred_element_type=jnp.float32)   # (tq, Sk)
        m = jnp.max(s, axis=-1, keepdims=True)
        p = jnp.exp(s - m)
        denom = jnp.sum(p, axis=-1, keepdims=True)
        p = (p * pl.reciprocal(denom, approx=True)).astype(BF16)
        pv = jnp.dot(p, vh, preferred_element_type=jnp.float32)   # (tq, Dh)
        # lane-dense accumulation straight into the out-projection
        acc = acc + jnp.dot(pv.astype(BF16), wo_ref[h],
                            preferred_element_type=jnp.float32)   # (tq, D)

    y = acc + bo_ref[...]
    o_ref[0] = _ln(q_in.astype(jnp.float32) + y,
                   g_ref[...], b_ref[...]).astype(o_ref.dtype)


def multi_head_attention(q_in, kv_in, ap, ln_g, ln_b, num_heads, *,
                         is_self, tq_cap=256):
    B, Sq, D = q_in.shape
    Sk = kv_in.shape[1]
    Dh = D // num_heads
    tq = _pick_tile(Sq, tq_cap, 8)
    nq = Sq // tq

    weight_specs = [
        pl.BlockSpec((D, D), lambda b, qi: (0, 0)),            # wq
        pl.BlockSpec((1, D), lambda b, qi: (0, 0)),            # bq
        pl.BlockSpec((D, 2 * D), lambda b, qi: (0, 0)),        # wkv
        pl.BlockSpec((1, 2 * D), lambda b, qi: (0, 0)),        # bkv
        pl.BlockSpec((num_heads, Dh, D), lambda b, qi: (0, 0, 0)),  # wo
        pl.BlockSpec((1, D), lambda b, qi: (0, 0)),            # bo
        pl.BlockSpec((1, D), lambda b, qi: (0, 0)),            # ln g
        pl.BlockSpec((1, D), lambda b, qi: (0, 0)),            # ln b
    ]
    weight_args = (ap["wq"], ap["bq"], ap["wkv"], ap["bkv"],
                   ap["wo"], ap["bo"], ln_g, ln_b)

    if is_self:
        in_specs = [pl.BlockSpec((1, Sq, D), lambda b, qi: (b, 0, 0))]
        args = (q_in,) + weight_args
    else:
        in_specs = [pl.BlockSpec((1, tq, D), lambda b, qi: (b, qi, 0)),
                    pl.BlockSpec((1, Sk, D), lambda b, qi: (b, 0, 0))]
        args = (q_in, kv_in) + weight_args
    in_specs += weight_specs

    return pl.pallas_call(
        functools.partial(_mha_kernel, num_heads=num_heads, nq=nq, tq=tq,
                          is_self=is_self),
        out_shape=jax.ShapeDtypeStruct((B, Sq, D), BF16),
        grid=(B, nq),
        in_specs=in_specs,
        out_specs=pl.BlockSpec((1, tq, D), lambda b, qi: (b, qi, 0)),
        compiler_params=pltpu.CompilerParams(
            dimension_semantics=("parallel", "parallel"),
            vmem_limit_bytes=_vmem_limit()),
    )(*args)


# ----------------------------------------------------------------------------
# fused feed-forward block:  LN(x + (relu(x@W1 + b1) @ W2 + b2))
# grid = (M tiles [parallel], dff tiles [arbitrary reduction]); f32 accumulator
# optional second LayerNorm in the epilogue (encoder-stack final norm fusion)
# ----------------------------------------------------------------------------

def _ffn_kernel(x_ref, w1_ref, b1_ref, w2_ref, b2_ref, g_ref, b_ref, *rest,
                extra_ln):
    if extra_ln:
        eg_ref, eb_ref, o_ref, acc_ref = rest
    else:
        o_ref, acc_ref = rest

    k = pl.program_id(1)

    @pl.when(k == 0)
    def _():
        acc_ref[...] = jnp.zeros_like(acc_ref)

    x = x_ref[...]                                            # (tm, D) bf16
    h = jnp.dot(x.astype(BF16), w1_ref[...],
                preferred_element_type=jnp.float32) + b1_ref[...]
    h = jnp.maximum(h, 0.0)
    acc_ref[...] += jnp.dot(h.astype(BF16), w2_ref[...],
                            preferred_element_type=jnp.float32)

    @pl.when(k == pl.num_programs(1) - 1)
    def _():
        y = acc_ref[...] + b2_ref[...]
        z = _ln(x.astype(jnp.float32) + y, g_ref[...], b_ref[...])
        if extra_ln:
            z = _ln(z, eg_ref[...], eb_ref[...])
        o_ref[...] = z.astype(o_ref.dtype)


def ffn_residual_ln(x2d, w1, b1, w2, b2, ln_g, ln_b, extra_g=None, extra_b=None,
                    *, tm_cap=256, tk_cap=1024):
    M, D = x2d.shape
    dff = w1.shape[1]
    tm = _pick_tile(M, tm_cap, 8)
    tk = _pick_tile(dff, tk_cap, 128)
    extra_ln = extra_g is not None

    in_specs = [
        pl.BlockSpec((tm, D), lambda m, k: (m, 0)),
        pl.BlockSpec((D, tk), lambda m, k: (0, k)),
        pl.BlockSpec((1, tk), lambda m, k: (0, k)),
        pl.BlockSpec((tk, D), lambda m, k: (k, 0)),
        pl.BlockSpec((1, D), lambda m, k: (0, 0)),
        pl.BlockSpec((1, D), lambda m, k: (0, 0)),
        pl.BlockSpec((1, D), lambda m, k: (0, 0)),
    ]
    args = [x2d, w1, b1, w2, b2, ln_g, ln_b]
    if extra_ln:
        in_specs += [pl.BlockSpec((1, D), lambda m, k: (0, 0)),
                     pl.BlockSpec((1, D), lambda m, k: (0, 0))]
        args += [extra_g, extra_b]

    return pl.pallas_call(
        functools.partial(_ffn_kernel, extra_ln=extra_ln),
        out_shape=jax.ShapeDtypeStruct((M, D), BF16),
        grid=(M // tm, dff // tk),
        in_specs=in_specs,
        out_specs=pl.BlockSpec((tm, D), lambda m, k: (m, 0)),
        scratch_shapes=[pltpu.VMEM((tm, D), jnp.float32)],
        compiler_params=pltpu.CompilerParams(
            dimension_semantics=("parallel", "arbitrary"),
            vmem_limit_bytes=_vmem_limit()),
    )(*args)


# ----------------------------------------------------------------------------
# fused final head: decoder final LayerNorm (last position only) + fc_out
# ----------------------------------------------------------------------------

def _head_kernel(x_ref, g_ref, b_ref, w_ref, bias_ref, o_ref):
    xn = _ln(x_ref[...].astype(jnp.float32), g_ref[...], b_ref[...])
    y = jnp.dot(xn.astype(BF16), w_ref[...],
                preferred_element_type=jnp.float32) + bias_ref[...]
    o_ref[...] = y.astype(o_ref.dtype)


def final_head(x_last, g, b, w, bias):
    B, D = x_last.shape
    O = w.shape[1]
    return pl.pallas_call(
        _head_kernel,
        out_shape=jax.ShapeDtypeStruct((B, O), F32),
        grid=(1,),
        in_specs=[
            pl.BlockSpec((B, D), lambda i: (0, 0)),
            pl.BlockSpec((1, D), lambda i: (0, 0)),
            pl.BlockSpec((1, D), lambda i: (0, 0)),
            pl.BlockSpec((D, O), lambda i: (0, 0)),
            pl.BlockSpec((1, O), lambda i: (0, 0)),
        ],
        out_specs=pl.BlockSpec((B, O), lambda i: (0, 0)),
        compiler_params=pltpu.CompilerParams(
            dimension_semantics=("arbitrary",),
            vmem_limit_bytes=_vmem_limit()),
    )(x_last, g, b, w, bias)


# ----------------------------------------------------------------------------
# model glue
# ----------------------------------------------------------------------------

def encoder_layer(x, p, num_heads, extra_ln=None):
    B, S, D = x.shape
    x = multi_head_attention(x, x, p["self_attn"], p["ln1_g"], p["ln1_b"],
                             num_heads, is_self=True)
    eg, eb = extra_ln if extra_ln is not None else (None, None)
    y = ffn_residual_ln(x.reshape(B * S, D), p["ff_w1"], p["ff_b1"],
                        p["ff_w2"], p["ff_b2"], p["ln2_g"], p["ln2_b"], eg, eb)
    return y.reshape(B, S, D)


def decoder_layer(x, memory, p, num_heads):
    B, S, D = x.shape
    x = multi_head_attention(x, x, p["self_attn"], p["ln1_g"], p["ln1_b"],
                             num_heads, is_self=True)
    x = multi_head_attention(x, memory, p["cross_attn"], p["ln2_g"], p["ln2_b"],
                             num_heads, is_self=False)
    y = ffn_residual_ln(x.reshape(B * S, D), p["ff_w1"], p["ff_b1"],
                        p["ff_w2"], p["ff_b2"], p["ln3_g"], p["ln3_b"])
    return y.reshape(B, S, D)


def transformer_model_forward(params, x, num_heads):
    """x: (B, S, input_dim) -> (B, output_dim)."""
    B, S, input_dim = x.shape
    D = params["embedding"]["w"].shape[1]

    # embedding Linear (bf16 activation out)
    h = linear(x.reshape(B * S, input_dim),
               params["embedding"]["w"], params["embedding"]["b"]).reshape(B, S, D)

    # encoder stack (src = h); final encoder LayerNorm fused into the last
    # encoder layer's FFN epilogue (it feeds all decoder cross-attentions).
    mem = h
    n_enc = len(params["encoder_layers"])
    for li, lp in enumerate(params["encoder_layers"]):
        extra = ((params["enc_norm_g"], params["enc_norm_b"])
                 if li == n_enc - 1 else None)
        mem = encoder_layer(mem, lp, num_heads, extra)

    # decoder stack (tgt = h, memory = mem) — no masks (transformer(x, x))
    out = h
    for lp in params["decoder_layers"]:
        out = decoder_layer(out, mem, lp, num_heads)

    # decoder final LayerNorm only needs the last position (LN is per-row and
    # fc_out only consumes out[:, -1, :]); fused with fc_out.
    last = out[:, -1, :]
    return final_head(last, params["dec_norm_g"], params["dec_norm_b"],
                      params["fc_out"]["w"], params["fc_out"]["b"])


# ----------------------------------------------------------------------------
# deterministic parameter initialization (synthetic weights, packed for TPU)
# ----------------------------------------------------------------------------

def _init_linear(key, fan_in, fan_out, scale=0.05):
    kw, _ = jax.random.split(key)
    return {"w": (scale * jax.random.normal(kw, (fan_in, fan_out), F32)).astype(BF16),
            "b": jnp.zeros((1, fan_out), F32)}


def _init_mha(key, d_model, num_heads, scale=0.05):
    ks = jax.random.split(key, 4)
    dh = d_model // num_heads
    att_scale = 1.0 / math.sqrt(dh)
    # 1/sqrt(Dh) softmax scale folded into wq (bq is zero, nothing to fold).
    wq = scale * jax.random.normal(ks[0], (d_model, d_model), F32) * att_scale
    wk = scale * jax.random.normal(ks[1], (d_model, d_model), F32)
    wv = scale * jax.random.normal(ks[2], (d_model, d_model), F32)
    wo = scale * jax.random.normal(ks[3], (d_model, d_model), F32)
    return {
        "wq": wq.astype(BF16),
        "bq": jnp.zeros((1, d_model), F32),
        "wkv": jnp.concatenate([wk, wv], axis=1).astype(BF16),
        "bkv": jnp.zeros((1, 2 * d_model), F32),
        # out-projection stored per-head: (H, Dh, D) — avoids sublane slicing
        "wo": wo.reshape(num_heads, dh, d_model).astype(BF16),
        "bo": jnp.zeros((1, d_model), F32),
    }


def _init_enc_layer(key, d_model, num_heads, dff, scale=0.05):
    k0, k1, k2 = jax.random.split(key, 3)
    return {
        "self_attn": _init_mha(k0, d_model, num_heads, scale),
        "ff_w1": (scale * jax.random.normal(k1, (d_model, dff), F32)).astype(BF16),
        "ff_b1": jnp.zeros((1, dff), F32),
        "ff_w2": (scale * jax.random.normal(k2, (dff, d_model), F32)).astype(BF16),
        "ff_b2": jnp.zeros((1, d_model), F32),
        "ln1_g": jnp.ones((1, d_model), F32), "ln1_b": jnp.zeros((1, d_model), F32),
        "ln2_g": jnp.ones((1, d_model), F32), "ln2_b": jnp.zeros((1, d_model), F32),
    }


def _init_dec_layer(key, d_model, num_heads, dff, scale=0.05):
    k0, k1, k2, k3 = jax.random.split(key, 4)
    return {
        "self_attn": _init_mha(k0, d_model, num_heads, scale),
        "cross_attn": _init_mha(k1, d_model, num_heads, scale),
        "ff_w1": (scale * jax.random.normal(k2, (d_model, dff), F32)).astype(BF16),
        "ff_b1": jnp.zeros((1, dff), F32),
        "ff_w2": (scale * jax.random.normal(k3, (dff, d_model), F32)).astype(BF16),
        "ff_b2": jnp.zeros((1, d_model), F32),
        "ln1_g": jnp.ones((1, d_model), F32), "ln1_b": jnp.zeros((1, d_model), F32),
        "ln2_g": jnp.ones((1, d_model), F32), "ln2_b": jnp.zeros((1, d_model), F32),
        "ln3_g": jnp.ones((1, d_model), F32), "ln3_b": jnp.zeros((1, d_model), F32),
    }


def init_params(key, input_dim, d_model, num_heads, num_layers, output_dim, dff=2048):
    keys = jax.random.split(key, 2 + 2 * num_layers)
    return {
        "embedding": _init_linear(keys[0], input_dim, d_model),
        "encoder_layers": [_init_enc_layer(keys[2 + i], d_model, num_heads, dff)
                           for i in range(num_layers)],
        "decoder_layers": [_init_dec_layer(keys[2 + num_layers + i], d_model,
                                           num_heads, dff)
                           for i in range(num_layers)],
        "enc_norm_g": jnp.ones((1, d_model), F32),
        "enc_norm_b": jnp.zeros((1, d_model), F32),
        "dec_norm_g": jnp.ones((1, d_model), F32),
        "dec_norm_b": jnp.zeros((1, d_model), F32),
        "fc_out": _init_linear(keys[1], d_model, output_dim),
    }


# TODO(synk): dropout (p=0.1 in nn.Transformer training mode) has no
# deterministic equivalent here; eval-mode (identity) semantics are used.

if __name__ == "__main__":
    # Small shapes consistent with the module's forward.
    input_dim, d_model, num_heads, num_layers, output_dim = 16, 32, 4, 2, 8
    batch, seq = 2, 8

    key = jax.random.PRNGKey(0)
    kx, kp = jax.random.split(key)
    x = jax.random.normal(kx, (batch, seq, input_dim), F32)
    params = init_params(kp, input_dim, d_model, num_heads, num_layers, output_dim)

    fwd = jax.jit(functools.partial(transformer_model_forward, num_heads=num_heads))
    out = jax.block_until_ready(fwd(params, x))

    assert out.shape == (batch, output_dim), out.shape
    assert bool(jnp.all(jnp.isfinite(out)))
    print("KERNEL_OK")
</pallas_src>

<mosaic_0001>
module attributes {stable_mosaic.version = 11 : i64} {
  func.func @_mha_kernel(%arg0: i32, %arg1: i32, %arg2: memref<1x8x32xbf16, #tpu.memory_space<vmem>>, %arg3: memref<32x32xbf16, #tpu.memory_space<vmem>>, %arg4: memref<1x32xf32, #tpu.memory_space<vmem>>, %arg5: memref<32x64xbf16, #tpu.memory_space<vmem>>, %arg6: memref<1x64xf32, #tpu.memory_space<vmem>>, %arg7: memref<4x8x32xbf16, #tpu.memory_space<vmem>>, %arg8: memref<1x32xf32, #tpu.memory_space<vmem>>, %arg9: memref<1x32xf32, #tpu.memory_space<vmem>>, %arg10: memref<1x32xf32, #tpu.memory_space<vmem>>, %arg11: memref<1x8x32xbf16, #tpu.memory_space<vmem>>) attributes {dimension_semantics = [#tpu.dimension_semantics<parallel>, #tpu.dimension_semantics<parallel>], iteration_bounds = array<i64: 2, 1>, scalar_prefetch = 0 : i64, scratch_operands = 0 : i64, tpu.core_type = #tpu.core_type<tc>, window_params = [{transform_indices = @transform_0, window_bounds = array<i64: 1, 8, 32>}, {pipeline_mode = #tpu.pipeline_mode<synchronous>, transform_indices = @transform_1, window_bounds = array<i64: 32, 32>}, {pipeline_mode = #tpu.pipeline_mode<synchronous>, transform_indices = @transform_2, window_bounds = array<i64: 1, 32>}, {pipeline_mode = #tpu.pipeline_mode<synchronous>, transform_indices = @transform_3, window_bounds = array<i64: 32, 64>}, {pipeline_mode = #tpu.pipeline_mode<synchronous>, transform_indices = @transform_4, window_bounds = array<i64: 1, 64>}, {pipeline_mode = #tpu.pipeline_mode<synchronous>, transform_indices = @transform_5, window_bounds = array<i64: 4, 8, 32>}, {pipeline_mode = #tpu.pipeline_mode<synchronous>, transform_indices = @transform_6, window_bounds = array<i64: 1, 32>}, {pipeline_mode = #tpu.pipeline_mode<synchronous>, transform_indices = @transform_7, window_bounds = array<i64: 1, 32>}, {pipeline_mode = #tpu.pipeline_mode<synchronous>, transform_indices = @transform_8, window_bounds = array<i64: 1, 32>}, {transform_indices = @transform_9, window_bounds = array<i64: 1, 8, 32>}]} {
    %c0 = arith.constant 0 : index
    %c0_0 = arith.constant 0 : index
    %c0_1 = arith.constant 0 : index
    %0 = vector.load %arg2[%c0, %c0_0, %c0_1] : memref<1x8x32xbf16, #tpu.memory_space<vmem>>, vector<1x8x32xbf16>
    %1 = vector.shape_cast %0 : vector<1x8x32xbf16> to vector<8x32xbf16>
    %c0_2 = arith.constant 0 : index
    %c0_3 = arith.constant 0 : index
    %2 = vector.load %arg3[%c0_2, %c0_3] : memref<32x32xbf16, #tpu.memory_space<vmem>>, vector<32x32xbf16>
    %cst = arith.constant dense<0.000000e+00> : vector<8x32xf32>
    %3 = tpu.matmul %1, %2, %cst {dimension_numbers = #tpu.dot_dimension_numbers<[1], [0], [0], [1], [0, 0, 1, 1], [], []>} : vector<8x32xbf16>, vector<32x32xbf16>, vector<8x32xf32> -> vector<8x32xf32>
    %c0_4 = arith.constant 0 : index
    %c0_5 = arith.constant 0 : index
    %4 = vector.load %arg4[%c0_4, %c0_5] : memref<1x32xf32, #tpu.memory_space<vmem>>, vector<1x32xf32>
    %5 = vector.broadcast %4 : vector<1x32xf32> to vector<8x32xf32>
    %6 = arith.addf %3, %5 : vector<8x32xf32>
    %c0_6 = arith.constant 0 : index
    %c0_7 = arith.constant 0 : index
    %7 = vector.load %arg5[%c0_6, %c0_7] : memref<32x64xbf16, #tpu.memory_space<vmem>>, vector<32x64xbf16>
    %cst_8 = arith.constant dense<0.000000e+00> : vector<8x64xf32>
    %8 = tpu.matmul %1, %7, %cst_8 {dimension_numbers = #tpu.dot_dimension_numbers<[1], [0], [0], [1], [0, 0, 1, 1], [], []>} : vector<8x32xbf16>, vector<32x64xbf16>, vector<8x64xf32> -> vector<8x64xf32>
    %c0_9 = arith.constant 0 : index
    %c0_10 = arith.constant 0 : index
    %9 = vector.load %arg6[%c0_9, %c0_10] : memref<1x64xf32, #tpu.memory_space<vmem>>, vector<1x64xf32>
    %10 = vector.broadcast %9 : vector<1x64xf32> to vector<8x64xf32>
    %11 = arith.addf %8, %10 : vector<8x64xf32>
    %12 = vector.extract_strided_slice %11 {offsets = [0, 0], sizes = [8, 32], strides = [1, 1]} : vector<8x64xf32> to vector<8x32xf32>
    %13 = vector.extract_strided_slice %11 {offsets = [0, 32], sizes = [8, 32], strides = [1, 1]} : vector<8x64xf32> to vector<8x32xf32>
    %cst_11 = arith.constant 0.000000e+00 : f32
    %14 = vector.broadcast %cst_11 : f32 to vector<8x32xf32>
    %15 = vector.extract_strided_slice %6 {offsets = [0, 0], sizes = [8, 8], strides = [1, 1]} : vector<8x32xf32> to vector<8x8xf32>
    %16 = arith.truncf %15 : vector<8x8xf32> to vector<8x8xbf16>
    %17 = vector.extract_strided_slice %12 {offsets = [0, 0], sizes = [8, 8], strides = [1, 1]} : vector<8x32xf32> to vector<8x8xf32>
    %18 = arith.truncf %17 : vector<8x8xf32> to vector<8x8xbf16>
    %19 = vector.extract_strided_slice %13 {offsets = [0, 0], sizes = [8, 8], strides = [1, 1]} : vector<8x32xf32> to vector<8x8xf32>
    %20 = arith.truncf %19 : vector<8x8xf32> to vector<8x8xbf16>
    %cst_12 = arith.constant dense<0.000000e+00> : vector<8x8xf32>
    %21 = tpu.matmul %16, %18, %cst_12 {dimension_numbers = #tpu.dot_dimension_numbers<[1], [1], [0], [0], [0, 0, 1, 0], [], []>} : vector<8x8xbf16>, vector<8x8xbf16>, vector<8x8xf32> -> vector<8x8xf32>
    %cst_13 = arith.constant dense<0xFF800000> : vector<8xf32>
    %22 = vector.multi_reduction <maximumf>, %21, %cst_13 [1] : vector<8x8xf32> to vector<8xf32>
    %23 = vector.shape_cast %22 : vector<8xf32> to vector<8x1xf32>
    %24 = vector.broadcast %23 : vector<8x1xf32> to vector<8x8xf32>
    %25 = arith.subf %21, %24 : vector<8x8xf32>
    %26 = math.exp %25 : vector<8x8xf32>
    %cst_14 = arith.constant dense<0.000000e+00> : vector<8xf32>
    %27 = vector.multi_reduction <add>, %26, %cst_14 [1] : vector<8x8xf32> to vector<8xf32>
    %28 = vector.shape_cast %27 : vector<8xf32> to vector<8x1xf32>
    %29 = tpu.reciprocal %28 {approx = true} : vector<8x1xf32> -> vector<8x1xf32>
    %30 = vector.broadcast %29 : vector<8x1xf32> to vector<8x8xf32>
    %31 = arith.mulf %26, %30 : vector<8x8xf32>
    %32 = arith.truncf %31 : vector<8x8xf32> to vector<8x8xbf16>
    %cst_15 = arith.constant dense<0.000000e+00> : vector<8x8xf32>
    %33 = tpu.matmul %32, %20, %cst_15 {dimension_numbers = #tpu.dot_dimension_numbers<[1], [0], [0], [1], [0, 0, 1, 1], [], []>} : vector<8x8xbf16>, vector<8x8xbf16>, vector<8x8xf32> -> vector<8x8xf32>
    %34 = arith.truncf %33 : vector<8x8xf32> to vector<8x8xbf16>
    %c0_16 = arith.constant 0 : index
    %c0_17 = arith.constant 0 : index
    %c0_18 = arith.constant 0 : index
    %35 = vector.load %arg7[%c0_16, %c0_17, %c0_18] : memref<4x8x32xbf16, #tpu.memory_space<vmem>>, vector<1x8x32xbf16>
    %36 = vector.shape_cast %35 : vector<1x8x32xbf16> to vector<8x32xbf16>
    %cst_19 = arith.constant dense<0.000000e+00> : vector<8x32xf32>
    %37 = tpu.matmul %34, %36, %cst_19 {dimension_numbers = #tpu.dot_dimension_numbers<[1], [0], [0], [1], [0, 0, 1, 1], [], []>} : vector<8x8xbf16>, vector<8x32xbf16>, vector<8x32xf32> -> vector<8x32xf32>
    %38 = arith.addf %14, %37 : vector<8x32xf32>
    %39 = vector.extract_strided_slice %6 {offsets = [0, 8], sizes = [8, 8], strides = [1, 1]} : vector<8x32xf32> to vector<8x8xf32>
    %40 = arith.truncf %39 : vector<8x8xf32> to vector<8x8xbf16>
    %41 = vector.extract_strided_slice %12 {offsets = [0, 8], sizes = [8, 8], strides = [1, 1]} : vector<8x32xf32> to vector<8x8xf32>
    %42 = arith.truncf %41 : vector<8x8xf32> to vector<8x8xbf16>
    %43 = vector.extract_strided_slice %13 {offsets = [0, 8], sizes = [8, 8], strides = [1, 1]} : vector<8x32xf32> to vector<8x8xf32>
    %44 = arith.truncf %43 : vector<8x8xf32> to vector<8x8xbf16>
    %cst_20 = arith.constant dense<0.000000e+00> : vector<8x8xf32>
    %45 = tpu.matmul %40, %42, %cst_20 {dimension_numbers = #tpu.dot_dimension_numbers<[1], [1], [0], [0], [0, 0, 1, 0], [], []>} : vector<8x8xbf16>, vector<8x8xbf16>, vector<8x8xf32> -> vector<8x8xf32>
    %cst_21 = arith.constant dense<0xFF800000> : vector<8xf32>
    %46 = vector.multi_reduction <maximumf>, %45, %cst_21 [1] : vector<8x8xf32> to vector<8xf32>
    %47 = vector.shape_cast %46 : vector<8xf32> to vector<8x1xf32>
    %48 = vector.broadcast %47 : vector<8x1xf32> to vector<8x8xf32>
    %49 = arith.subf %45, %48 : vector<8x8xf32>
    %50 = math.exp %49 : vector<8x8xf32>
    %cst_22 = arith.constant dense<0.000000e+00> : vector<8xf32>
    %51 = vector.multi_reduction <add>, %50, %cst_22 [1] : vector<8x8xf32> to vector<8xf32>
    %52 = vector.shape_cast %51 : vector<8xf32> to vector<8x1xf32>
    %53 = tpu.reciprocal %52 {approx = true} : vector<8x1xf32> -> vector<8x1xf32>
    %54 = vector.broadcast %53 : vector<8x1xf32> to vector<8x8xf32>
    %55 = arith.mulf %50, %54 : vector<8x8xf32>
    %56 = arith.truncf %55 : vector<8x8xf32> to vector<8x8xbf16>
    %cst_23 = arith.constant dense<0.000000e+00> : vector<8x8xf32>
    %57 = tpu.matmul %56, %44, %cst_23 {dimension_numbers = #tpu.dot_dimension_numbers<[1], [0], [0], [1], [0, 0, 1, 1], [], []>} : vector<8x8xbf16>, vector<8x8xbf16>, vector<8x8xf32> -> vector<8x8xf32>
    %58 = arith.truncf %57 : vector<8x8xf32> to vector<8x8xbf16>
    %c1 = arith.constant 1 : index
    %c0_24 = arith.constant 0 : index
    %c0_25 = arith.constant 0 : index
    %59 = vector.load %arg7[%c1, %c0_24, %c0_25] : memref<4x8x32xbf16, #tpu.memory_space<vmem>>, vector<1x8x32xbf16>
    %60 = vector.shape_cast %59 : vector<1x8x32xbf16> to vector<8x32xbf16>
    %cst_26 = arith.constant dense<0.000000e+00> : vector<8x32xf32>
    %61 = tpu.matmul %58, %60, %cst_26 {dimension_numbers = #tpu.dot_dimension_numbers<[1], [0], [0], [1], [0, 0, 1, 1], [], []>} : vector<8x8xbf16>, vector<8x32xbf16>, vector<8x32xf32> -> vector<8x32xf32>
    %62 = arith.addf %38, %61 : vector<8x32xf32>
    %63 = vector.extract_strided_slice %6 {offsets = [0, 16], sizes = [8, 8], strides = [1, 1]} : vector<8x32xf32> to vector<8x8xf32>
    %64 = arith.truncf %63 : vector<8x8xf32> to vector<8x8xbf16>
    %65 = vector.extract_strided_slice %12 {offsets = [0, 16], sizes = [8, 8], strides = [1, 1]} : vector<8x32xf32> to vector<8x8xf32>
    %66 = arith.truncf %65 : vector<8x8xf32> to vector<8x8xbf16>
    %67 = vector.extract_strided_slice %13 {offsets = [0, 16], sizes = [8, 8], strides = [1, 1]} : vector<8x32xf32> to vector<8x8xf32>
    %68 = arith.truncf %67 : vector<8x8xf32> to vector<8x8xbf16>
    %cst_27 = arith.constant dense<0.000000e+00> : vector<8x8xf32>
    %69 = tpu.matmul %64, %66, %cst_27 {dimension_numbers = #tpu.dot_dimension_numbers<[1], [1], [0], [0], [0, 0, 1, 0], [], []>} : vector<8x8xbf16>, vector<8x8xbf16>, vector<8x8xf32> -> vector<8x8xf32>
    %cst_28 = arith.constant dense<0xFF800000> : vector<8xf32>
    %70 = vector.multi_reduction <maximumf>, %69, %cst_28 [1] : vector<8x8xf32> to vector<8xf32>
    %71 = vector.shape_cast %70 : vector<8xf32> to vector<8x1xf32>
    %72 = vector.broadcast %71 : vector<8x1xf32> to vector<8x8xf32>
    %73 = arith.subf %69, %72 : vector<8x8xf32>
    %74 = math.exp %73 : vector<8x8xf32>
    %cst_29 = arith.constant dense<0.000000e+00> : vector<8xf32>
    %75 = vector.multi_reduction <add>, %74, %cst_29 [1] : vector<8x8xf32> to vector<8xf32>
    %76 = vector.shape_cast %75 : vector<8xf32> to vector<8x1xf32>
    %77 = tpu.reciprocal %76 {approx = true} : vector<8x1xf32> -> vector<8x1xf32>
    %78 = vector.broadcast %77 : vector<8x1xf32> to vector<8x8xf32>
    %79 = arith.mulf %74, %78 : vector<8x8xf32>
    %80 = arith.truncf %79 : vector<8x8xf32> to vector<8x8xbf16>
    %cst_30 = arith.constant dense<0.000000e+00> : vector<8x8xf32>
    %81 = tpu.matmul %80, %68, %cst_30 {dimension_numbers = #tpu.dot_dimension_numbers<[1], [0], [0], [1], [0, 0, 1, 1], [], []>} : vector<8x8xbf16>, vector<8x8xbf16>, vector<8x8xf32> -> vector<8x8xf32>
    %82 = arith.truncf %81 : vector<8x8xf32> to vector<8x8xbf16>
    %c2 = arith.constant 2 : index
    %c0_31 = arith.constant 0 : index
    %c0_32 = arith.constant 0 : index
    %83 = vector.load %arg7[%c2, %c0_31, %c0_32] : memref<4x8x32xbf16, #tpu.memory_space<vmem>>, vector<1x8x32xbf16>
    %84 = vector.shape_cast %83 : vector<1x8x32xbf16> to vector<8x32xbf16>
    %cst_33 = arith.constant dense<0.000000e+00> : vector<8x32xf32>
    %85 = tpu.matmul %82, %84, %cst_33 {dimension_numbers = #tpu.dot_dimension_numbers<[1], [0], [0], [1], [0, 0, 1, 1], [], []>} : vector<8x8xbf16>, vector<8x32xbf16>, vector<8x32xf32> -> vector<8x32xf32>
    %86 = arith.addf %62, %85 : vector<8x32xf32>
    %87 = vector.extract_strided_slice %6 {offsets = [0, 24], sizes = [8, 8], strides = [1, 1]} : vector<8x32xf32> to vector<8x8xf32>
    %88 = arith.truncf %87 : vector<8x8xf32> to vector<8x8xbf16>
    %89 = vector.extract_strided_slice %12 {offsets = [0, 24], sizes = [8, 8], strides = [1, 1]} : vector<8x32xf32> to vector<8x8xf32>
    %90 = arith.truncf %89 : vector<8x8xf32> to vector<8x8xbf16>
    %91 = vector.extract_strided_slice %13 {offsets = [0, 24], sizes = [8, 8], strides = [1, 1]} : vector<8x32xf32> to vector<8x8xf32>
    %92 = arith.truncf %91 : vector<8x8xf32> to vector<8x8xbf16>
    %cst_34 = arith.constant dense<0.000000e+00> : vector<8x8xf32>
    %93 = tpu.matmul %88, %90, %cst_34 {dimension_numbers = #tpu.dot_dimension_numbers<[1], [1], [0], [0], [0, 0, 1, 0], [], []>} : vector<8x8xbf16>, vector<8x8xbf16>, vector<8x8xf32> -> vector<8x8xf32>
    %cst_35 = arith.constant dense<0xFF800000> : vector<8xf32>
    %94 = vector.multi_reduction <maximumf>, %93, %cst_35 [1] : vector<8x8xf32> to vector<8xf32>
    %95 = vector.shape_cast %94 : vector<8xf32> to vector<8x1xf32>
    %96 = vector.broadcast %95 : vector<8x1xf32> to vector<8x8xf32>
    %97 = arith.subf %93, %96 : vector<8x8xf32>
    %98 = math.exp %97 : vector<8x8xf32>
    %cst_36 = arith.constant dense<0.000000e+00> : vector<8xf32>
    %99 = vector.multi_reduction <add>, %98, %cst_36 [1] : vector<8x8xf32> to vector<8xf32>
    %100 = vector.shape_cast %99 : vector<8xf32> to vector<8x1xf32>
    %101 = tpu.reciprocal %100 {approx = true} : vector<8x1xf32> -> vector<8x1xf32>
    %102 = vector.broadcast %101 : vector<8x1xf32> to vector<8x8xf32>
    %103 = arith.mulf %98, %102 : vector<8x8xf32>
    %104 = arith.truncf %103 : vector<8x8xf32> to vector<8x8xbf16>
    %cst_37 = arith.constant dense<0.000000e+00> : vector<8x8xf32>
    %105 = tpu.matmul %104, %92, %cst_37 {dimension_numbers = #tpu.dot_dimension_numbers<[1], [0], [0], [1], [0, 0, 1, 1], [], []>} : vector<8x8xbf16>, vector<8x8xbf16>, vector<8x8xf32> -> vector<8x8xf32>
    %106 = arith.truncf %105 : vector<8x8xf32> to vector<8x8xbf16>
    %c3 = arith.constant 3 : index
    %c0_38 = arith.constant 0 : index
    %c0_39 = arith.constant 0 : index
    %107 = vector.load %arg7[%c3, %c0_38, %c0_39] : memref<4x8x32xbf16, #tpu.memory_space<vmem>>, vector<1x8x32xbf16>
    %108 = vector.shape_cast %107 : vector<1x8x32xbf16> to vector<8x32xbf16>
    %cst_40 = arith.constant dense<0.000000e+00> : vector<8x32xf32>
    %109 = tpu.matmul %106, %108, %cst_40 {dimension_numbers = #tpu.dot_dimension_numbers<[1], [0], [0], [1], [0, 0, 1, 1], [], []>} : vector<8x8xbf16>, vector<8x32xbf16>, vector<8x32xf32> -> vector<8x32xf32>
    %110 = arith.addf %86, %109 : vector<8x32xf32>
    %c0_41 = arith.constant 0 : index
    %c0_42 = arith.constant 0 : index
    %111 = vector.load %arg8[%c0_41, %c0_42] : memref<1x32xf32, #tpu.memory_space<vmem>>, vector<1x32xf32>
    %112 = vector.broadcast %111 : vector<1x32xf32> to vector<8x32xf32>
    %113 = arith.addf %110, %112 : vector<8x32xf32>
    %114 = arith.extf %1 : vector<8x32xbf16> to vector<8x32xf32>
    %115 = arith.addf %114, %113 : vector<8x32xf32>
    %c0_43 = arith.constant 0 : index
    %c0_44 = arith.constant 0 : index
    %116 = vector.load %arg9[%c0_43, %c0_44] : memref<1x32xf32, #tpu.memory_space<vmem>>, vector<1x32xf32>
    %c0_45 = arith.constant 0 : index
    %c0_46 = arith.constant 0 : index
    %117 = vector.load %arg10[%c0_45, %c0_46] : memref<1x32xf32, #tpu.memory_space<vmem>>, vector<1x32xf32>
    %cst_47 = arith.constant dense<0.000000e+00> : vector<8xf32>
    %118 = vector.multi_reduction <add>, %115, %cst_47 [1] : vector<8x32xf32> to vector<8xf32>
    %119 = vector.shape_cast %118 : vector<8xf32> to vector<8x1xf32>
    %cst_48 = arith.constant 3.200000e+01 : f32
    %120 = vector.broadcast %cst_48 : f32 to vector<8x1xf32>
    %121 = arith.divf %119, %120 : vector<8x1xf32>
    %122 = vector.broadcast %121 : vector<8x1xf32> to vector<8x32xf32>
    %123 = arith.subf %115, %122 : vector<8x32xf32>
    %124 = arith.mulf %123, %123 : vector<8x32xf32>
    %cst_49 = arith.constant dense<0.000000e+00> : vector<8xf32>
    %125 = vector.multi_reduction <add>, %124, %cst_49 [1] : vector<8x32xf32> to vector<8xf32>
    %126 = vector.shape_cast %125 : vector<8xf32> to vector<8x1xf32>
    %cst_50 = arith.constant 3.200000e+01 : f32
    %127 = vector.broadcast %cst_50 : f32 to vector<8x1xf32>
    %128 = arith.divf %126, %127 : vector<8x1xf32>
    %cst_51 = arith.constant 9.99999974E-6 : f32
    %129 = vector.broadcast %cst_51 : f32 to vector<8x1xf32>
    %130 = arith.addf %128, %129 : vector<8x1xf32>
    %131 = math.rsqrt %130 : vector<8x1xf32>
    %132 = vector.broadcast %131 : vector<8x1xf32> to vector<8x32xf32>
    %133 = arith.mulf %123, %132 : vector<8x32xf32>
    %134 = vector.broadcast %116 : vector<1x32xf32> to vector<8x32xf32>
    %135 = arith.mulf %133, %134 : vector<8x32xf32>
    %136 = vector.broadcast %117 : vector<1x32xf32> to vector<8x32xf32>
    %137 = arith.addf %135, %136 : vector<8x32xf32>
    %138 = arith.truncf %137 : vector<8x32xf32> to vector<8x32xbf16>
    %c0_52 = arith.constant 0 : index
    %c0_53 = arith.constant 0 : index
    %c0_54 = arith.constant 0 : index
    %139 = vector.load %arg11[%c0_52, %c0_53, %c0_54] : memref<1x8x32xbf16, #tpu.memory_space<vmem>>, vector<1x8x32xbf16>
    %140 = vector.shape_cast %139 : vector<1x8x32xbf16> to vector<8x32xbf16>
    %141 = vector.shape_cast %138 : vector<8x32xbf16> to vector<1x8x32xbf16>
    tpu.vector_store %arg11[%c0_52, %c0_53, %c0_54], %141 {strides = array<i32>} : memref<1x8x32xbf16, #tpu.memory_space<vmem>>, vector<1x8x32xbf16>,
    return
  }
  func.func @transform_0(%arg0: i32, %arg1: i32) -> (i32, i32, i32) {
    %c0_i32 = arith.constant 0 : i32
    %c0_i32_0 = arith.constant 0 : i32
    %c0_i32_1 = arith.constant 0 : i32
    return %arg0, %c0_i32, %c0_i32_0 : i32, i32, i32
  }
  func.func @transform_1(%arg0: i32, %arg1: i32) -> (i32, i32) {
    %c0_i32 = arith.constant 0 : i32
    %c0_i32_0 = arith.constant 0 : i32
    %c0_i32_1 = arith.constant 0 : i32
    return %c0_i32, %c0_i32_0 : i32, i32
  }
  func.func @transform_2(%arg0: i32, %arg1: i32) -> (i32, i32) {
    %c0_i32 = arith.constant 0 : i32
    %c0_i32_0 = arith.constant 0 : i32
    %c0_i32_1 = arith.constant 0 : i32
    return %c0_i32, %c0_i32_0 : i32, i32
  }
  func.func @transform_3(%arg0: i32, %arg1: i32) -> (i32, i32) {
    %c0_i32 = arith.constant 0 : i32
    %c0_i32_0 = arith.constant 0 : i32
    %c0_i32_1 = arith.constant 0 : i32
    return %c0_i32, %c0_i32_0 : i32, i32
  }
  func.func @transform_4(%arg0: i32, %arg1: i32) -> (i32, i32) {
    %c0_i32 = arith.constant 0 : i32
    %c0_i32_0 = arith.constant 0 : i32
    %c0_i32_1 = arith.constant 0 : i32
    return %c0_i32, %c0_i32_0 : i32, i32
  }
  func.func @transform_5(%arg0: i32, %arg1: i32) -> (i32, i32, i32) {
    %c0_i32 = arith.constant 0 : i32
    %c0_i32_0 = arith.constant 0 : i32
    %c0_i32_1 = arith.constant 0 : i32
    %c0_i32_2 = arith.constant 0 : i32
    return %c0_i32, %c0_i32_0, %c0_i32_1 : i32, i32, i32
  }
  func.func @transform_6(%arg0: i32, %arg1: i32) -> (i32, i32) {
    %c0_i32 = arith.constant 0 : i32
    %c0_i32_0 = arith.constant 0 : i32
    %c0_i32_1 = arith.constant 0 : i32
    return %c0_i32, %c0_i32_0 : i32, i32
  }
  func.func @transform_7(%arg0: i32, %arg1: i32) -> (i32, i32) {
    %c0_i32 = arith.constant 0 : i32
    %c0_i32_0 = arith.constant 0 : i32
    %c0_i32_1 = arith.constant 0 : i32
    return %c0_i32, %c0_i32_0 : i32, i32
  }
  func.func @transform_8(%arg0: i32, %arg1: i32) -> (i32, i32) {
    %c0_i32 = arith.constant 0 : i32
    %c0_i32_0 = arith.constant 0 : i32
    %c0_i32_1 = arith.constant 0 : i32
    return %c0_i32, %c0_i32_0 : i32, i32
  }
  func.func @transform_9(%arg0: i32, %arg1: i32) -> (i32, i32, i32) {
    %c0_i32 = arith.constant 0 : i32
    %c0_i32_0 = arith.constant 0 : i32
    return %arg0, %arg1, %c0_i32 : i32, i32, i32
  }
}

module attributes {stable_mosaic.version = 11 : i64} {
  func.func @_ffn_kernel(%arg0: i32, %arg1: i32, %arg2: memref<16x32xbf16, #tpu.memory_space<vmem>>, %arg3: memref<32x1024xbf16, #tpu.memory_space<vmem>>, %arg4: memref<1x1024xf32, #tpu.memory_space<vmem>>, %arg5: memref<1024x32xbf16, #tpu.memory_space<vmem>>, %arg6: memref<1x32xf32, #tpu.memory_space<vmem>>, %arg7: memref<1x32xf32, #tpu.memory_space<vmem>>, %arg8: memref<1x32xf32, #tpu.memory_space<vmem>>, %arg9: memref<16x32xbf16, #tpu.memory_space<vmem>>, %arg10: memref<16x32xf32, #tpu.memory_space<vmem>>) attributes {dimension_semantics = [#tpu.dimension_semantics<parallel>, #tpu.dimension_semantics<arbitrary>], iteration_bounds = array<i64: 1, 2>, scalar_prefetch = 0 : i64, scratch_operands = 1 : i64, tpu.core_type = #tpu.core_type<tc>, window_params = [{transform_indices = @transform_0, window_bounds = array<i64: 16, 32>}, {transform_indices = @transform_1, window_bounds = array<i64: 32, 1024>}, {transform_indices = @transform_2, window_bounds = array<i64: 1, 1024>}, {transform_indices = @transform_3, window_bounds = array<i64: 1024, 32>}, {pipeline_mode = #tpu.pipeline_mode<synchronous>, transform_indices = @transform_4, window_bounds = array<i64: 1, 32>}, {pipeline_mode = #tpu.pipeline_mode<synchronous>, transform_indices = @transform_5, window_bounds = array<i64: 1, 32>}, {pipeline_mode = #tpu.pipeline_mode<synchronous>, transform_indices = @transform_6, window_bounds = array<i64: 1, 32>}, {transform_indices = @transform_7, window_bounds = array<i64: 16, 32>}]} {
    %c0_i32 = arith.constant 0 : i32
    %0 = arith.cmpi eq, %arg1, %c0_i32 : i32
    %1 = arith.extui %0 : i1 to i32
    %c0_i32_0 = arith.constant 0 : i32
    %2 = arith.cmpi ne, %1, %c0_i32_0 : i32
    scf.if %2 {
      %cst_15 = arith.constant 0.000000e+00 : f32
      %20 = vector.broadcast %cst_15 : f32 to vector<16x32xf32>
      %c0_16 = arith.constant 0 : index
      %c0_17 = arith.constant 0 : index
      %21 = vector.load %arg10[%c0_16, %c0_17] : memref<16x32xf32, #tpu.memory_space<vmem>>, vector<16x32xf32>
      tpu.vector_store %arg10[%c0_16, %c0_17], %20 {strides = array<i32>} : memref<16x32xf32, #tpu.memory_space<vmem>>, vector<16x32xf32>,
    } else {
    }
    %c0 = arith.constant 0 : index
    %c0_1 = arith.constant 0 : index
    %3 = vector.load %arg2[%c0, %c0_1] : memref<16x32xbf16, #tpu.memory_space<vmem>>, vector<16x32xbf16>
    %c0_2 = arith.constant 0 : index
    %c0_3 = arith.constant 0 : index
    %4 = vector.load %arg3[%c0_2, %c0_3] : memref<32x1024xbf16, #tpu.memory_space<vmem>>, vector<32x1024xbf16>
    %cst = arith.constant dense<0.000000e+00> : vector<16x1024xf32>
    %5 = tpu.matmul %3, %4, %cst {dimension_numbers = #tpu.dot_dimension_numbers<[1], [0], [0], [1], [0, 0, 1, 1], [], []>} : vector<16x32xbf16>, vector<32x1024xbf16>, vector<16x1024xf32> -> vector<16x1024xf32>
    %c0_4 = arith.constant 0 : index
    %c0_5 = arith.constant 0 : index
    %6 = vector.load %arg4[%c0_4, %c0_5] : memref<1x1024xf32, #tpu.memory_space<vmem>>, vector<1x1024xf32>
    %7 = vector.broadcast %6 : vector<1x1024xf32> to vector<16x1024xf32>
    %8 = arith.addf %5, %7 : vector<16x1024xf32>
    %cst_6 = arith.constant 0.000000e+00 : f32
    %9 = vector.broadcast %cst_6 : f32 to vector<16x1024xf32>
    %10 = arith.maximumf %8, %9 : vector<16x1024xf32>
    %c0_7 = arith.constant 0 : index
    %c0_8 = arith.constant 0 : index
    %11 = vector.load %arg10[%c0_7, %c0_8] : memref<16x32xf32, #tpu.memory_space<vmem>>, vector<16x32xf32>
    %12 = arith.truncf %10 : vector<16x1024xf32> to vector<16x1024xbf16>
    %c0_9 = arith.constant 0 : index
    %c0_10 = arith.constant 0 : index
    %13 = vector.load %arg5[%c0_9, %c0_10] : memref<1024x32xbf16, #tpu.memory_space<vmem>>, vector<1024x32xbf16>
    %cst_11 = arith.constant dense<0.000000e+00> : vector<16x32xf32>
    %14 = tpu.matmul %12, %13, %cst_11 {dimension_numbers = #tpu.dot_dimension_numbers<[1], [0], [0], [1], [0, 0, 1, 1], [], []>} : vector<16x1024xbf16>, vector<1024x32xbf16>, vector<16x32xf32> -> vector<16x32xf32>
    %15 = arith.addf %11, %14 : vector<16x32xf32>
    %c0_12 = arith.constant 0 : index
    %c0_13 = arith.constant 0 : index
    %16 = vector.load %arg10[%c0_12, %c0_13] : memref<16x32xf32, #tpu.memory_space<vmem>>, vector<16x32xf32>
    tpu.vector_store %arg10[%c0_12, %c0_13], %15 {strides = array<i32>} : memref<16x32xf32, #tpu.memory_space<vmem>>, vector<16x32xf32>,
    %c1_i32 = arith.constant 1 : i32
    %17 = arith.cmpi eq, %arg1, %c1_i32 : i32
    %18 = arith.extui %17 : i1 to i32
    %c0_i32_14 = arith.constant 0 : i32
    %19 = arith.cmpi ne, %18, %c0_i32_14 : i32
    scf.if %19 {
      %c0_15 = arith.constant 0 : index
      %c0_16 = arith.constant 0 : index
      %20 = vector.load %arg10[%c0_15, %c0_16] : memref<16x32xf32, #tpu.memory_space<vmem>>, vector<16x32xf32>
      %c0_17 = arith.constant 0 : index
      %c0_18 = arith.constant 0 : index
      %21 = vector.load %arg6[%c0_17, %c0_18] : memref<1x32xf32, #tpu.memory_space<vmem>>, vector<1x32xf32>
      %22 = vector.broadcast %21 : vector<1x32xf32> to vector<16x32xf32>
      %23 = arith.addf %20, %22 : vector<16x32xf32>
      %24 = arith.extf %3 : vector<16x32xbf16> to vector<16x32xf32>
      %25 = arith.addf %24, %23 : vector<16x32xf32>
      %c0_19 = arith.constant 0 : index
      %c0_20 = arith.constant 0 : index
      %26 = vector.load %arg7[%c0_19, %c0_20] : memref<1x32xf32, #tpu.memory_space<vmem>>, vector<1x32xf32>
      %c0_21 = arith.constant 0 : index
      %c0_22 = arith.constant 0 : index
      %27 = vector.load %arg8[%c0_21, %c0_22] : memref<1x32xf32, #tpu.memory_space<vmem>>, vector<1x32xf32>
      %cst_23 = arith.constant dense<0.000000e+00> : vector<16xf32>
      %28 = vector.multi_reduction <add>, %25, %cst_23 [1] : vector<16x32xf32> to vector<16xf32>
      %29 = vector.shape_cast %28 : vector<16xf32> to vector<16x1xf32>
      %cst_24 = arith.constant 3.200000e+01 : f32
      %30 = vector.broadcast %cst_24 : f32 to vector<16x1xf32>
      %31 = arith.divf %29, %30 : vector<16x1xf32>
      %32 = vector.broadcast %31 : vector<16x1xf32> to vector<16x32xf32>
      %33 = arith.subf %25, %32 : vector<16x32xf32>
      %34 = arith.mulf %33, %33 : vector<16x32xf32>
      %cst_25 = arith.constant dense<0.000000e+00> : vector<16xf32>
      %35 = vector.multi_reduction <add>, %34, %cst_25 [1] : vector<16x32xf32> to vector<16xf32>
      %36 = vector.shape_cast %35 : vector<16xf32> to vector<16x1xf32>
      %cst_26 = arith.constant 3.200000e+01 : f32
      %37 = vector.broadcast %cst_26 : f32 to vector<16x1xf32>
      %38 = arith.divf %36, %37 : vector<16x1xf32>
      %cst_27 = arith.constant 9.99999974E-6 : f32
      %39 = vector.broadcast %cst_27 : f32 to vector<16x1xf32>
      %40 = arith.addf %38, %39 : vector<16x1xf32>
      %41 = math.rsqrt %40 : vector<16x1xf32>
      %42 = vector.broadcast %41 : vector<16x1xf32> to vector<16x32xf32>
      %43 = arith.mulf %33, %42 : vector<16x32xf32>
      %44 = vector.broadcast %26 : vector<1x32xf32> to vector<16x32xf32>
      %45 = arith.mulf %43, %44 : vector<16x32xf32>
      %46 = vector.broadcast %27 : vector<1x32xf32> to vector<16x32xf32>
      %47 = arith.addf %45, %46 : vector<16x32xf32>
      %48 = arith.truncf %47 : vector<16x32xf32> to vector<16x32xbf16>
      %c0_28 = arith.constant 0 : index
      %c0_29 = arith.constant 0 : index
      %49 = vector.load %arg9[%c0_28, %c0_29] : memref<16x32xbf16, #tpu.memory_space<vmem>>, vector<16x32xbf16>
      tpu.vector_store %arg9[%c0_28, %c0_29], %48 {strides = array<i32>} : memref<16x32xbf16, #tpu.memory_space<vmem>>, vector<16x32xbf16>,
    } else {
    }
    return
  }
  func.func @transform_0(%arg0: i32, %arg1: i32) -> (i32, i32) {
    %c0_i32 = arith.constant 0 : i32
    %c0_i32_0 = arith.constant 0 : i32
    return %arg0, %c0_i32 : i32, i32
  }
  func.func @transform_1(%arg0: i32, %arg1: i32) -> (i32, i32) {
    %c0_i32 = arith.constant 0 : i32
    %c0_i32_0 = arith.constant 0 : i32
    return %c0_i32, %arg1 : i32, i32
  }
  func.func @transform_2(%arg0: i32, %arg1: i32) -> (i32, i32) {
    %c0_i32 = arith.constant 0 : i32
    %c0_i32_0 = arith.constant 0 : i32
    return %c0_i32, %arg1 : i32, i32
  }
  func.func @transform_3(%arg0: i32, %arg1: i32) -> (i32, i32) {
    %c0_i32 = arith.constant 0 : i32
    %c0_i32_0 = arith.constant 0 : i32
    return %arg1, %c0_i32 : i32, i32
  }
  func.func @transform_4(%arg0: i32, %arg1: i32) -> (i32, i32) {
    %c0_i32 = arith.constant 0 : i32
    %c0_i32_0 = arith.constant 0 : i32
    %c0_i32_1 = arith.constant 0 : i32
    return %c0_i32, %c0_i32_0 : i32, i32
  }
  func.func @transform_5(%arg0: i32, %arg1: i32) -> (i32, i32) {
    %c0_i32 = arith.constant 0 : i32
    %c0_i32_0 = arith.constant 0 : i32
    %c0_i32_1 = arith.constant 0 : i32
    return %c0_i32, %c0_i32_0 : i32, i32
  }
  func.func @transform_6(%arg0: i32, %arg1: i32) -> (i32, i32) {
    %c0_i32 = arith.constant 0 : i32
    %c0_i32_0 = arith.constant 0 : i32
    %c0_i32_1 = arith.constant 0 : i32
    return %c0_i32, %c0_i32_0 : i32, i32
  }
  func.func @transform_7(%arg0: i32, %arg1: i32) -> (i32, i32) {
    %c0_i32 = arith.constant 0 : i32
    %c0_i32_0 = arith.constant 0 : i32
    return %arg0, %c0_i32 : i32, i32
  }
}

module attributes {stable_mosaic.version = 11 : i64} {
  func.func @_linear_kernel(%arg0: i32, %arg1: i32, %arg2: i32, %arg3: memref<16x16xf32, #tpu.memory_space<vmem>>, %arg4: memref<16x32xbf16, #tpu.memory_space<vmem>>, %arg5: memref<1x32xf32, #tpu.memory_space<vmem>>, %arg6: memref<16x32xbf16, #tpu.memory_space<vmem>>, %arg7: memref<16x32xf32, #tpu.memory_space<vmem>>) attributes {dimension_semantics = [#tpu.dimension_semantics<parallel>, #tpu.dimension_semantics<parallel>, #tpu.dimension_semantics<arbitrary>], iteration_bounds = array<i64: 1, 1, 1>, scalar_prefetch = 0 : i64, scratch_operands = 1 : i64, tpu.core_type = #tpu.core_type<tc>, window_params = [{transform_indices = @transform_0, window_bounds = array<i64: 16, 16>}, {transform_indices = @transform_1, window_bounds = array<i64: 16, 32>}, {transform_indices = @transform_2, window_bounds = array<i64: 1, 32>}, {transform_indices = @transform_3, window_bounds = array<i64: 16, 32>}]} {
    %c0_i32 = arith.constant 0 : i32
    %0 = arith.cmpi eq, %arg2, %c0_i32 : i32
    %1 = arith.extui %0 : i1 to i32
    %c0_i32_0 = arith.constant 0 : i32
    %2 = arith.cmpi ne, %1, %c0_i32_0 : i32
    scf.if %2 {
      %cst_10 = arith.constant 0.000000e+00 : f32
      %13 = vector.broadcast %cst_10 : f32 to vector<16x32xf32>
      %c0_11 = arith.constant 0 : index
      %c0_12 = arith.constant 0 : index
      %14 = vector.load %arg7[%c0_11, %c0_12] : memref<16x32xf32, #tpu.memory_space<vmem>>, vector<16x32xf32>
      tpu.vector_store %arg7[%c0_11, %c0_12], %13 {strides = array<i32>} : memref<16x32xf32, #tpu.memory_space<vmem>>, vector<16x32xf32>,
    } else {
    }
    %c0 = arith.constant 0 : index
    %c0_1 = arith.constant 0 : index
    %3 = vector.load %arg7[%c0, %c0_1] : memref<16x32xf32, #tpu.memory_space<vmem>>, vector<16x32xf32>
    %c0_2 = arith.constant 0 : index
    %c0_3 = arith.constant 0 : index
    %4 = vector.load %arg3[%c0_2, %c0_3] : memref<16x16xf32, #tpu.memory_space<vmem>>, vector<16x16xf32>
    %5 = arith.truncf %4 : vector<16x16xf32> to vector<16x16xbf16>
    %c0_4 = arith.constant 0 : index
    %c0_5 = arith.constant 0 : index
    %6 = vector.load %arg4[%c0_4, %c0_5] : memref<16x32xbf16, #tpu.memory_space<vmem>>, vector<16x32xbf16>
    %cst = arith.constant dense<0.000000e+00> : vector<16x32xf32>
    %7 = tpu.matmul %5, %6, %cst {dimension_numbers = #tpu.dot_dimension_numbers<[1], [0], [0], [1], [0, 0, 1, 1], [], []>} : vector<16x16xbf16>, vector<16x32xbf16>, vector<16x32xf32> -> vector<16x32xf32>
    %8 = arith.addf %3, %7 : vector<16x32xf32>
    %c0_6 = arith.constant 0 : index
    %c0_7 = arith.constant 0 : index
    %9 = vector.load %arg7[%c0_6, %c0_7] : memref<16x32xf32, #tpu.memory_space<vmem>>, vector<16x32xf32>
    tpu.vector_store %arg7[%c0_6, %c0_7], %8 {strides = array<i32>} : memref<16x32xf32, #tpu.memory_space<vmem>>, vector<16x32xf32>,
    %c0_i32_8 = arith.constant 0 : i32
    %10 = arith.cmpi eq, %arg2, %c0_i32_8 : i32
    %11 = arith.extui %10 : i1 to i32
    %c0_i32_9 = arith.constant 0 : i32
    %12 = arith.cmpi ne, %11, %c0_i32_9 : i32
    scf.if %12 {
      %c0_10 = arith.constant 0 : index
      %c0_11 = arith.constant 0 : index
      %13 = vector.load %arg7[%c0_10, %c0_11] : memref<16x32xf32, #tpu.memory_space<vmem>>, vector<16x32xf32>
      %c0_12 = arith.constant 0 : index
      %c0_13 = arith.constant 0 : index
      %14 = vector.load %arg5[%c0_12, %c0_13] : memref<1x32xf32, #tpu.memory_space<vmem>>, vector<1x32xf32>
      %15 = vector.broadcast %14 : vector<1x32xf32> to vector<16x32xf32>
      %16 = arith.addf %13, %15 : vector<16x32xf32>
      %17 = arith.truncf %16 : vector<16x32xf32> to vector<16x32xbf16>
      %c0_14 = arith.constant 0 : index
      %c0_15 = arith.constant 0 : index
      %18 = vector.load %arg6[%c0_14, %c0_15] : memref<16x32xbf16, #tpu.memory_space<vmem>>, vector<16x32xbf16>
      tpu.vector_store %arg6[%c0_14, %c0_15], %17 {strides = array<i32>} : memref<16x32xbf16, #tpu.memory_space<vmem>>, vector<16x32xbf16>,
    } else {
    }
    return
  }
  func.func @transform_0(%arg0: i32, %arg1: i32, %arg2: i32) -> (i32, i32) {
    %c0_i32 = arith.constant 0 : i32
    return %arg0, %arg2 : i32, i32
  }
  func.func @transform_1(%arg0: i32, %arg1: i32, %arg2: i32) -> (i32, i32) {
    %c0_i32 = arith.constant 0 : i32
    return %arg2, %arg1 : i32, i32
  }
  func.func @transform_2(%arg0: i32, %arg1: i32, %arg2: i32) -> (i32, i32) {
    %c0_i32 = arith.constant 0 : i32
    %c0_i32_0 = arith.constant 0 : i32
    return %c0_i32, %arg1 : i32, i32
  }
  func.func @transform_3(%arg0: i32, %arg1: i32, %arg2: i32) -> (i32, i32) {
    %c0_i32 = arith.constant 0 : i32
    return %arg0, %arg1 : i32, i32
  }
}

module attributes {stable_mosaic.version = 11 : i64} {
  func.func @_mha_kernel(%arg0: i32, %arg1: i32, %arg2: memref<1x8x32xbf16, #tpu.memory_space<vmem>>, %arg3: memref<32x32xbf16, #tpu.memory_space<vmem>>, %arg4: memref<1x32xf32, #tpu.memory_space<vmem>>, %arg5: memref<32x64xbf16, #tpu.memory_space<vmem>>, %arg6: memref<1x64xf32, #tpu.memory_space<vmem>>, %arg7: memref<4x8x32xbf16, #tpu.memory_space<vmem>>, %arg8: memref<1x32xf32, #tpu.memory_space<vmem>>, %arg9: memref<1x32xf32, #tpu.memory_space<vmem>>, %arg10: memref<1x32xf32, #tpu.memory_space<vmem>>, %arg11: memref<1x8x32xbf16, #tpu.memory_space<vmem>>) attributes {dimension_semantics = [#tpu.dimension_semantics<parallel>, #tpu.dimension_semantics<parallel>], iteration_bounds = array<i64: 2, 1>, scalar_prefetch = 0 : i64, scratch_operands = 0 : i64, tpu.core_type = #tpu.core_type<tc>, window_params = [{transform_indices = @transform_0, window_bounds = array<i64: 1, 8, 32>}, {pipeline_mode = #tpu.pipeline_mode<synchronous>, transform_indices = @transform_1, window_bounds = array<i64: 32, 32>}, {pipeline_mode = #tpu.pipeline_mode<synchronous>, transform_indices = @transform_2, window_bounds = array<i64: 1, 32>}, {pipeline_mode = #tpu.pipeline_mode<synchronous>, transform_indices = @transform_3, window_bounds = array<i64: 32, 64>}, {pipeline_mode = #tpu.pipeline_mode<synchronous>, transform_indices = @transform_4, window_bounds = array<i64: 1, 64>}, {pipeline_mode = #tpu.pipeline_mode<synchronous>, transform_indices = @transform_5, window_bounds = array<i64: 4, 8, 32>}, {pipeline_mode = #tpu.pipeline_mode<synchronous>, transform_indices = @transform_6, window_bounds = array<i64: 1, 32>}, {pipeline_mode = #tpu.pipeline_mode<synchronous>, transform_indices = @transform_7, window_bounds = array<i64: 1, 32>}, {pipeline_mode = #tpu.pipeline_mode<synchronous>, transform_indices = @transform_8, window_bounds = array<i64: 1, 32>}, {transform_indices = @transform_9, window_bounds = array<i64: 1, 8, 32>}]} {
    %c0 = arith.constant 0 : index
    %c0_0 = arith.constant 0 : index
    %c0_1 = arith.constant 0 : index
    %0 = vector.load %arg2[%c0, %c0_0, %c0_1] : memref<1x8x32xbf16, #tpu.memory_space<vmem>>, vector<1x8x32xbf16>
    %1 = vector.shape_cast %0 : vector<1x8x32xbf16> to vector<8x32xbf16>
    %c0_2 = arith.constant 0 : index
    %c0_3 = arith.constant 0 : index
    %2 = vector.load %arg3[%c0_2, %c0_3] : memref<32x32xbf16, #tpu.memory_space<vmem>>, vector<32x32xbf16>
    %cst = arith.constant dense<0.000000e+00> : vector<8x32xf32>
    %3 = tpu.matmul %1, %2, %cst {dimension_numbers = #tpu.dot_dimension_numbers<[1], [0], [0], [1], [0, 0, 1, 1], [], []>} : vector<8x32xbf16>, vector<32x32xbf16>, vector<8x32xf32> -> vector<8x32xf32>
    %c0_4 = arith.constant 0 : index
    %c0_5 = arith.constant 0 : index
    %4 = vector.load %arg4[%c0_4, %c0_5] : memref<1x32xf32, #tpu.memory_space<vmem>>, vector<1x32xf32>
    %5 = vector.broadcast %4 : vector<1x32xf32> to vector<8x32xf32>
    %6 = arith.addf %3, %5 : vector<8x32xf32>
    %c0_6 = arith.constant 0 : index
    %c0_7 = arith.constant 0 : index
    %7 = vector.load %arg5[%c0_6, %c0_7] : memref<32x64xbf16, #tpu.memory_space<vmem>>, vector<32x64xbf16>
    %cst_8 = arith.constant dense<0.000000e+00> : vector<8x64xf32>
    %8 = tpu.matmul %1, %7, %cst_8 {dimension_numbers = #tpu.dot_dimension_numbers<[1], [0], [0], [1], [0, 0, 1, 1], [], []>} : vector<8x32xbf16>, vector<32x64xbf16>, vector<8x64xf32> -> vector<8x64xf32>
    %c0_9 = arith.constant 0 : index
    %c0_10 = arith.constant 0 : index
    %9 = vector.load %arg6[%c0_9, %c0_10] : memref<1x64xf32, #tpu.memory_space<vmem>>, vector<1x64xf32>
    %10 = vector.broadcast %9 : vector<1x64xf32> to vector<8x64xf32>
    %11 = arith.addf %8, %10 : vector<8x64xf32>
    %12 = vector.extract_strided_slice %11 {offsets = [0, 0], sizes = [8, 32], strides = [1, 1]} : vector<8x64xf32> to vector<8x32xf32>
    %13 = vector.extract_strided_slice %11 {offsets = [0, 32], sizes = [8, 32], strides = [1, 1]} : vector<8x64xf32> to vector<8x32xf32>
    %cst_11 = arith.constant 0.000000e+00 : f32
    %14 = vector.broadcast %cst_11 : f32 to vector<8x32xf32>
    %15 = vector.extract_strided_slice %6 {offsets = [0, 0], sizes = [8, 8], strides = [1, 1]} : vector<8x32xf32> to vector<8x8xf32>
    %16 = arith.truncf %15 : vector<8x8xf32> to vector<8x8xbf16>
    %17 = vector.extract_strided_slice %12 {offsets = [0, 0], sizes = [8, 8], strides = [1, 1]} : vector<8x32xf32> to vector<8x8xf32>
    %18 = arith.truncf %17 : vector<8x8xf32> to vector<8x8xbf16>
    %19 = vector.extract_strided_slice %13 {offsets = [0, 0], sizes = [8, 8], strides = [1, 1]} : vector<8x32xf32> to vector<8x8xf32>
    %20 = arith.truncf %19 : vector<8x8xf32> to vector<8x8xbf16>
    %cst_12 = arith.constant dense<0.000000e+00> : vector<8x8xf32>
    %21 = tpu.matmul %16, %18, %cst_12 {dimension_numbers = #tpu.dot_dimension_numbers<[1], [1], [0], [0], [0, 0, 1, 0], [], []>} : vector<8x8xbf16>, vector<8x8xbf16>, vector<8x8xf32> -> vector<8x8xf32>
    %cst_13 = arith.constant dense<0xFF800000> : vector<8xf32>
    %22 = vector.multi_reduction <maximumf>, %21, %cst_13 [1] : vector<8x8xf32> to vector<8xf32>
    %23 = vector.shape_cast %22 : vector<8xf32> to vector<8x1xf32>
    %24 = vector.broadcast %23 : vector<8x1xf32> to vector<8x8xf32>
    %25 = arith.subf %21, %24 : vector<8x8xf32>
    %26 = math.exp %25 : vector<8x8xf32>
    %cst_14 = arith.constant dense<0.000000e+00> : vector<8xf32>
    %27 = vector.multi_reduction <add>, %26, %cst_14 [1] : vector<8x8xf32> to vector<8xf32>
    %28 = vector.shape_cast %27 : vector<8xf32> to vector<8x1xf32>
    %29 = tpu.reciprocal %28 {approx = true} : vector<8x1xf32> -> vector<8x1xf32>
    %30 = vector.broadcast %29 : vector<8x1xf32> to vector<8x8xf32>
    %31 = arith.mulf %26, %30 : vector<8x8xf32>
    %32 = arith.truncf %31 : vector<8x8xf32> to vector<8x8xbf16>
    %cst_15 = arith.constant dense<0.000000e+00> : vector<8x8xf32>
    %33 = tpu.matmul %32, %20, %cst_15 {dimension_numbers = #tpu.dot_dimension_numbers<[1], [0], [0], [1], [0, 0, 1, 1], [], []>} : vector<8x8xbf16>, vector<8x8xbf16>, vector<8x8xf32> -> vector<8x8xf32>
    %34 = arith.truncf %33 : vector<8x8xf32> to vector<8x8xbf16>
    %c0_16 = arith.constant 0 : index
    %c0_17 = arith.constant 0 : index
    %c0_18 = arith.constant 0 : index
    %35 = vector.load %arg7[%c0_16, %c0_17, %c0_18] : memref<4x8x32xbf16, #tpu.memory_space<vmem>>, vector<1x8x32xbf16>
    %36 = vector.shape_cast %35 : vector<1x8x32xbf16> to vector<8x32xbf16>
    %cst_19 = arith.constant dense<0.000000e+00> : vector<8x32xf32>
    %37 = tpu.matmul %34, %36, %cst_19 {dimension_numbers = #tpu.dot_dimension_numbers<[1], [0], [0], [1], [0, 0, 1, 1], [], []>} : vector<8x8xbf16>, vector<8x32xbf16>, vector<8x32xf32> -> vector<8x32xf32>
    %38 = arith.addf %14, %37 : vector<8x32xf32>
    %39 = vector.extract_strided_slice %6 {offsets = [0, 8], sizes = [8, 8], strides = [1, 1]} : vector<8x32xf32> to vector<8x8xf32>
    %40 = arith.truncf %39 : vector<8x8xf32> to vector<8x8xbf16>
    %41 = vector.extract_strided_slice %12 {offsets = [0, 8], sizes = [8, 8], strides = [1, 1]} : vector<8x32xf32> to vector<8x8xf32>
    %42 = arith.truncf %41 : vector<8x8xf32> to vector<8x8xbf16>
    %43 = vector.extract_strided_slice %13 {offsets = [0, 8], sizes = [8, 8], strides = [1, 1]} : vector<8x32xf32> to vector<8x8xf32>
    %44 = arith.truncf %43 : vector<8x8xf32> to vector<8x8xbf16>
    %cst_20 = arith.constant dense<0.000000e+00> : vector<8x8xf32>
    %45 = tpu.matmul %40, %42, %cst_20 {dimension_numbers = #tpu.dot_dimension_numbers<[1], [1], [0], [0], [0, 0, 1, 0], [], []>} : vector<8x8xbf16>, vector<8x8xbf16>, vector<8x8xf32> -> vector<8x8xf32>
    %cst_21 = arith.constant dense<0xFF800000> : vector<8xf32>
    %46 = vector.multi_reduction <maximumf>, %45, %cst_21 [1] : vector<8x8xf32> to vector<8xf32>
    %47 = vector.shape_cast %46 : vector<8xf32> to vector<8x1xf32>
    %48 = vector.broadcast %47 : vector<8x1xf32> to vector<8x8xf32>
    %49 = arith.subf %45, %48 : vector<8x8xf32>
    %50 = math.exp %49 : vector<8x8xf32>
    %cst_22 = arith.constant dense<0.000000e+00> : vector<8xf32>
    %51 = vector.multi_reduction <add>, %50, %cst_22 [1] : vector<8x8xf32> to vector<8xf32>
    %52 = vector.shape_cast %51 : vector<8xf32> to vector<8x1xf32>
    %53 = tpu.reciprocal %52 {approx = true} : vector<8x1xf32> -> vector<8x1xf32>
    %54 = vector.broadcast %53 : vector<8x1xf32> to vector<8x8xf32>
    %55 = arith.mulf %50, %54 : vector<8x8xf32>
    %56 = arith.truncf %55 : vector<8x8xf32> to vector<8x8xbf16>
    %cst_23 = arith.constant dense<0.000000e+00> : vector<8x8xf32>
    %57 = tpu.matmul %56, %44, %cst_23 {dimension_numbers = #tpu.dot_dimension_numbers<[1], [0], [0], [1], [0, 0, 1, 1], [], []>} : vector<8x8xbf16>, vector<8x8xbf16>, vector<8x8xf32> -> vector<8x8xf32>
    %58 = arith.truncf %57 : vector<8x8xf32> to vector<8x8xbf16>
    %c1 = arith.constant 1 : index
    %c0_24 = arith.constant 0 : index
    %c0_25 = arith.constant 0 : index
    %59 = vector.load %arg7[%c1, %c0_24, %c0_25] : memref<4x8x32xbf16, #tpu.memory_space<vmem>>, vector<1x8x32xbf16>
    %60 = vector.shape_cast %59 : vector<1x8x32xbf16> to vector<8x32xbf16>
    %cst_26 = arith.constant dense<0.000000e+00> : vector<8x32xf32>
    %61 = tpu.matmul %58, %60, %cst_26 {dimension_numbers = #tpu.dot_dimension_numbers<[1], [0], [0], [1], [0, 0, 1, 1], [], []>} : vector<8x8xbf16>, vector<8x32xbf16>, vector<8x32xf32> -> vector<8x32xf32>
    %62 = arith.addf %38, %61 : vector<8x32xf32>
    %63 = vector.extract_strided_slice %6 {offsets = [0, 16], sizes = [8, 8], strides = [1, 1]} : vector<8x32xf32> to vector<8x8xf32>
    %64 = arith.truncf %63 : vector<8x8xf32> to vector<8x8xbf16>
    %65 = vector.extract_strided_slice %12 {offsets = [0, 16], sizes = [8, 8], strides = [1, 1]} : vector<8x32xf32> to vector<8x8xf32>
    %66 = arith.truncf %65 : vector<8x8xf32> to vector<8x8xbf16>
    %67 = vector.extract_strided_slice %13 {offsets = [0, 16], sizes = [8, 8], strides = [1, 1]} : vector<8x32xf32> to vector<8x8xf32>
    %68 = arith.truncf %67 : vector<8x8xf32> to vector<8x8xbf16>
    %cst_27 = arith.constant dense<0.000000e+00> : vector<8x8xf32>
    %69 = tpu.matmul %64, %66, %cst_27 {dimension_numbers = #tpu.dot_dimension_numbers<[1], [1], [0], [0], [0, 0, 1, 0], [], []>} : vector<8x8xbf16>, vector<8x8xbf16>, vector<8x8xf32> -> vector<8x8xf32>
    %cst_28 = arith.constant dense<0xFF800000> : vector<8xf32>
    %70 = vector.multi_reduction <maximumf>, %69, %cst_28 [1] : vector<8x8xf32> to vector<8xf32>
    %71 = vector.shape_cast %70 : vector<8xf32> to vector<8x1xf32>
    %72 = vector.broadcast %71 : vector<8x1xf32> to vector<8x8xf32>
    %73 = arith.subf %69, %72 : vector<8x8xf32>
    %74 = math.exp %73 : vector<8x8xf32>
    %cst_29 = arith.constant dense<0.000000e+00> : vector<8xf32>
    %75 = vector.multi_reduction <add>, %74, %cst_29 [1] : vector<8x8xf32> to vector<8xf32>
    %76 = vector.shape_cast %75 : vector<8xf32> to vector<8x1xf32>
    %77 = tpu.reciprocal %76 {approx = true} : vector<8x1xf32> -> vector<8x1xf32>
    %78 = vector.broadcast %77 : vector<8x1xf32> to vector<8x8xf32>
    %79 = arith.mulf %74, %78 : vector<8x8xf32>
    %80 = arith.truncf %79 : vector<8x8xf32> to vector<8x8xbf16>
    %cst_30 = arith.constant dense<0.000000e+00> : vector<8x8xf32>
    %81 = tpu.matmul %80, %68, %cst_30 {dimension_numbers = #tpu.dot_dimension_numbers<[1], [0], [0], [1], [0, 0, 1, 1], [], []>} : vector<8x8xbf16>, vector<8x8xbf16>, vector<8x8xf32> -> vector<8x8xf32>
    %82 = arith.truncf %81 : vector<8x8xf32> to vector<8x8xbf16>
    %c2 = arith.constant 2 : index
    %c0_31 = arith.constant 0 : index
    %c0_32 = arith.constant 0 : index
    %83 = vector.load %arg7[%c2, %c0_31, %c0_32] : memref<4x8x32xbf16, #tpu.memory_space<vmem>>, vector<1x8x32xbf16>
    %84 = vector.shape_cast %83 : vector<1x8x32xbf16> to vector<8x32xbf16>
    %cst_33 = arith.constant dense<0.000000e+00> : vector<8x32xf32>
    %85 = tpu.matmul %82, %84, %cst_33 {dimension_numbers = #tpu.dot_dimension_numbers<[1], [0], [0], [1], [0, 0, 1, 1], [], []>} : vector<8x8xbf16>, vector<8x32xbf16>, vector<8x32xf32> -> vector<8x32xf32>
    %86 = arith.addf %62, %85 : vector<8x32xf32>
    %87 = vector.extract_strided_slice %6 {offsets = [0, 24], sizes = [8, 8], strides = [1, 1]} : vector<8x32xf32> to vector<8x8xf32>
    %88 = arith.truncf %87 : vector<8x8xf32> to vector<8x8xbf16>
    %89 = vector.extract_strided_slice %12 {offsets = [0, 24], sizes = [8, 8], strides = [1, 1]} : vector<8x32xf32> to vector<8x8xf32>
    %90 = arith.truncf %89 : vector<8x8xf32> to vector<8x8xbf16>
    %91 = vector.extract_strided_slice %13 {offsets = [0, 24], sizes = [8, 8], strides = [1, 1]} : vector<8x32xf32> to vector<8x8xf32>
    %92 = arith.truncf %91 : vector<8x8xf32> to vector<8x8xbf16>
    %cst_34 = arith.constant dense<0.000000e+00> : vector<8x8xf32>
    %93 = tpu.matmul %88, %90, %cst_34 {dimension_numbers = #tpu.dot_dimension_numbers<[1], [1], [0], [0], [0, 0, 1, 0], [], []>} : vector<8x8xbf16>, vector<8x8xbf16>, vector<8x8xf32> -> vector<8x8xf32>
    %cst_35 = arith.constant dense<0xFF800000> : vector<8xf32>
    %94 = vector.multi_reduction <maximumf>, %93, %cst_35 [1] : vector<8x8xf32> to vector<8xf32>
    %95 = vector.shape_cast %94 : vector<8xf32> to vector<8x1xf32>
    %96 = vector.broadcast %95 : vector<8x1xf32> to vector<8x8xf32>
    %97 = arith.subf %93, %96 : vector<8x8xf32>
    %98 = math.exp %97 : vector<8x8xf32>
    %cst_36 = arith.constant dense<0.000000e+00> : vector<8xf32>
    %99 = vector.multi_reduction <add>, %98, %cst_36 [1] : vector<8x8xf32> to vector<8xf32>
    %100 = vector.shape_cast %99 : vector<8xf32> to vector<8x1xf32>
    %101 = tpu.reciprocal %100 {approx = true} : vector<8x1xf32> -> vector<8x1xf32>
    %102 = vector.broadcast %101 : vector<8x1xf32> to vector<8x8xf32>
    %103 = arith.mulf %98, %102 : vector<8x8xf32>
    %104 = arith.truncf %103 : vector<8x8xf32> to vector<8x8xbf16>
    %cst_37 = arith.constant dense<0.000000e+00> : vector<8x8xf32>
    %105 = tpu.matmul %104, %92, %cst_37 {dimension_numbers = #tpu.dot_dimension_numbers<[1], [0], [0], [1], [0, 0, 1, 1], [], []>} : vector<8x8xbf16>, vector<8x8xbf16>, vector<8x8xf32> -> vector<8x8xf32>
    %106 = arith.truncf %105 : vector<8x8xf32> to vector<8x8xbf16>
    %c3 = arith.constant 3 : index
    %c0_38 = arith.constant 0 : index
    %c0_39 = arith.constant 0 : index
    %107 = vector.load %arg7[%c3, %c0_38, %c0_39] : memref<4x8x32xbf16, #tpu.memory_space<vmem>>, vector<1x8x32xbf16>
    %108 = vector.shape_cast %107 : vector<1x8x32xbf16> to vector<8x32xbf16>
    %cst_40 = arith.constant dense<0.000000e+00> : vector<8x32xf32>
    %109 = tpu.matmul %106, %108, %cst_40 {dimension_numbers = #tpu.dot_dimension_numbers<[1], [0], [0], [1], [0, 0, 1, 1], [], []>} : vector<8x8xbf16>, vector<8x32xbf16>, vector<8x32xf32> -> vector<8x32xf32>
    %110 = arith.addf %86, %109 : vector<8x32xf32>
    %c0_41 = arith.constant 0 : index
    %c0_42 = arith.constant 0 : index
    %111 = vector.load %arg8[%c0_41, %c0_42] : memref<1x32xf32, #tpu.memory_space<vmem>>, vector<1x32xf32>
    %112 = vector.broadcast %111 : vector<1x32xf32> to vector<8x32xf32>
    %113 = arith.addf %110, %112 : vector<8x32xf32>
    %114 = arith.extf %1 : vector<8x32xbf16> to vector<8x32xf32>
    %115 = arith.addf %114, %113 : vector<8x32xf32>
    %c0_43 = arith.constant 0 : index
    %c0_44 = arith.constant 0 : index
    %116 = vector.load %arg9[%c0_43, %c0_44] : memref<1x32xf32, #tpu.memory_space<vmem>>, vector<1x32xf32>
    %c0_45 = arith.constant 0 : index
    %c0_46 = arith.constant 0 : index
    %117 = vector.load %arg10[%c0_45, %c0_46] : memref<1x32xf32, #tpu.memory_space<vmem>>, vector<1x32xf32>
    %cst_47 = arith.constant dense<0.000000e+00> : vector<8xf32>
    %118 = vector.multi_reduction <add>, %115, %cst_47 [1] : vector<8x32xf32> to vector<8xf32>
    %119 = vector.shape_cast %118 : vector<8xf32> to vector<8x1xf32>
    %cst_48 = arith.constant 3.200000e+01 : f32
    %120 = vector.broadcast %cst_48 : f32 to vector<8x1xf32>
    %121 = arith.divf %119, %120 : vector<8x1xf32>
    %122 = vector.broadcast %121 : vector<8x1xf32> to vector<8x32xf32>
    %123 = arith.subf %115, %122 : vector<8x32xf32>
    %124 = arith.mulf %123, %123 : vector<8x32xf32>
    %cst_49 = arith.constant dense<0.000000e+00> : vector<8xf32>
    %125 = vector.multi_reduction <add>, %124, %cst_49 [1] : vector<8x32xf32> to vector<8xf32>
    %126 = vector.shape_cast %125 : vector<8xf32> to vector<8x1xf32>
    %cst_50 = arith.constant 3.200000e+01 : f32
    %127 = vector.broadcast %cst_50 : f32 to vector<8x1xf32>
    %128 = arith.divf %126, %127 : vector<8x1xf32>
    %cst_51 = arith.constant 9.99999974E-6 : f32
    %129 = vector.broadcast %cst_51 : f32 to vector<8x1xf32>
    %130 = arith.addf %128, %129 : vector<8x1xf32>
    %131 = math.rsqrt %130 : vector<8x1xf32>
    %132 = vector.broadcast %131 : vector<8x1xf32> to vector<8x32xf32>
    %133 = arith.mulf %123, %132 : vector<8x32xf32>
    %134 = vector.broadcast %116 : vector<1x32xf32> to vector<8x32xf32>
    %135 = arith.mulf %133, %134 : vector<8x32xf32>
    %136 = vector.broadcast %117 : vector<1x32xf32> to vector<8x32xf32>
    %137 = arith.addf %135, %136 : vector<8x32xf32>
    %138 = arith.truncf %137 : vector<8x32xf32> to vector<8x32xbf16>
    %c0_52 = arith.constant 0 : index
    %c0_53 = arith.constant 0 : index
    %c0_54 = arith.constant 0 : index
    %139 = vector.load %arg11[%c0_52, %c0_53, %c0_54] : memref<1x8x32xbf16, #tpu.memory_space<vmem>>, vector<1x8x32xbf16>
    %140 = vector.shape_cast %139 : vector<1x8x32xbf16> to vector<8x32xbf16>
    %141 = vector.shape_cast %138 : vector<8x32xbf16> to vector<1x8x32xbf16>
    tpu.vector_store %arg11[%c0_52, %c0_53, %c0_54], %141 {strides = array<i32>} : memref<1x8x32xbf16, #tpu.memory_space<vmem>>, vector<1x8x32xbf16>,
    return
  }
  func.func @transform_0(%arg0: i32, %arg1: i32) -> (i32, i32, i32) {
    %c0_i32 = arith.constant 0 : i32
    %c0_i32_0 = arith.constant 0 : i32
    %c0_i32_1 = arith.constant 0 : i32
    return %arg0, %c0_i32, %c0_i32_0 : i32, i32, i32
  }
  func.func @transform_1(%arg0: i32, %arg1: i32) -> (i32, i32) {
    %c0_i32 = arith.constant 0 : i32
    %c0_i32_0 = arith.constant 0 : i32
    %c0_i32_1 = arith.constant 0 : i32
    return %c0_i32, %c0_i32_0 : i32, i32
  }
  func.func @transform_2(%arg0: i32, %arg1: i32) -> (i32, i32) {
    %c0_i32 = arith.constant 0 : i32
    %c0_i32_0 = arith.constant 0 : i32
    %c0_i32_1 = arith.constant 0 : i32
    return %c0_i32, %c0_i32_0 : i32, i32
  }
  func.func @transform_3(%arg0: i32, %arg1: i32) -> (i32, i32) {
    %c0_i32 = arith.constant 0 : i32
    %c0_i32_0 = arith.constant 0 : i32
    %c0_i32_1 = arith.constant 0 : i32
    return %c0_i32, %c0_i32_0 : i32, i32
  }
  func.func @transform_4(%arg0: i32, %arg1: i32) -> (i32, i32) {
    %c0_i32 = arith.constant 0 : i32
    %c0_i32_0 = arith.constant 0 : i32
    %c0_i32_1 = arith.constant 0 : i32
    return %c0_i32, %c0_i32_0 : i32, i32
  }
  func.func @transform_5(%arg0: i32, %arg1: i32) -> (i32, i32, i32) {
    %c0_i32 = arith.constant 0 : i32
    %c0_i32_0 = arith.constant 0 : i32
    %c0_i32_1 = arith.constant 0 : i32
    %c0_i32_2 = arith.constant 0 : i32
    return %c0_i32, %c0_i32_0, %c0_i32_1 : i32, i32, i32
  }
  func.func @transform_6(%arg0: i32, %arg1: i32) -> (i32, i32) {
    %c0_i32 = arith.constant 0 : i32
    %c0_i32_0 = arith.constant 0 : i32
    %c0_i32_1 = arith.constant 0 : i32
    return %c0_i32, %c0_i32_0 : i32, i32
  }
  func.func @transform_7(%arg0: i32, %arg1: i32) -> (i32, i32) {
    %c0_i32 = arith.constant 0 : i32
    %c0_i32_0 = arith.constant 0 : i32
    %c0_i32_1 = arith.constant 0 : i32
    return %c0_i32, %c0_i32_0 : i32, i32
  }
  func.func @transform_8(%arg0: i32, %arg1: i32) -> (i32, i32) {
    %c0_i32 = arith.constant 0 : i32
    %c0_i32_0 = arith.constant 0 : i32
    %c0_i32_1 = arith.constant 0 : i32
    return %c0_i32, %c0_i32_0 : i32, i32
  }
  func.func @transform_9(%arg0: i32, %arg1: i32) -> (i32, i32, i32) {
    %c0_i32 = arith.constant 0 : i32
    %c0_i32_0 = arith.constant 0 : i32
    return %arg0, %arg1, %c0_i32 : i32, i32, i32
  }
}

module attributes {stable_mosaic.version = 11 : i64} {
  func.func @_ffn_kernel(%arg0: i32, %arg1: i32, %arg2: memref<16x32xbf16, #tpu.memory_space<vmem>>, %arg3: memref<32x1024xbf16, #tpu.memory_space<vmem>>, %arg4: memref<1x1024xf32, #tpu.memory_space<vmem>>, %arg5: memref<1024x32xbf16, #tpu.memory_space<vmem>>, %arg6: memref<1x32xf32, #tpu.memory_space<vmem>>, %arg7: memref<1x32xf32, #tpu.memory_space<vmem>>, %arg8: memref<1x32xf32, #tpu.memory_space<vmem>>, %arg9: memref<1x32xf32, #tpu.memory_space<vmem>>, %arg10: memref<1x32xf32, #tpu.memory_space<vmem>>, %arg11: memref<16x32xbf16, #tpu.memory_space<vmem>>, %arg12: memref<16x32xf32, #tpu.memory_space<vmem>>) attributes {dimension_semantics = [#tpu.dimension_semantics<parallel>, #tpu.dimension_semantics<arbitrary>], iteration_bounds = array<i64: 1, 2>, scalar_prefetch = 0 : i64, scratch_operands = 1 : i64, tpu.core_type = #tpu.core_type<tc>, window_params = [{transform_indices = @transform_0, window_bounds = array<i64: 16, 32>}, {transform_indices = @transform_1, window_bounds = array<i64: 32, 1024>}, {transform_indices = @transform_2, window_bounds = array<i64: 1, 1024>}, {transform_indices = @transform_3, window_bounds = array<i64: 1024, 32>}, {pipeline_mode = #tpu.pipeline_mode<synchronous>, transform_indices = @transform_4, window_bounds = array<i64: 1, 32>}, {pipeline_mode = #tpu.pipeline_mode<synchronous>, transform_indices = @transform_5, window_bounds = array<i64: 1, 32>}, {pipeline_mode = #tpu.pipeline_mode<synchronous>, transform_indices = @transform_6, window_bounds = array<i64: 1, 32>}, {pipeline_mode = #tpu.pipeline_mode<synchronous>, transform_indices = @transform_7, window_bounds = array<i64: 1, 32>}, {pipeline_mode = #tpu.pipeline_mode<synchronous>, transform_indices = @transform_8, window_bounds = array<i64: 1, 32>}, {transform_indices = @transform_9, window_bounds = array<i64: 16, 32>}]} {
    %c0_i32 = arith.constant 0 : i32
    %0 = arith.cmpi eq, %arg1, %c0_i32 : i32
    %1 = arith.extui %0 : i1 to i32
    %c0_i32_0 = arith.constant 0 : i32
    %2 = arith.cmpi ne, %1, %c0_i32_0 : i32
    scf.if %2 {
      %cst_15 = arith.constant 0.000000e+00 : f32
      %20 = vector.broadcast %cst_15 : f32 to vector<16x32xf32>
      %c0_16 = arith.constant 0 : index
      %c0_17 = arith.constant 0 : index
      %21 = vector.load %arg12[%c0_16, %c0_17] : memref<16x32xf32, #tpu.memory_space<vmem>>, vector<16x32xf32>
      tpu.vector_store %arg12[%c0_16, %c0_17], %20 {strides = array<i32>} : memref<16x32xf32, #tpu.memory_space<vmem>>, vector<16x32xf32>,
    } else {
    }
    %c0 = arith.constant 0 : index
    %c0_1 = arith.constant 0 : index
    %3 = vector.load %arg2[%c0, %c0_1] : memref<16x32xbf16, #tpu.memory_space<vmem>>, vector<16x32xbf16>
    %c0_2 = arith.constant 0 : index
    %c0_3 = arith.constant 0 : index
    %4 = vector.load %arg3[%c0_2, %c0_3] : memref<32x1024xbf16, #tpu.memory_space<vmem>>, vector<32x1024xbf16>
    %cst = arith.constant dense<0.000000e+00> : vector<16x1024xf32>
    %5 = tpu.matmul %3, %4, %cst {dimension_numbers = #tpu.dot_dimension_numbers<[1], [0], [0], [1], [0, 0, 1, 1], [], []>} : vector<16x32xbf16>, vector<32x1024xbf16>, vector<16x1024xf32> -> vector<16x1024xf32>
    %c0_4 = arith.constant 0 : index
    %c0_5 = arith.constant 0 : index
    %6 = vector.load %arg4[%c0_4, %c0_5] : memref<1x1024xf32, #tpu.memory_space<vmem>>, vector<1x1024xf32>
    %7 = vector.broadcast %6 : vector<1x1024xf32> to vector<16x1024xf32>
    %8 = arith.addf %5, %7 : vector<16x1024xf32>
    %cst_6 = arith.constant 0.000000e+00 : f32
    %9 = vector.broadcast %cst_6 : f32 to vector<16x1024xf32>
    %10 = arith.maximumf %8, %9 : vector<16x1024xf32>
    %c0_7 = arith.constant 0 : index
    %c0_8 = arith.constant 0 : index
    %11 = vector.load %arg12[%c0_7, %c0_8] : memref<16x32xf32, #tpu.memory_space<vmem>>, vector<16x32xf32>
    %12 = arith.truncf %10 : vector<16x1024xf32> to vector<16x1024xbf16>
    %c0_9 = arith.constant 0 : index
    %c0_10 = arith.constant 0 : index
    %13 = vector.load %arg5[%c0_9, %c0_10] : memref<1024x32xbf16, #tpu.memory_space<vmem>>, vector<1024x32xbf16>
    %cst_11 = arith.constant dense<0.000000e+00> : vector<16x32xf32>
    %14 = tpu.matmul %12, %13, %cst_11 {dimension_numbers = #tpu.dot_dimension_numbers<[1], [0], [0], [1], [0, 0, 1, 1], [], []>} : vector<16x1024xbf16>, vector<1024x32xbf16>, vector<16x32xf32> -> vector<16x32xf32>
    %15 = arith.addf %11, %14 : vector<16x32xf32>
    %c0_12 = arith.constant 0 : index
    %c0_13 = arith.constant 0 : index
    %16 = vector.load %arg12[%c0_12, %c0_13] : memref<16x32xf32, #tpu.memory_space<vmem>>, vector<16x32xf32>
    tpu.vector_store %arg12[%c0_12, %c0_13], %15 {strides = array<i32>} : memref<16x32xf32, #tpu.memory_space<vmem>>, vector<16x32xf32>,
    %c1_i32 = arith.constant 1 : i32
    %17 = arith.cmpi eq, %arg1, %c1_i32 : i32
    %18 = arith.extui %17 : i1 to i32
    %c0_i32_14 = arith.constant 0 : i32
    %19 = arith.cmpi ne, %18, %c0_i32_14 : i32
    scf.if %19 {
      %c0_15 = arith.constant 0 : index
      %c0_16 = arith.constant 0 : index
      %20 = vector.load %arg12[%c0_15, %c0_16] : memref<16x32xf32, #tpu.memory_space<vmem>>, vector<16x32xf32>
      %c0_17 = arith.constant 0 : index
      %c0_18 = arith.constant 0 : index
      %21 = vector.load %arg6[%c0_17, %c0_18] : memref<1x32xf32, #tpu.memory_space<vmem>>, vector<1x32xf32>
      %22 = vector.broadcast %21 : vector<1x32xf32> to vector<16x32xf32>
      %23 = arith.addf %20, %22 : vector<16x32xf32>
      %24 = arith.extf %3 : vector<16x32xbf16> to vector<16x32xf32>
      %25 = arith.addf %24, %23 : vector<16x32xf32>
      %c0_19 = arith.constant 0 : index
      %c0_20 = arith.constant 0 : index
      %26 = vector.load %arg7[%c0_19, %c0_20] : memref<1x32xf32, #tpu.memory_space<vmem>>, vector<1x32xf32>
      %c0_21 = arith.constant 0 : index
      %c0_22 = arith.constant 0 : index
      %27 = vector.load %arg8[%c0_21, %c0_22] : memref<1x32xf32, #tpu.memory_space<vmem>>, vector<1x32xf32>
      %cst_23 = arith.constant dense<0.000000e+00> : vector<16xf32>
      %28 = vector.multi_reduction <add>, %25, %cst_23 [1] : vector<16x32xf32> to vector<16xf32>
      %29 = vector.shape_cast %28 : vector<16xf32> to vector<16x1xf32>
      %cst_24 = arith.constant 3.200000e+01 : f32
      %30 = vector.broadcast %cst_24 : f32 to vector<16x1xf32>
      %31 = arith.divf %29, %30 : vector<16x1xf32>
      %32 = vector.broadcast %31 : vector<16x1xf32> to vector<16x32xf32>
      %33 = arith.subf %25, %32 : vector<16x32xf32>
      %34 = arith.mulf %33, %33 : vector<16x32xf32>
      %cst_25 = arith.constant dense<0.000000e+00> : vector<16xf32>
      %35 = vector.multi_reduction <add>, %34, %cst_25 [1] : vector<16x32xf32> to vector<16xf32>
      %36 = vector.shape_cast %35 : vector<16xf32> to vector<16x1xf32>
      %cst_26 = arith.constant 3.200000e+01 : f32
      %37 = vector.broadcast %cst_26 : f32 to vector<16x1xf32>
      %38 = arith.divf %36, %37 : vector<16x1xf32>
      %cst_27 = arith.constant 9.99999974E-6 : f32
      %39 = vector.broadcast %cst_27 : f32 to vector<16x1xf32>
      %40 = arith.addf %38, %39 : vector<16x1xf32>
      %41 = math.rsqrt %40 : vector<16x1xf32>
      %42 = vector.broadcast %41 : vector<16x1xf32> to vector<16x32xf32>
      %43 = arith.mulf %33, %42 : vector<16x32xf32>
      %44 = vector.broadcast %26 : vector<1x32xf32> to vector<16x32xf32>
      %45 = arith.mulf %43, %44 : vector<16x32xf32>
      %46 = vector.broadcast %27 : vector<1x32xf32> to vector<16x32xf32>
      %47 = arith.addf %45, %46 : vector<16x32xf32>
      %c0_28 = arith.constant 0 : index
      %c0_29 = arith.constant 0 : index
      %48 = vector.load %arg9[%c0_28, %c0_29] : memref<1x32xf32, #tpu.memory_space<vmem>>, vector<1x32xf32>
      %c0_30 = arith.constant 0 : index
      %c0_31 = arith.constant 0 : index
      %49 = vector.load %arg10[%c0_30, %c0_31] : memref<1x32xf32, #tpu.memory_space<vmem>>, vector<1x32xf32>
      %cst_32 = arith.constant dense<0.000000e+00> : vector<16xf32>
      %50 = vector.multi_reduction <add>, %47, %cst_32 [1] : vector<16x32xf32> to vector<16xf32>
      %51 = vector.shape_cast %50 : vector<16xf32> to vector<16x1xf32>
      %cst_33 = arith.constant 3.200000e+01 : f32
      %52 = vector.broadcast %cst_33 : f32 to vector<16x1xf32>
      %53 = arith.divf %51, %52 : vector<16x1xf32>
      %54 = vector.broadcast %53 : vector<16x1xf32> to vector<16x32xf32>
      %55 = arith.subf %47, %54 : vector<16x32xf32>
      %56 = arith.mulf %55, %55 : vector<16x32xf32>
      %cst_34 = arith.constant dense<0.000000e+00> : vector<16xf32>
      %57 = vector.multi_reduction <add>, %56, %cst_34 [1] : vector<16x32xf32> to vector<16xf32>
      %58 = vector.shape_cast %57 : vector<16xf32> to vector<16x1xf32>
      %cst_35 = arith.constant 3.200000e+01 : f32
      %59 = vector.broadcast %cst_35 : f32 to vector<16x1xf32>
      %60 = arith.divf %58, %59 : vector<16x1xf32>
      %cst_36 = arith.constant 9.99999974E-6 : f32
      %61 = vector.broadcast %cst_36 : f32 to vector<16x1xf32>
      %62 = arith.addf %60, %61 : vector<16x1xf32>
      %63 = math.rsqrt %62 : vector<16x1xf32>
      %64 = vector.broadcast %63 : vector<16x1xf32> to vector<16x32xf32>
      %65 = arith.mulf %55, %64 : vector<16x32xf32>
      %66 = vector.broadcast %48 : vector<1x32xf32> to vector<16x32xf32>
      %67 = arith.mulf %65, %66 : vector<16x32xf32>
      %68 = vector.broadcast %49 : vector<1x32xf32> to vector<16x32xf32>
      %69 = arith.addf %67, %68 : vector<16x32xf32>
      %70 = arith.truncf %69 : vector<16x32xf32> to vector<16x32xbf16>
      %c0_37 = arith.constant 0 : index
      %c0_38 = arith.constant 0 : index
      %71 = vector.load %arg11[%c0_37, %c0_38] : memref<16x32xbf16, #tpu.memory_space<vmem>>, vector<16x32xbf16>
      tpu.vector_store %arg11[%c0_37, %c0_38], %70 {strides = array<i32>} : memref<16x32xbf16, #tpu.memory_space<vmem>>, vector<16x32xbf16>,
    } else {
    }
    return
  }
  func.func @transform_0(%arg0: i32, %arg1: i32) -> (i32, i32) {
    %c0_i32 = arith.constant 0 : i32
    %c0_i32_0 = arith.constant 0 : i32
    return %arg0, %c0_i32 : i32, i32
  }
  func.func @transform_1(%arg0: i32, %arg1: i32) -> (i32, i32) {
    %c0_i32 = arith.constant 0 : i32
    %c0_i32_0 = arith.constant 0 : i32
    return %c0_i32, %arg1 : i32, i32
  }
  func.func @transform_2(%arg0: i32, %arg1: i32) -> (i32, i32) {
    %c0_i32 = arith.constant 0 : i32
    %c0_i32_0 = arith.constant 0 : i32
    return %c0_i32, %arg1 : i32, i32
  }
  func.func @transform_3(%arg0: i32, %arg1: i32) -> (i32, i32) {
    %c0_i32 = arith.constant 0 : i32
    %c0_i32_0 = arith.constant 0 : i32
    return %arg1, %c0_i32 : i32, i32
  }
  func.func @transform_4(%arg0: i32, %arg1: i32) -> (i32, i32) {
    %c0_i32 = arith.constant 0 : i32
    %c0_i32_0 = arith.constant 0 : i32
    %c0_i32_1 = arith.constant 0 : i32
    return %c0_i32, %c0_i32_0 : i32, i32
  }
  func.func @transform_5(%arg0: i32, %arg1: i32) -> (i32, i32) {
    %c0_i32 = arith.constant 0 : i32
    %c0_i32_0 = arith.constant 0 : i32
    %c0_i32_1 = arith.constant 0 : i32
    return %c0_i32, %c0_i32_0 : i32, i32
  }
  func.func @transform_6(%arg0: i32, %arg1: i32) -> (i32, i32) {
    %c0_i32 = arith.constant 0 : i32
    %c0_i32_0 = arith.constant 0 : i32
    %c0_i32_1 = arith.constant 0 : i32
    return %c0_i32, %c0_i32_0 : i32, i32
  }
  func.func @transform_7(%arg0: i32, %arg1: i32) -> (i32, i32) {
    %c0_i32 = arith.constant 0 : i32
    %c0_i32_0 = arith.constant 0 : i32
    %c0_i32_1 = arith.constant 0 : i32
    return %c0_i32, %c0_i32_0 : i32, i32
  }
  func.func @transform_8(%arg0: i32, %arg1: i32) -> (i32, i32) {
    %c0_i32 = arith.constant 0 : i32
    %c0_i32_0 = arith.constant 0 : i32
    %c0_i32_1 = arith.constant 0 : i32
    return %c0_i32, %c0_i32_0 : i32, i32
  }
  func.func @transform_9(%arg0: i32, %arg1: i32) -> (i32, i32) {
    %c0_i32 = arith.constant 0 : i32
    %c0_i32_0 = arith.constant 0 : i32
    return %arg0, %c0_i32 : i32, i32
  }
}

module attributes {stable_mosaic.version = 11 : i64} {
  func.func @_mha_kernel(%arg0: i32, %arg1: i32, %arg2: memref<1x8x32xbf16, #tpu.memory_space<vmem>>, %arg3: memref<1x8x32xbf16, #tpu.memory_space<vmem>>, %arg4: memref<32x32xbf16, #tpu.memory_space<vmem>>, %arg5: memref<1x32xf32, #tpu.memory_space<vmem>>, %arg6: memref<32x64xbf16, #tpu.memory_space<vmem>>, %arg7: memref<1x64xf32, #tpu.memory_space<vmem>>, %arg8: memref<4x8x32xbf16, #tpu.memory_space<vmem>>, %arg9: memref<1x32xf32, #tpu.memory_space<vmem>>, %arg10: memref<1x32xf32, #tpu.memory_space<vmem>>, %arg11: memref<1x32xf32, #tpu.memory_space<vmem>>, %arg12: memref<1x8x32xbf16, #tpu.memory_space<vmem>>) attributes {dimension_semantics = [#tpu.dimension_semantics<parallel>, #tpu.dimension_semantics<parallel>], iteration_bounds = array<i64: 2, 1>, scalar_prefetch = 0 : i64, scratch_operands = 0 : i64, tpu.core_type = #tpu.core_type<tc>, window_params = [{transform_indices = @transform_0, window_bounds = array<i64: 1, 8, 32>}, {transform_indices = @transform_1, window_bounds = array<i64: 1, 8, 32>}, {pipeline_mode = #tpu.pipeline_mode<synchronous>, transform_indices = @transform_2, window_bounds = array<i64: 32, 32>}, {pipeline_mode = #tpu.pipeline_mode<synchronous>, transform_indices = @transform_3, window_bounds = array<i64: 1, 32>}, {pipeline_mode = #tpu.pipeline_mode<synchronous>, transform_indices = @transform_4, window_bounds = array<i64: 32, 64>}, {pipeline_mode = #tpu.pipeline_mode<synchronous>, transform_indices = @transform_5, window_bounds = array<i64: 1, 64>}, {pipeline_mode = #tpu.pipeline_mode<synchronous>, transform_indices = @transform_6, window_bounds = array<i64: 4, 8, 32>}, {pipeline_mode = #tpu.pipeline_mode<synchronous>, transform_indices = @transform_7, window_bounds = array<i64: 1, 32>}, {pipeline_mode = #tpu.pipeline_mode<synchronous>, transform_indices = @transform_8, window_bounds = array<i64: 1, 32>}, {pipeline_mode = #tpu.pipeline_mode<synchronous>, transform_indices = @transform_9, window_bounds = array<i64: 1, 32>}, {transform_indices = @transform_10, window_bounds = array<i64: 1, 8, 32>}]} {
    %c0 = arith.constant 0 : index
    %c0_0 = arith.constant 0 : index
    %c0_1 = arith.constant 0 : index
    %0 = vector.load %arg2[%c0, %c0_0, %c0_1] : memref<1x8x32xbf16, #tpu.memory_space<vmem>>, vector<1x8x32xbf16>
    %1 = vector.shape_cast %0 : vector<1x8x32xbf16> to vector<8x32xbf16>
    %c0_2 = arith.constant 0 : index
    %c0_3 = arith.constant 0 : index
    %c0_4 = arith.constant 0 : index
    %2 = vector.load %arg3[%c0_2, %c0_3, %c0_4] : memref<1x8x32xbf16, #tpu.memory_space<vmem>>, vector<1x8x32xbf16>
    %3 = vector.shape_cast %2 : vector<1x8x32xbf16> to vector<8x32xbf16>
    %c0_5 = arith.constant 0 : index
    %c0_6 = arith.constant 0 : index
    %4 = vector.load %arg4[%c0_5, %c0_6] : memref<32x32xbf16, #tpu.memory_space<vmem>>, vector<32x32xbf16>
    %cst = arith.constant dense<0.000000e+00> : vector<8x32xf32>
    %5 = tpu.matmul %1, %4, %cst {dimension_numbers = #tpu.dot_dimension_numbers<[1], [0], [0], [1], [0, 0, 1, 1], [], []>} : vector<8x32xbf16>, vector<32x32xbf16>, vector<8x32xf32> -> vector<8x32xf32>
    %c0_7 = arith.constant 0 : index
    %c0_8 = arith.constant 0 : index
    %6 = vector.load %arg5[%c0_7, %c0_8] : memref<1x32xf32, #tpu.memory_space<vmem>>, vector<1x32xf32>
    %7 = vector.broadcast %6 : vector<1x32xf32> to vector<8x32xf32>
    %8 = arith.addf %5, %7 : vector<8x32xf32>
    %c0_9 = arith.constant 0 : index
    %c0_10 = arith.constant 0 : index
    %9 = vector.load %arg6[%c0_9, %c0_10] : memref<32x64xbf16, #tpu.memory_space<vmem>>, vector<32x64xbf16>
    %cst_11 = arith.constant dense<0.000000e+00> : vector<8x64xf32>
    %10 = tpu.matmul %3, %9, %cst_11 {dimension_numbers = #tpu.dot_dimension_numbers<[1], [0], [0], [1], [0, 0, 1, 1], [], []>} : vector<8x32xbf16>, vector<32x64xbf16>, vector<8x64xf32> -> vector<8x64xf32>
    %c0_12 = arith.constant 0 : index
    %c0_13 = arith.constant 0 : index
    %11 = vector.load %arg7[%c0_12, %c0_13] : memref<1x64xf32, #tpu.memory_space<vmem>>, vector<1x64xf32>
    %12 = vector.broadcast %11 : vector<1x64xf32> to vector<8x64xf32>
    %13 = arith.addf %10, %12 : vector<8x64xf32>
    %14 = vector.extract_strided_slice %13 {offsets = [0, 0], sizes = [8, 32], strides = [1, 1]} : vector<8x64xf32> to vector<8x32xf32>
    %15 = vector.extract_strided_slice %13 {offsets = [0, 32], sizes = [8, 32], strides = [1, 1]} : vector<8x64xf32> to vector<8x32xf32>
    %cst_14 = arith.constant 0.000000e+00 : f32
    %16 = vector.broadcast %cst_14 : f32 to vector<8x32xf32>
    %17 = vector.extract_strided_slice %8 {offsets = [0, 0], sizes = [8, 8], strides = [1, 1]} : vector<8x32xf32> to vector<8x8xf32>
    %18 = arith.truncf %17 : vector<8x8xf32> to vector<8x8xbf16>
    %19 = vector.extract_strided_slice %14 {offsets = [0, 0], sizes = [8, 8], strides = [1, 1]} : vector<8x32xf32> to vector<8x8xf32>
    %20 = arith.truncf %19 : vector<8x8xf32> to vector<8x8xbf16>
    %21 = vector.extract_strided_slice %15 {offsets = [0, 0], sizes = [8, 8], strides = [1, 1]} : vector<8x32xf32> to vector<8x8xf32>
    %22 = arith.truncf %21 : vector<8x8xf32> to vector<8x8xbf16>
    %cst_15 = arith.constant dense<0.000000e+00> : vector<8x8xf32>
    %23 = tpu.matmul %18, %20, %cst_15 {dimension_numbers = #tpu.dot_dimension_numbers<[1], [1], [0], [0], [0, 0, 1, 0], [], []>} : vector<8x8xbf16>, vector<8x8xbf16>, vector<8x8xf32> -> vector<8x8xf32>
    %cst_16 = arith.constant dense<0xFF800000> : vector<8xf32>
    %24 = vector.multi_reduction <maximumf>, %23, %cst_16 [1] : vector<8x8xf32> to vector<8xf32>
    %25 = vector.shape_cast %24 : vector<8xf32> to vector<8x1xf32>
    %26 = vector.broadcast %25 : vector<8x1xf32> to vector<8x8xf32>
    %27 = arith.subf %23, %26 : vector<8x8xf32>
    %28 = math.exp %27 : vector<8x8xf32>
    %cst_17 = arith.constant dense<0.000000e+00> : vector<8xf32>
    %29 = vector.multi_reduction <add>, %28, %cst_17 [1] : vector<8x8xf32> to vector<8xf32>
    %30 = vector.shape_cast %29 : vector<8xf32> to vector<8x1xf32>
    %31 = tpu.reciprocal %30 {approx = true} : vector<8x1xf32> -> vector<8x1xf32>
    %32 = vector.broadcast %31 : vector<8x1xf32> to vector<8x8xf32>
    %33 = arith.mulf %28, %32 : vector<8x8xf32>
    %34 = arith.truncf %33 : vector<8x8xf32> to vector<8x8xbf16>
    %cst_18 = arith.constant dense<0.000000e+00> : vector<8x8xf32>
    %35 = tpu.matmul %34, %22, %cst_18 {dimension_numbers = #tpu.dot_dimension_numbers<[1], [0], [0], [1], [0, 0, 1, 1], [], []>} : vector<8x8xbf16>, vector<8x8xbf16>, vector<8x8xf32> -> vector<8x8xf32>
    %36 = arith.truncf %35 : vector<8x8xf32> to vector<8x8xbf16>
    %c0_19 = arith.constant 0 : index
    %c0_20 = arith.constant 0 : index
    %c0_21 = arith.constant 0 : index
    %37 = vector.load %arg8[%c0_19, %c0_20, %c0_21] : memref<4x8x32xbf16, #tpu.memory_space<vmem>>, vector<1x8x32xbf16>
    %38 = vector.shape_cast %37 : vector<1x8x32xbf16> to vector<8x32xbf16>
    %cst_22 = arith.constant dense<0.000000e+00> : vector<8x32xf32>
    %39 = tpu.matmul %36, %38, %cst_22 {dimension_numbers = #tpu.dot_dimension_numbers<[1], [0], [0], [1], [0, 0, 1, 1], [], []>} : vector<8x8xbf16>, vector<8x32xbf16>, vector<8x32xf32> -> vector<8x32xf32>
    %40 = arith.addf %16, %39 : vector<8x32xf32>
    %41 = vector.extract_strided_slice %8 {offsets = [0, 8], sizes = [8, 8], strides = [1, 1]} : vector<8x32xf32> to vector<8x8xf32>
    %42 = arith.truncf %41 : vector<8x8xf32> to vector<8x8xbf16>
    %43 = vector.extract_strided_slice %14 {offsets = [0, 8], sizes = [8, 8], strides = [1, 1]} : vector<8x32xf32> to vector<8x8xf32>
    %44 = arith.truncf %43 : vector<8x8xf32> to vector<8x8xbf16>
    %45 = vector.extract_strided_slice %15 {offsets = [0, 8], sizes = [8, 8], strides = [1, 1]} : vector<8x32xf32> to vector<8x8xf32>
    %46 = arith.truncf %45 : vector<8x8xf32> to vector<8x8xbf16>
    %cst_23 = arith.constant dense<0.000000e+00> : vector<8x8xf32>
    %47 = tpu.matmul %42, %44, %cst_23 {dimension_numbers = #tpu.dot_dimension_numbers<[1], [1], [0], [0], [0, 0, 1, 0], [], []>} : vector<8x8xbf16>, vector<8x8xbf16>, vector<8x8xf32> -> vector<8x8xf32>
    %cst_24 = arith.constant dense<0xFF800000> : vector<8xf32>
    %48 = vector.multi_reduction <maximumf>, %47, %cst_24 [1] : vector<8x8xf32> to vector<8xf32>
    %49 = vector.shape_cast %48 : vector<8xf32> to vector<8x1xf32>
    %50 = vector.broadcast %49 : vector<8x1xf32> to vector<8x8xf32>
    %51 = arith.subf %47, %50 : vector<8x8xf32>
    %52 = math.exp %51 : vector<8x8xf32>
    %cst_25 = arith.constant dense<0.000000e+00> : vector<8xf32>
    %53 = vector.multi_reduction <add>, %52, %cst_25 [1] : vector<8x8xf32> to vector<8xf32>
    %54 = vector.shape_cast %53 : vector<8xf32> to vector<8x1xf32>
    %55 = tpu.reciprocal %54 {approx = true} : vector<8x1xf32> -> vector<8x1xf32>
    %56 = vector.broadcast %55 : vector<8x1xf32> to vector<8x8xf32>
    %57 = arith.mulf %52, %56 : vector<8x8xf32>
    %58 = arith.truncf %57 : vector<8x8xf32> to vector<8x8xbf16>
    %cst_26 = arith.constant dense<0.000000e+00> : vector<8x8xf32>
    %59 = tpu.matmul %58, %46, %cst_26 {dimension_numbers = #tpu.dot_dimension_numbers<[1], [0], [0], [1], [0, 0, 1, 1], [], []>} : vector<8x8xbf16>, vector<8x8xbf16>, vector<8x8xf32> -> vector<8x8xf32>
    %60 = arith.truncf %59 : vector<8x8xf32> to vector<8x8xbf16>
    %c1 = arith.constant 1 : index
    %c0_27 = arith.constant 0 : index
    %c0_28 = arith.constant 0 : index
    %61 = vector.load %arg8[%c1, %c0_27, %c0_28] : memref<4x8x32xbf16, #tpu.memory_space<vmem>>, vector<1x8x32xbf16>
    %62 = vector.shape_cast %61 : vector<1x8x32xbf16> to vector<8x32xbf16>
    %cst_29 = arith.constant dense<0.000000e+00> : vector<8x32xf32>
    %63 = tpu.matmul %60, %62, %cst_29 {dimension_numbers = #tpu.dot_dimension_numbers<[1], [0], [0], [1], [0, 0, 1, 1], [], []>} : vector<8x8xbf16>, vector<8x32xbf16>, vector<8x32xf32> -> vector<8x32xf32>
    %64 = arith.addf %40, %63 : vector<8x32xf32>
    %65 = vector.extract_strided_slice %8 {offsets = [0, 16], sizes = [8, 8], strides = [1, 1]} : vector<8x32xf32> to vector<8x8xf32>
    %66 = arith.truncf %65 : vector<8x8xf32> to vector<8x8xbf16>
    %67 = vector.extract_strided_slice %14 {offsets = [0, 16], sizes = [8, 8], strides = [1, 1]} : vector<8x32xf32> to vector<8x8xf32>
    %68 = arith.truncf %67 : vector<8x8xf32> to vector<8x8xbf16>
    %69 = vector.extract_strided_slice %15 {offsets = [0, 16], sizes = [8, 8], strides = [1, 1]} : vector<8x32xf32> to vector<8x8xf32>
    %70 = arith.truncf %69 : vector<8x8xf32> to vector<8x8xbf16>
    %cst_30 = arith.constant dense<0.000000e+00> : vector<8x8xf32>
    %71 = tpu.matmul %66, %68, %cst_30 {dimension_numbers = #tpu.dot_dimension_numbers<[1], [1], [0], [0], [0, 0, 1, 0], [], []>} : vector<8x8xbf16>, vector<8x8xbf16>, vector<8x8xf32> -> vector<8x8xf32>
    %cst_31 = arith.constant dense<0xFF800000> : vector<8xf32>
    %72 = vector.multi_reduction <maximumf>, %71, %cst_31 [1] : vector<8x8xf32> to vector<8xf32>
    %73 = vector.shape_cast %72 : vector<8xf32> to vector<8x1xf32>
    %74 = vector.broadcast %73 : vector<8x1xf32> to vector<8x8xf32>
    %75 = arith.subf %71, %74 : vector<8x8xf32>
    %76 = math.exp %75 : vector<8x8xf32>
    %cst_32 = arith.constant dense<0.000000e+00> : vector<8xf32>
    %77 = vector.multi_reduction <add>, %76, %cst_32 [1] : vector<8x8xf32> to vector<8xf32>
    %78 = vector.shape_cast %77 : vector<8xf32> to vector<8x1xf32>
    %79 = tpu.reciprocal %78 {approx = true} : vector<8x1xf32> -> vector<8x1xf32>
    %80 = vector.broadcast %79 : vector<8x1xf32> to vector<8x8xf32>
    %81 = arith.mulf %76, %80 : vector<8x8xf32>
    %82 = arith.truncf %81 : vector<8x8xf32> to vector<8x8xbf16>
    %cst_33 = arith.constant dense<0.000000e+00> : vector<8x8xf32>
    %83 = tpu.matmul %82, %70, %cst_33 {dimension_numbers = #tpu.dot_dimension_numbers<[1], [0], [0], [1], [0, 0, 1, 1], [], []>} : vector<8x8xbf16>, vector<8x8xbf16>, vector<8x8xf32> -> vector<8x8xf32>
    %84 = arith.truncf %83 : vector<8x8xf32> to vector<8x8xbf16>
    %c2 = arith.constant 2 : index
    %c0_34 = arith.constant 0 : index
    %c0_35 = arith.constant 0 : index
    %85 = vector.load %arg8[%c2, %c0_34, %c0_35] : memref<4x8x32xbf16, #tpu.memory_space<vmem>>, vector<1x8x32xbf16>
    %86 = vector.shape_cast %85 : vector<1x8x32xbf16> to vector<8x32xbf16>
    %cst_36 = arith.constant dense<0.000000e+00> : vector<8x32xf32>
    %87 = tpu.matmul %84, %86, %cst_36 {dimension_numbers = #tpu.dot_dimension_numbers<[1], [0], [0], [1], [0, 0, 1, 1], [], []>} : vector<8x8xbf16>, vector<8x32xbf16>, vector<8x32xf32> -> vector<8x32xf32>
    %88 = arith.addf %64, %87 : vector<8x32xf32>
    %89 = vector.extract_strided_slice %8 {offsets = [0, 24], sizes = [8, 8], strides = [1, 1]} : vector<8x32xf32> to vector<8x8xf32>
    %90 = arith.truncf %89 : vector<8x8xf32> to vector<8x8xbf16>
    %91 = vector.extract_strided_slice %14 {offsets = [0, 24], sizes = [8, 8], strides = [1, 1]} : vector<8x32xf32> to vector<8x8xf32>
    %92 = arith.truncf %91 : vector<8x8xf32> to vector<8x8xbf16>
    %93 = vector.extract_strided_slice %15 {offsets = [0, 24], sizes = [8, 8], strides = [1, 1]} : vector<8x32xf32> to vector<8x8xf32>
    %94 = arith.truncf %93 : vector<8x8xf32> to vector<8x8xbf16>
    %cst_37 = arith.constant dense<0.000000e+00> : vector<8x8xf32>
    %95 = tpu.matmul %90, %92, %cst_37 {dimension_numbers = #tpu.dot_dimension_numbers<[1], [1], [0], [0], [0, 0, 1, 0], [], []>} : vector<8x8xbf16>, vector<8x8xbf16>, vector<8x8xf32> -> vector<8x8xf32>
    %cst_38 = arith.constant dense<0xFF800000> : vector<8xf32>
    %96 = vector.multi_reduction <maximumf>, %95, %cst_38 [1] : vector<8x8xf32> to vector<8xf32>
    %97 = vector.shape_cast %96 : vector<8xf32> to vector<8x1xf32>
    %98 = vector.broadcast %97 : vector<8x1xf32> to vector<8x8xf32>
    %99 = arith.subf %95, %98 : vector<8x8xf32>
    %100 = math.exp %99 : vector<8x8xf32>
    %cst_39 = arith.constant dense<0.000000e+00> : vector<8xf32>
    %101 = vector.multi_reduction <add>, %100, %cst_39 [1] : vector<8x8xf32> to vector<8xf32>
    %102 = vector.shape_cast %101 : vector<8xf32> to vector<8x1xf32>
    %103 = tpu.reciprocal %102 {approx = true} : vector<8x1xf32> -> vector<8x1xf32>
    %104 = vector.broadcast %103 : vector<8x1xf32> to vector<8x8xf32>
    %105 = arith.mulf %100, %104 : vector<8x8xf32>
    %106 = arith.truncf %105 : vector<8x8xf32> to vector<8x8xbf16>
    %cst_40 = arith.constant dense<0.000000e+00> : vector<8x8xf32>
    %107 = tpu.matmul %106, %94, %cst_40 {dimension_numbers = #tpu.dot_dimension_numbers<[1], [0], [0], [1], [0, 0, 1, 1], [], []>} : vector<8x8xbf16>, vector<8x8xbf16>, vector<8x8xf32> -> vector<8x8xf32>
    %108 = arith.truncf %107 : vector<8x8xf32> to vector<8x8xbf16>
    %c3 = arith.constant 3 : index
    %c0_41 = arith.constant 0 : index
    %c0_42 = arith.constant 0 : index
    %109 = vector.load %arg8[%c3, %c0_41, %c0_42] : memref<4x8x32xbf16, #tpu.memory_space<vmem>>, vector<1x8x32xbf16>
    %110 = vector.shape_cast %109 : vector<1x8x32xbf16> to vector<8x32xbf16>
    %cst_43 = arith.constant dense<0.000000e+00> : vector<8x32xf32>
    %111 = tpu.matmul %108, %110, %cst_43 {dimension_numbers = #tpu.dot_dimension_numbers<[1], [0], [0], [1], [0, 0, 1, 1], [], []>} : vector<8x8xbf16>, vector<8x32xbf16>, vector<8x32xf32> -> vector<8x32xf32>
    %112 = arith.addf %88, %111 : vector<8x32xf32>
    %c0_44 = arith.constant 0 : index
    %c0_45 = arith.constant 0 : index
    %113 = vector.load %arg9[%c0_44, %c0_45] : memref<1x32xf32, #tpu.memory_space<vmem>>, vector<1x32xf32>
    %114 = vector.broadcast %113 : vector<1x32xf32> to vector<8x32xf32>
    %115 = arith.addf %112, %114 : vector<8x32xf32>
    %116 = arith.extf %1 : vector<8x32xbf16> to vector<8x32xf32>
    %117 = arith.addf %116, %115 : vector<8x32xf32>
    %c0_46 = arith.constant 0 : index
    %c0_47 = arith.constant 0 : index
    %118 = vector.load %arg10[%c0_46, %c0_47] : memref<1x32xf32, #tpu.memory_space<vmem>>, vector<1x32xf32>
    %c0_48 = arith.constant 0 : index
    %c0_49 = arith.constant 0 : index
    %119 = vector.load %arg11[%c0_48, %c0_49] : memref<1x32xf32, #tpu.memory_space<vmem>>, vector<1x32xf32>
    %cst_50 = arith.constant dense<0.000000e+00> : vector<8xf32>
    %120 = vector.multi_reduction <add>, %117, %cst_50 [1] : vector<8x32xf32> to vector<8xf32>
    %121 = vector.shape_cast %120 : vector<8xf32> to vector<8x1xf32>
    %cst_51 = arith.constant 3.200000e+01 : f32
    %122 = vector.broadcast %cst_51 : f32 to vector<8x1xf32>
    %123 = arith.divf %121, %122 : vector<8x1xf32>
    %124 = vector.broadcast %123 : vector<8x1xf32> to vector<8x32xf32>
    %125 = arith.subf %117, %124 : vector<8x32xf32>
    %126 = arith.mulf %125, %125 : vector<8x32xf32>
    %cst_52 = arith.constant dense<0.000000e+00> : vector<8xf32>
    %127 = vector.multi_reduction <add>, %126, %cst_52 [1] : vector<8x32xf32> to vector<8xf32>
    %128 = vector.shape_cast %127 : vector<8xf32> to vector<8x1xf32>
    %cst_53 = arith.constant 3.200000e+01 : f32
    %129 = vector.broadcast %cst_53 : f32 to vector<8x1xf32>
    %130 = arith.divf %128, %129 : vector<8x1xf32>
    %cst_54 = arith.constant 9.99999974E-6 : f32
    %131 = vector.broadcast %cst_54 : f32 to vector<8x1xf32>
    %132 = arith.addf %130, %131 : vector<8x1xf32>
    %133 = math.rsqrt %132 : vector<8x1xf32>
    %134 = vector.broadcast %133 : vector<8x1xf32> to vector<8x32xf32>
    %135 = arith.mulf %125, %134 : vector<8x32xf32>
    %136 = vector.broadcast %118 : vector<1x32xf32> to vector<8x32xf32>
    %137 = arith.mulf %135, %136 : vector<8x32xf32>
    %138 = vector.broadcast %119 : vector<1x32xf32> to vector<8x32xf32>
    %139 = arith.addf %137, %138 : vector<8x32xf32>
    %140 = arith.truncf %139 : vector<8x32xf32> to vector<8x32xbf16>
    %c0_55 = arith.constant 0 : index
    %c0_56 = arith.constant 0 : index
    %c0_57 = arith.constant 0 : index
    %141 = vector.load %arg12[%c0_55, %c0_56, %c0_57] : memref<1x8x32xbf16, #tpu.memory_space<vmem>>, vector<1x8x32xbf16>
    %142 = vector.shape_cast %141 : vector<1x8x32xbf16> to vector<8x32xbf16>
    %143 = vector.shape_cast %140 : vector<8x32xbf16> to vector<1x8x32xbf16>
    tpu.vector_store %arg12[%c0_55, %c0_56, %c0_57], %143 {strides = array<i32>} : memref<1x8x32xbf16, #tpu.memory_space<vmem>>, vector<1x8x32xbf16>,
    return
  }
  func.func @transform_0(%arg0: i32, %arg1: i32) -> (i32, i32, i32) {
    %c0_i32 = arith.constant 0 : i32
    %c0_i32_0 = arith.constant 0 : i32
    return %arg0, %arg1, %c0_i32 : i32, i32, i32
  }
  func.func @transform_1(%arg0: i32, %arg1: i32) -> (i32, i32, i32) {
    %c0_i32 = arith.constant 0 : i32
    %c0_i32_0 = arith.constant 0 : i32
    %c0_i32_1 = arith.constant 0 : i32
    return %arg0, %c0_i32, %c0_i32_0 : i32, i32, i32
  }
  func.func @transform_2(%arg0: i32, %arg1: i32) -> (i32, i32) {
    %c0_i32 = arith.constant 0 : i32
    %c0_i32_0 = arith.constant 0 : i32
    %c0_i32_1 = arith.constant 0 : i32
    return %c0_i32, %c0_i32_0 : i32, i32
  }
  func.func @transform_3(%arg0: i32, %arg1: i32) -> (i32, i32) {
    %c0_i32 = arith.constant 0 : i32
    %c0_i32_0 = arith.constant 0 : i32
    %c0_i32_1 = arith.constant 0 : i32
    return %c0_i32, %c0_i32_0 : i32, i32
  }
  func.func @transform_4(%arg0: i32, %arg1: i32) -> (i32, i32) {
    %c0_i32 = arith.constant 0 : i32
    %c0_i32_0 = arith.constant 0 : i32
    %c0_i32_1 = arith.constant 0 : i32
    return %c0_i32, %c0_i32_0 : i32, i32
  }
  func.func @transform_5(%arg0: i32, %arg1: i32) -> (i32, i32) {
    %c0_i32 = arith.constant 0 : i32
    %c0_i32_0 = arith.constant 0 : i32
    %c0_i32_1 = arith.constant 0 : i32
    return %c0_i32, %c0_i32_0 : i32, i32
  }
  func.func @transform_6(%arg0: i32, %arg1: i32) -> (i32, i32, i32) {
    %c0_i32 = arith.constant 0 : i32
    %c0_i32_0 = arith.constant 0 : i32
    %c0_i32_1 = arith.constant 0 : i32
    %c0_i32_2 = arith.constant 0 : i32
    return %c0_i32, %c0_i32_0, %c0_i32_1 : i32, i32, i32
  }
  func.func @transform_7(%arg0: i32, %arg1: i32) -> (i32, i32) {
    %c0_i32 = arith.constant 0 : i32
    %c0_i32_0 = arith.constant 0 : i32
    %c0_i32_1 = arith.constant 0 : i32
    return %c0_i32, %c0_i32_0 : i32, i32
  }
  func.func @transform_8(%arg0: i32, %arg1: i32) -> (i32, i32) {
    %c0_i32 = arith.constant 0 : i32
    %c0_i32_0 = arith.constant 0 : i32
    %c0_i32_1 = arith.constant 0 : i32
    return %c0_i32, %c0_i32_0 : i32, i32
  }
  func.func @transform_9(%arg0: i32, %arg1: i32) -> (i32, i32) {
    %c0_i32 = arith.constant 0 : i32
    %c0_i32_0 = arith.constant 0 : i32
    %c0_i32_1 = arith.constant 0 : i32
    return %c0_i32, %c0_i32_0 : i32, i32
  }
  func.func @transform_10(%arg0: i32, %arg1: i32) -> (i32, i32, i32) {
    %c0_i32 = arith.constant 0 : i32
    %c0_i32_0 = arith.constant 0 : i32
    return %arg0, %arg1, %c0_i32 : i32, i32, i32
  }
}

module attributes {stable_mosaic.version = 11 : i64} {
  func.func @_head_kernel(%arg0: i32, %arg1: memref<2x32xbf16, #tpu.memory_space<vmem>>, %arg2: memref<1x32xf32, #tpu.memory_space<vmem>>, %arg3: memref<1x32xf32, #tpu.memory_space<vmem>>, %arg4: memref<32x8xbf16, #tpu.memory_space<vmem>>, %arg5: memref<1x8xf32, #tpu.memory_space<vmem>>, %arg6: memref<2x8xf32, #tpu.memory_space<vmem>>) attributes {dimension_semantics = [#tpu.dimension_semantics<arbitrary>], iteration_bounds = array<i64: 1>, scalar_prefetch = 0 : i64, scratch_operands = 0 : i64, tpu.core_type = #tpu.core_type<tc>, window_params = [{pipeline_mode = #tpu.pipeline_mode<synchronous>, transform_indices = @transform_0, window_bounds = array<i64: 2, 32>}, {pipeline_mode = #tpu.pipeline_mode<synchronous>, transform_indices = @transform_1, window_bounds = array<i64: 1, 32>}, {pipeline_mode = #tpu.pipeline_mode<synchronous>, transform_indices = @transform_2, window_bounds = array<i64: 1, 32>}, {pipeline_mode = #tpu.pipeline_mode<synchronous>, transform_indices = @transform_3, window_bounds = array<i64: 32, 8>}, {pipeline_mode = #tpu.pipeline_mode<synchronous>, transform_indices = @transform_4, window_bounds = array<i64: 1, 8>}, {pipeline_mode = #tpu.pipeline_mode<synchronous>, transform_indices = @transform_5, window_bounds = array<i64: 2, 8>}]} {
    %c0 = arith.constant 0 : index
    %c0_0 = arith.constant 0 : index
    %0 = vector.load %arg1[%c0, %c0_0] : memref<2x32xbf16, #tpu.memory_space<vmem>>, vector<2x32xbf16>
    %1 = arith.extf %0 : vector<2x32xbf16> to vector<2x32xf32>
    %c0_1 = arith.constant 0 : index
    %c0_2 = arith.constant 0 : index
    %2 = vector.load %arg2[%c0_1, %c0_2] : memref<1x32xf32, #tpu.memory_space<vmem>>, vector<1x32xf32>
    %c0_3 = arith.constant 0 : index
    %c0_4 = arith.constant 0 : index
    %3 = vector.load %arg3[%c0_3, %c0_4] : memref<1x32xf32, #tpu.memory_space<vmem>>, vector<1x32xf32>
    %cst = arith.constant dense<0.000000e+00> : vector<2xf32>
    %4 = vector.multi_reduction <add>, %1, %cst [1] : vector<2x32xf32> to vector<2xf32>
    %5 = vector.shape_cast %4 : vector<2xf32> to vector<2x1xf32>
    %cst_5 = arith.constant 3.200000e+01 : f32
    %6 = vector.broadcast %cst_5 : f32 to vector<2x1xf32>
    %7 = arith.divf %5, %6 : vector<2x1xf32>
    %8 = vector.broadcast %7 : vector<2x1xf32> to vector<2x32xf32>
    %9 = arith.subf %1, %8 : vector<2x32xf32>
    %10 = arith.mulf %9, %9 : vector<2x32xf32>
    %cst_6 = arith.constant dense<0.000000e+00> : vector<2xf32>
    %11 = vector.multi_reduction <add>, %10, %cst_6 [1] : vector<2x32xf32> to vector<2xf32>
    %12 = vector.shape_cast %11 : vector<2xf32> to vector<2x1xf32>
    %cst_7 = arith.constant 3.200000e+01 : f32
    %13 = vector.broadcast %cst_7 : f32 to vector<2x1xf32>
    %14 = arith.divf %12, %13 : vector<2x1xf32>
    %cst_8 = arith.constant 9.99999974E-6 : f32
    %15 = vector.broadcast %cst_8 : f32 to vector<2x1xf32>
    %16 = arith.addf %14, %15 : vector<2x1xf32>
    %17 = math.rsqrt %16 : vector<2x1xf32>
    %18 = vector.broadcast %17 : vector<2x1xf32> to vector<2x32xf32>
    %19 = arith.mulf %9, %18 : vector<2x32xf32>
    %20 = vector.broadcast %2 : vector<1x32xf32> to vector<2x32xf32>
    %21 = arith.mulf %19, %20 : vector<2x32xf32>
    %22 = vector.broadcast %3 : vector<1x32xf32> to vector<2x32xf32>
    %23 = arith.addf %21, %22 : vector<2x32xf32>
    %24 = arith.truncf %23 : vector<2x32xf32> to vector<2x32xbf16>
    %c0_9 = arith.constant 0 : index
    %c0_10 = arith.constant 0 : index
    %25 = vector.load %arg4[%c0_9, %c0_10] : memref<32x8xbf16, #tpu.memory_space<vmem>>, vector<32x8xbf16>
    %cst_11 = arith.constant dense<0.000000e+00> : vector<2x8xf32>
    %26 = tpu.matmul %24, %25, %cst_11 {dimension_numbers = #tpu.dot_dimension_numbers<[1], [0], [0], [1], [0, 0, 1, 1], [], []>} : vector<2x32xbf16>, vector<32x8xbf16>, vector<2x8xf32> -> vector<2x8xf32>
    %c0_12 = arith.constant 0 : index
    %c0_13 = arith.constant 0 : index
    %27 = vector.load %arg5[%c0_12, %c0_13] : memref<1x8xf32, #tpu.memory_space<vmem>>, vector<1x8xf32>
    %28 = vector.broadcast %27 : vector<1x8xf32> to vector<2x8xf32>
    %29 = arith.addf %26, %28 : vector<2x8xf32>
    %c0_14 = arith.constant 0 : index
    %c0_15 = arith.constant 0 : index
    %30 = vector.load %arg6[%c0_14, %c0_15] : memref<2x8xf32, #tpu.memory_space<vmem>>, vector<2x8xf32>
    tpu.vector_store %arg6[%c0_14, %c0_15], %29 {strides = array<i32>} : memref<2x8xf32, #tpu.memory_space<vmem>>, vector<2x8xf32>,
    return
  }
  func.func @transform_0(%arg0: i32) -> (i32, i32) {
    %c0_i32 = arith.constant 0 : i32
    %c0_i32_0 = arith.constant 0 : i32
    %c0_i32_1 = arith.constant 0 : i32
    return %c0_i32, %c0_i32_0 : i32, i32
  }
  func.func @transform_1(%arg0: i32) -> (i32, i32) {
    %c0_i32 = arith.constant 0 : i32
    %c0_i32_0 = arith.constant 0 : i32
    %c0_i32_1 = arith.constant 0 : i32
    return %c0_i32, %c0_i32_0 : i32, i32
  }
  func.func @transform_2(%arg0: i32) -> (i32, i32) {
    %c0_i32 = arith.constant 0 : i32
    %c0_i32_0 = arith.constant 0 : i32
    %c0_i32_1 = arith.constant 0 : i32
    return %c0_i32, %c0_i32_0 : i32, i32
  }
  func.func @transform_3(%arg0: i32) -> (i32, i32) {
    %c0_i32 = arith.constant 0 : i32
    %c0_i32_0 = arith.constant 0 : i32
    %c0_i32_1 = arith.constant 0 : i32
    return %c0_i32, %c0_i32_0 : i32, i32
  }
  func.func @transform_4(%arg0: i32) -> (i32, i32) {
    %c0_i32 = arith.constant 0 : i32
    %c0_i32_0 = arith.constant 0 : i32
    %c0_i32_1 = arith.constant 0 : i32
    return %c0_i32, %c0_i32_0 : i32, i32
  }
  func.func @transform_5(%arg0: i32) -> (i32, i32) {
    %c0_i32 = arith.constant 0 : i32
    %c0_i32_0 = arith.constant 0 : i32
    %c0_i32_1 = arith.constant 0 : i32
    return %c0_i32, %c0_i32_0 : i32, i32
  }
}

</mosaic_0001>

<bundles_post_ra>
// kernel: transformer_model_forward.12
= control target key start
LH: loop header
LB: loop body
LE: loop exit
PB: predicated region body
PF: predicated region fallthrough
CT: control target
= control target key end

     0   :  { %vm19_vm0 = vcmask 261120   ;;  %v132_v0 = vmov 0.0   ;;  %vm133_vm1 = vmmov 0   ;;  %vm35_vm2 = vcmask 130048   ;;  %s176_s1 = inlined_call_operand.vmem [shape: bf16[16,32], index: 1, kind: input, shape index: {}]   ;;  %s177_s0 = inlined_call_operand.vmem [shape: f32[16,16], index: 0, kind: input, shape index: {}]   ;;  %s178_s2 = inlined_call_operand.vmem [shape: f32[1,32], index: 2, kind: input, shape index: {}]   ;;  %s179_s3 = inlined_call_operand.vmem [shape: bf16[16,32], index: 3, kind: output, shape index: {}]  }
   0x1   :  { %20 = vst.msk [vmem:[#allocation2] sm:$0xff] %vm19_vm0, %v132_v0  ;;  %21 = vst.msk [vmem:[#allocation2 + $0x8] sm:$0xff] %vm19_vm0, %v132_v0  ;;  %123 = vmatprep.subr.bf16.mxu0 %v132_v0  ;;  %v131_v1 = vld [vmem:[%s176_s1] sm:$0xff]   ;;  %125 = vmatprep.mubr.msk.bf16.mxu0 %vm133_vm1, %v132_v0  ;;  %v25_v3 = vld [vmem:[%s177_s0 + $0x8] sm:$0xff]  ;;  %vm107_vm3 = vcmask 257024  }
   0x2   :  { %v24_v2 = vld [vmem:[%s177_s0] sm:$0xff]  ;;  %124 = vmatpush3.bf16.msra.mxu0 %v131_v1 }
   0x3   :  { %v26_v4 = vpack.c.bf16 %v25_v3, %v24_v2  ;;  %v116_v13 = vld [vmem:[%s178_s2] ss:$0 sm:$0xff] }
   0x5   :  { %126 = vmatmul.mubr.msk.bf16.vlgmr.msra.gmra.mrb[0].mxu0 %vm35_vm2, %v26_v4 }
   0x8   :  { %v22_v5 = vld [vmem:[#allocation2] sm:$0xff]  ;;  %v23_v7 = vld [vmem:[#allocation2 + $0x8] sm:$0xff] }
  0xd8   :  { %v73_v6 = vpop.f32.mrb[0].mxu0 }
  0xd9   :  { %v80_v8 = vadd.f32 %v73_v6, %v22_v5  ;;  %v127_v9 = vpop.f32.mrb[1].mxu0 }
  0xda   :  { %v76_v10 = vpop.f32.mrb[2].mxu0 }
  0xdb   :  { %83 = vst.msk [vmem:[#allocation2] sm:$0xff] %vm19_vm0, %v80_v8  ;;  %v81_v11 = vadd.f32 %v76_v10, %v23_v7  ;;  %v128_v12 = vpop.f32.mrb[3].mxu0 }
  0xdd   :  { %84 = vst.msk [vmem:[#allocation2 + $0x8] sm:$0xff] %vm19_vm0, %v81_v11 }
  0xe2   :  { %v88_v14 = vld [vmem:[#allocation2] sm:$0xff] }
  0xe3   :  { %v97_v15 = vadd.f32 %v116_v13, %v88_v14 }
  0xe4   :  { %v89_v16 = vld [vmem:[#allocation2 + $0x8] sm:$0xff] }
  0xe5   :  { %v119_v17 = vpack.c.bf16 %v97_v15, %v97_v15  ;;  %v98_v18 = vadd.f32 %v116_v13, %v89_v16 }
  0xe7   :  { %108 = vst.msk [vmem:[%s179_s3] sm:$0xf] %vm107_vm3, %v119_v17  ;;  %v120_v19 = vpack.c.bf16 %v98_v18, %v98_v18 }
  0xe9   :  { %109 = vst.msk [vmem:[%s179_s3 + $0x4] sm:$0xf] %vm107_vm3, %v120_v19 }

// kernel: transformer_model_forward.13
= control target key start
LH: loop header
LB: loop body
LE: loop exit
PB: predicated region body
PF: predicated region fallthrough
CT: control target
= control target key end

     0   :  { %14 = vsyncpa [#allocation3], 0  ;;  %s2092_s0 = inlined_call_operand.vmem [shape: bf16[2,8,32], index: 0, kind: input, shape index: {}]   ;;  %s2093_s1 = inlined_call_operand.vmem [shape: bf16[32,32], index: 1, kind: input, shape index: {}]   ;;  %s2094_s2 = inlined_call_operand.hbm [shape: f32[1,32], index: 2, kind: input, shape index: {}]   ;;  %s2095_s3 = inlined_call_operand.vmem [shape: bf16[32,64], index: 3, kind: input, shape index: {}]   ;;  %s2096_s4 = inlined_call_operand.hbm [shape: f32[1,64], index: 4, kind: input, shape index: {}]   ;;  %s2097_s5 = inlined_call_operand.vmem [shape: bf16[4,8,32], index: 5, kind: input, shape index: {}]   ;;  %s2098_s6 = inlined_call_operand.hbm [shape: f32[1,32], index: 6, kind: input, shape index: {}]   ;;  %s2099_s7 = inlined_call_operand.hbm [shape: f32[1,32], index: 7, kind: input, shape index: {}]   ;;  %s2100_s8 = inlined_call_operand.vmem [shape: f32[1,32], index: 8, kind: input, shape index: {}]   ;;  %s2101_s9 = inlined_call_operand.vmem [shape: bf16[2,8,32], index: 9, kind: output, shape index: {}]  }
   0x1   :  { %15 = vsyncpa [#allocation5], 0 }
   0x2   :  { %16 = vsyncpa [#allocation8], 0  ;;  %s1794_s30 = smov 0   ;;  %s1796_s10 = smov 0  }
   0x3   :  { %s1798_s11 = smov 0  }
   0x4 LB: > { %s1731_s12 = smov [#allocation4]   ;;  %s1326_s14 = sadd.s32 4294967295, %s1729_s11   ;;  %s1729_s11 = sphi %s1798_s11, %s22_s11   ;;  %s1725_s10 = sphi %s1796_s10, %s2114_s10   ;;  %s1721_s30 = sphi %s1794_s30, %s2113_s30  }
   0x5   : > { %s291_s13 = sshll.u32 %s1731_s12, 4  ;;  %p1328_p0 = scmp.ge.s32.totalorder %s1729_s11, 1  ;;  %s292_s13 = int_to_ptr.vmem [resolvable:$true] %s291_s13 }
   0x6   : > { %p261_p1 = scmp.lt.s32.totalorder %s1729_s11, 3  ;;  %p1812_p2 = scmp.eq.s32.totalorder %s1326_s14, 0 }
   0x7   : > { %s34_s17 = sadd.s32 1, %s1725_s10  ;;  %s1732_s20 = smov [#allocation2]  }
   0x8   : > { %s2105_s15 = scalar_select %p1812_p2, 1, 0 }
   0x9   : > { %p1816_p3 = pnand %p1328_p0, %p261_p1  ;;  %p1829_p6 = scmp.ge.s32.totalorder %s34_s17, 2 }
   0xa   : > { %s277_s21 = sshll.u32 %s1732_s20, 4  ;;  %s1583_s24 = scalar_lea.hbm %s2096_s4, 16  ;;  %s1833_s21 = int_to_ptr.vmem [resolvable:$true] %s277_s21 }
   0xb   : > { %s2106_s16 = scalar_select %p1816_p3, 1, 0 }
   0xc   : > { %p1503_p4 = pneg %p1816_p3  ;;  %p1584_p7 = scmp.ne.s32.totalorder %s2096_s4, %s1583_s24 }
   0xd   : > { %s2108_s19 = scalar_select %p1829_p6, 1, 0 }
   0xe   : > { %p1825_p5 = pnand %p1812_p2, %p1503_p4  ;;  %p1590_p11 = scmp.lt.u32.totalorder %s1583_s24, %s2096_s4 }
  0x10   : > { %p1843_p8 = pneg %p1825_p5 }
  0x12   : > { %p1586_p9 = pnand %p1843_p8, %p1584_p7 }
  0x14   : > { %p1587_p10 = pneg %p1586_p9 }
  0x16   : > { %p1592_p12 = pnand %p1590_p11, %p1587_p10 }
  0x18   : > { %1595 = shalt.err (!%p1592_p12)
}
  0x19   : > { %s1596_s12 = scalar_lea.vmem %s292_s13, 16  ;;  %s1603_s14 = scalar_lea.vmem %s292_s13, 32 }
  0x1a   : > { %p1597_p13 = scmp.ne.s32.totalorder %s292_s13, %s1596_s12  ;;  %p1604_p4 = scmp.lt.s32.totalorder %s292_s13, %s292_s13 }
  0x1b   : > { %p1605_p2 = scmp.lt.s32.totalorder %s1603_s14, %s1596_s12 }
  0x1c   : > { %p1599_p0 = pnand %p1597_p13, %p1843_p8 }
  0x1d   : > { %p1606_p3 = por %p1605_p2, %p1604_p4 }
  0x1e   : > { %p1600_p1 = pneg %p1599_p0 }
  0x20   : > { %p1607_p6 = pnand %p1606_p3, %p1600_p1 }
  0x22   : > { %1610 = shalt.err (!%p1607_p6)
}
  0x23   : > { %1509 = dma.hbm_to_vmem [thread:$0]  (!%p1825_p5), %s2096_s4, 16, %s292_s13, [#allocation5]  }
  0x24   : > { %p2110_p7 = scmp.ne.s32.totalorder %s2108_s19, 0  ;;  %s1611_s25 = scalar_lea.hbm %s2094_s2, 16 }
  0x25   : > { %p1612_p2 = scmp.ne.s32.totalorder %s2094_s2, %s1611_s25  ;;  %p1618_p9 = scmp.lt.u32.totalorder %s1611_s25, %s2094_s2 }
  0x26   : > { %s2116_s17 = smov (%p2110_p7, %s34_s17), 0 }
  0x27   : > { %p1614_p3 = pnand %p1612_p2, %p1843_p8 }
  0x29   : > { %p1615_p6 = pneg %p1614_p3 }
  0x2b   : > { %p1620_p10 = pnand %p1618_p9, %p1615_p6 }
  0x2d   : > { %1623 = shalt.err (!%p1620_p10)
}
  0x2e   : > { %s1624_s13 = scalar_lea.vmem %s1833_s21, 16  ;;  %s1631_s19 = scalar_lea.vmem %s1833_s21, 32 }
  0x2f   : > { %p1625_p11 = scmp.ne.s32.totalorder %s1833_s21, %s1624_s13  ;;  %p1632_p0 = scmp.lt.s32.totalorder %s1833_s21, %s1833_s21 }
  0x30   : > { %p1633_p1 = scmp.lt.s32.totalorder %s1631_s19, %s1624_s13 }
  0x31   : > { %p1627_p12 = pnand %p1625_p11, %p1843_p8 }
  0x32   : > { %p1634_p4 = por %p1633_p1, %p1632_p0 }
  0x33   : > { %p1628_p13 = pneg %p1627_p12 }
  0x35   : > { %p1635_p7 = pnand %p1634_p4, %p1628_p13 }
  0x37   : > { %1638 = shalt.err (!%p1635_p7)
}
  0x38   : > { %1506 = dma.hbm_to_vmem [thread:$0]  (!%p1825_p5), %s2094_s2, 16, %s1833_s21, [#allocation3]  }
  0x39   : > { %s1733_s22 = smov [#allocation6]   ;;  %s1734_s24 = smov [#allocation7]  }
  0x3a   : > { %s305_s23 = sshll.u32 %s1733_s22, 4  ;;  %s316_s25 = sshll.u32 %s1734_s24, 4  ;;  %s306_s23 = int_to_ptr.vmem [resolvable:$true] %s305_s23  ;;  %s317_s25 = int_to_ptr.vmem [resolvable:$true] %s316_s25 }
  0x3b   : > { %s1639_s29 = scalar_lea.hbm %s2098_s6, 16 }
  0x3c   : > { %p1640_p2 = scmp.ne.s32.totalorder %s2098_s6, %s1639_s29  ;;  %p1646_p9 = scmp.lt.u32.totalorder %s1639_s29, %s2098_s6 }
  0x3e   : > { %p1642_p3 = pnand %p1640_p2, %p1843_p8 }
  0x40   : > { %p1643_p6 = pneg %p1642_p3 }
  0x42   : > { %p1648_p10 = pnand %p1646_p9, %p1643_p6 }
  0x44   : > { %1651 = shalt.err (!%p1648_p10)
}
  0x45   : > { %s1652_s21 = scalar_lea.vmem %s306_s23, 16  ;;  %s1659_s20 = scalar_lea.vmem %s306_s23, 32 }
  0x46   : > { %p1653_p11 = scmp.ne.s32.totalorder %s306_s23, %s1652_s21  ;;  %p1660_p0 = scmp.lt.s32.totalorder %s306_s23, %s306_s23 }
  0x47   : > { %p1661_p1 = scmp.lt.s32.totalorder %s1659_s20, %s1652_s21 }
  0x48   : > { %p1655_p12 = pnand %p1653_p11, %p1843_p8 }
  0x49   : > { %p1662_p4 = por %p1661_p1, %p1660_p0 }
  0x4a   : > { %p1656_p13 = pneg %p1655_p12 }
  0x4c   : > { %p1663_p7 = pnand %p1662_p4, %p1656_p13 }
  0x4e   : > { %1666 = shalt.err (!%p1663_p7)
}
  0x4f   : > { %1512 = dma.hbm_to_vmem [thread:$0]  (!%p1825_p5), %s2098_s6, 16, %s306_s23, [#allocation5]  }
  0x50   : > { %s1667_s29 = scalar_lea.hbm %s2099_s7, 16 }
  0x51   : > { %p1668_p2 = scmp.ne.s32.totalorder %s2099_s7, %s1667_s29  ;;  %p1674_p9 = scmp.lt.u32.totalorder %s1667_s29, %s2099_s7 }
  0x53   : > { %p1670_p3 = pnand %p1668_p2, %p1843_p8 }
  0x55   : > { %p1671_p6 = pneg %p1670_p3 }
  0x57   : > { %p1676_p10 = pnand %p1674_p9, %p1671_p6 }
  0x59   : > { %1679 = shalt.err (!%p1676_p10)
}
  0x5a   : > { %s1680_s21 = scalar_lea.vmem %s317_s25, 16  ;;  %s1687_s23 = scalar_lea.vmem %s317_s25, 32 }
  0x5b   : > { %p1681_p11 = scmp.ne.s32.totalorder %s317_s25, %s1680_s21  ;;  %p1688_p0 = scmp.lt.s32.totalorder %s317_s25, %s317_s25 }
  0x5c   : > { %p1689_p1 = scmp.lt.s32.totalorder %s1687_s23, %s1680_s21 }
  0x5d   : > { %p1683_p12 = pnand %p1681_p11, %p1843_p8 }
  0x5e   : > { %p1690_p4 = por %p1689_p1, %p1688_p0 }
  0x5f   : > { %p1684_p13 = pneg %p1683_p12 }
  0x61   : > { %p1691_p7 = pnand %p1690_p4, %p1684_p13 }
  0x63   : > { %1694 = shalt.err (!%p1691_p7)
}
  0x64   : > { %1515 = dma.hbm_to_vmem [thread:$0]  (!%p1825_p5), %s2099_s7, 16, %s317_s25, [#allocation8]  }
  0x65   : > { %p2111_p2 = scmp.ne.s32.totalorder %s2106_s16, 0 }
  0x66   : > { %p2112_p3 = scmp.ne.s32.totalorder (!%p2111_p2), %s2105_s15, 0 }
  0x67   : > { %339 = sbr.rel (%p2111_p2) target bundleno = 3026 (0xbd2), region = 56 }
  0x6e   : > { %1708 = dma.done.wait (%p2112_p3), [#allocation3], 16  }
  0x6f   : > { %1710 = vsyncadd (%p2112_p3), [#allocation3], 4294967280 }
  0x70   : > { %1712 = dma.done.wait (%p2112_p3), [#allocation5], 32  }
  0x71   : > { %1714 = vsyncadd (%p2112_p3), [#allocation5], 4294967264 }
  0x72   : > { %1716 = dma.done.wait (%p2112_p3), [#allocation8], 16  }
  0x73   : > { %1718 = vsyncadd (%p2112_p3), [#allocation8], 4294967280  ;;  %p388_p5 = scmp.lt.s32.totalorder %s1721_s30, 1  ;;  %v1735_v0 = vmov 0.0   ;;  %vm1736_vm0 = vmmov 0   ;;  %v1561_v1 = vld [vmem:[%s2095_s3] sm:$0xff]  }
  0x74   : > { %1407 = vmatprep.subr.bf16.mxu1 %v1735_v0  ;;  %1399 = vmatprep.subr.bf16.mxu0 %v1735_v0  ;;  %v1562_v2 = vld [vmem:[%s2095_s3 + $0x8] sm:$0xff]   ;;  %v1563_v3 = vld [vmem:[%s2093_s1] sm:$0xff]   ;;  %vm424_vm1 = vcmask 261120   ;;  %vm533_vm2 = vcmask 64512   ;;  %s1737_s14 = smov 120   ;;  %s1738_s21 = smov 96  }
  0x75   : > { %1411 = vmatprep.mubr.msk.bf16.mxu1 %vm1736_vm0, %v1735_v0  ;;  %1403 = vmatprep.mubr.msk.bf16.mxu0 %vm1736_vm0, %v1735_v0  ;;  %s2118_s30 = smov (!%p388_p5, %s1721_s30), 1  ;;  %v1564_v4 = vld [vmem:[%s2093_s1 + $0x8] sm:$0xff]   ;;  %v1345_v6 = vld [vmem:[#allocation4] ss:$0 sm:$0xff]  ;;  %v1341_v8 = vld [vmem:[#allocation2] ss:$0 sm:$0xff] }
  0x76   : > { %s1339_s18 = sshll.u32 %s2118_s30, 2  ;;  %1408 = vmatpush3.bf16.msra.mxu1 %v1561_v1  ;;  %1400 = vmatpush3.bf16.msra.mxu0 %v1563_v3  ;;  %vm598_vm3 = vcmask 1043456   ;;  %s1739_s23 = smov 88   ;;  %v1353_v50 = vld [vmem:[%s2097_s5 + $0x4] sm:$0xf]  ;;  %vm1211_vm4 = vcmask 257024  }
  0x77   : > { %1409 = vmatprep.subr.bf16.mxu1 %v1735_v0  ;;  %s391_s12 = scalar_lea.vmem %s2092_s0, %s1339_s18  ;;  %1401 = vmatprep.subr.bf16.mxu0 %v1735_v0  ;;  %s1740_s20 = smov 112   ;;  %v762_v51 = vsel %vm598_vm3, %v1353_v50, 0  ;;  %v643_v56 = vld [vmem:[%s2097_s5] sm:$0xf] }
  0x78   : > { %v1967_v5 = vld [vmem:[%s391_s12] sm:$0xf]  ;;  %v808_v59 = vsel %vm598_vm3, %v643_v56, 0  ;;  %s1741_s25 = smov 80   ;;  %s1742_s24 = smov 104  }
  0x79   : > { %s1743_s29 = smov 72  }
  0x7a   : > { %1410 = vmatpush3.bf16.msra.mxu1 %v1562_v2  ;;  %1402 = vmatpush3.bf16.msra.mxu0 %v1564_v4 }
  0x7b   : > { %1421 = vmatprep.subr.bf16.mxu1 %v1735_v0  ;;  %1415 = vmatprep.subr.bf16.mxu0 %v1735_v0 }
  0x7d   : > { %1412 = vmatmul.mubr.msk.bf16.vlgmr.msra.gmra.mrb[0].mxu1 %vm424_vm1, %v1967_v5  ;;  %1404 = vmatmul.mubr.msk.bf16.vlgmr.msra.gmra.mrb[0].mxu0 %vm424_vm1, %v1967_v5 }
  0x7e   : > { %1423 = vmatprep.mubr.msk.bf16.mxu1 %vm1736_vm0, %v1735_v0  ;;  %1417 = vmatprep.mubr.msk.bf16.mxu0 %vm1736_vm0, %v1735_v0 }
 0x150   : > { %v525_v7 = vpop.f32.mrb[0].mxu1  ;;  %v462_v12 = vpop.f32.mrb[0].mxu0 }
 0x151   : > { %v526_v9 = vadd.f32 %v1345_v6, %v525_v7  ;;  %v1413_v10 = vpop.f32.mrb[1].mxu1  ;;  %v463_v15 = vadd.f32 %v1341_v8, %v462_v12  ;;  %v1405_v16 = vpop.f32.mrb[1].mxu0 }
 0x152   : > { %v528_v11 = vpop.f32.mrb[2].mxu1  ;;  %v465_v17 = vpop.f32.mrb[2].mxu0 }
 0x153   : > { %v1979_v13 = vpack.c.bf16 %v526_v9, %v526_v9  ;;  %v1414_v14 = vpop.f32.mrb[3].mxu1  ;;  %v1982_v18 = vpack.c.bf16 %v463_v15, %v463_v15  ;;  %v1406_v20 = vpop.f32.mrb[3].mxu0 }
 0x155   : > { %647 = vrot.lane.b32.xlu0 %v1979_v13, %s1737_s14  ;;  %v538_v19 = vsel %vm533_vm2, %v1979_v13, 0 }
 0x156   : > { %1416 = vmatpush3.bf16.xpose.msra.mxu0 %v538_v19 }
 0x157   : > { %1427 = vmatprep.subr.bf16.mxu0 %v1735_v0 }
 0x159   : > { %645 = vrot.lane.b32.xlu0 %v1982_v18, %s1737_s14 }
 0x15d   : > { %1418 = vmatmul.mubr.msk.bf16.vlgmr.msra.gmra.mrb[4].mxu0 %vm533_vm2, %v1982_v18 }
 0x15e   : > { %1429 = vmatprep.mubr.msk.bf16.mxu0 %vm1736_vm0, %v1735_v0 }
 0x1c7   : > { %v648_v21 = vpop.permute.xlu0 %647 }
 0x1c8   : > { %v653_v22 = vsel %vm533_vm2, %v648_v21, 0 }
 0x1c9   : > { %1428 = vmatpush3.bf16.xpose.msra.mxu0 %v653_v22 }
 0x1ca   : > { %1439 = vmatprep.subr.bf16.mxu0 %v1735_v0 }
 0x1cb   : > { %v646_v23 = vpop.permute.xlu0 %645 }
 0x1d0   : > { %1430 = vmatmul.mubr.msk.bf16.vlgmr.msra.gmra.mrb[8].mxu0 %vm533_vm2, %v646_v23 }
 0x1d1   : > { %1441 = vmatprep.mubr.msk.bf16.mxu0 %vm1736_vm0, %v1735_v0  ;;  %1440 = vmatpush3.bf16.msra.mxu0 %v762_v51 }
 0x1d2   : > { %1451 = vmatprep.subr.bf16.mxu0 %v1735_v0 }
 0x230   : > { %v574_v24 = vpop.f32.mrb[4].mxu0 }
 0x231   : > { %v1419_v25 = vpop.f32.mrb[5].mxu0  ;;  %v580_v26 = vsel %vm533_vm2, %v574_v24, -inf }
 0x232   : > { %581 = vmax.xlane.f32.xlu1 %v580_v26  ;;  %v577_v27 = vpop.f32.mrb[6].mxu0 }
 0x233   : > { %v1420_v28 = vpop.f32.mrb[7].mxu0 }
 0x2a3   : > { %v689_v29 = vpop.f32.mrb[8].mxu0 }
 0x2a4   : > { %v1431_v30 = vpop.f32.mrb[9].mxu0  ;;  %v695_v31 = vsel %vm533_vm2, %v689_v29, -inf }
 0x2a5   : > { %696 = vmax.xlane.f32.xlu1 %v695_v31  ;;  %v692_v32 = vpop.f32.mrb[10].mxu0 }
 0x2a6   : > { %v1432_v33 = vpop.f32.mrb[11].mxu0 }
 0x2b6   : > { %593 = vrot.lane.b32.xlu1 %v1979_v13, %s1738_s21 }
 0x2bf   : > { %v582_v34 = vpop.xlane.xlu1 %581 }
 0x2c0   : > { %v583_v35 = vsub.f32 %v574_v24, %v582_v34 }
 0x2c2   : > { %v584_v36 = vmul.f32 1.442695, %v583_v35 }
 0x2c4   : > { %1565 = vpow2.f32 %v584_v36 }
 0x2ce   : > { %v1566_v37 = vpop.eup %1565 }
 0x2cf   : > { %v586_v38 = vsel %vm533_vm2, %v1566_v37, 0.0 }
 0x2d0   : > { %587 = vadd.xlane.f32.xlu0 %v586_v38 }
 0x332   : > { %v697_v39 = vpop.xlane.xlu1 %696 }
 0x333   : > { %v698_v40 = vsub.f32 %v689_v29, %v697_v39 }
 0x335   : > { %v699_v41 = vmul.f32 1.442695, %v698_v40  ;;  %v1358_v40 = vld [vmem:[%s2097_s5 + $0x8] sm:$0xf] }
 0x336   : > { %v594_v42 = vpop.permute.xlu1 %593 }
 0x337   : > { %1567 = vpow2.f32 %v699_v41  ;;  %v600_v43 = vsel %vm598_vm3, %v594_v42, 0  ;;  %v967_v41 = vsel %vm598_vm3, %v1358_v40, 0 }
 0x338   : > { %1422 = vmatpush3.bf16.msra.mxu1 %v600_v43 }
 0x339   : > { %1433 = vmatprep.subr.bf16.mxu1 %v1735_v0 }
 0x341   : > { %v1568_v44 = vpop.eup %1567 }
 0x342   : > { %v701_v45 = vsel %vm533_vm2, %v1568_v44, 0.0 }
 0x343   : > { %702 = vadd.xlane.f32.xlu1 %v701_v45 }
 0x354   : > { %707 = vrot.lane.b32.xlu1 %v1979_v13, %s1739_s23 }
 0x358   : > { %852 = vrot.lane.b32.xlu1 %v1979_v13, %s1740_s20 }
 0x35c   : > { %850 = vrot.lane.b32.xlu1 %v1982_v18, %s1740_s20  ;;  %s398_s20 = scalar_lea.vmem %s2101_s9, %s1339_s18 }
 0x35d   : > { %v588_v46 = vpop.xlane.xlu0 %587 }
 0x35e   : > { %1569 = vrcp.f32 %v588_v46 }
 0x368   : > { %v1570_v47 = vpop.eup %1569 }
 0x369   : > { %v590_v48 = vmul.f32 %v1570_v47, %v1566_v37 }
 0x36b   : > { %v591_v49 = vpack.c.bf16 %v590_v48, %v590_v48 }
 0x36d   : > { %1424 = vmatmul.mubr.msk.bf16.vlgmr.msra.gmra.mrb[4].mxu1 %vm533_vm2, %v591_v49 }
 0x36e   : > { %1435 = vmatprep.mubr.msk.bf16.mxu1 %vm1736_vm0, %v1735_v0 }
 0x3d0   : > { %v703_v52 = vpop.xlane.xlu1 %702 }
 0x3d1   : > { %1571 = vrcp.f32 %v703_v52 }
 0x3d4   : > { %v708_v53 = vpop.permute.xlu1 %707 }
 0x3d5   : > { %v713_v54 = vsel %vm598_vm3, %v708_v53, 0 }
 0x3d6   : > { %1434 = vmatpush3.bf16.msra.mxu1 %v713_v54 }
 0x3d7   : > { %1445 = vmatprep.subr.bf16.mxu1 %v1735_v0 }
 0x3d8   : > { %v853_v2 = vpop.permute.xlu1 %852 }
 0x3d9   : > { %v858_v8 = vsel %vm533_vm2, %v853_v2, 0 }
 0x3db   : > { %v1572_v55 = vpop.eup %1571 }
 0x3dc   : > { %v705_v57 = vmul.f32 %v1572_v55, %v1568_v44  ;;  %v851_v10 = vpop.permute.xlu1 %850 }
 0x3de   : > { %v706_v58 = vpack.c.bf16 %v705_v57, %v705_v57 }
 0x3e0   : > { %1436 = vmatmul.mubr.msk.bf16.vlgmr.msra.gmra.mrb[8].mxu1 %vm533_vm2, %v706_v58 }
 0x3e1   : > { %1446 = vmatpush3.bf16.msra.mxu1 %v808_v59  ;;  %1447 = vmatprep.mubr.msk.bf16.mxu1 %vm1736_vm0, %v1735_v0 }
 0x3e2   : > { %1457 = vmatprep.subr.bf16.mxu1 %v1735_v0 }
 0x440   : > { %v636_v60 = vpop.f32.mrb[4].mxu1 }
 0x441   : > { %v642_v61 = vpack.c.bf16 %v636_v60, %v636_v60  ;;  %v1425_v62 = vpop.f32.mrb[5].mxu1 }
 0x442   : > { %v639_v63 = vpop.f32.mrb[6].mxu1 }
 0x443   : > { %v1426_v1 = vpop.f32.mrb[7].mxu1  ;;  %1448 = vmatmul.mubr.msk.bf16.vlgmr.msra.gmra.mrb[12].mxu1 %vm533_vm2, %v642_v61 }
 0x444   : > { %1459 = vmatprep.mubr.msk.bf16.mxu1 %vm1736_vm0, %v1735_v0 }
 0x4b3   : > { %v749_v3 = vpop.f32.mrb[8].mxu1 }
 0x4b4   : > { %v755_v4 = vpack.c.bf16 %v749_v3, %v749_v3  ;;  %v1437_v6 = vpop.f32.mrb[9].mxu1 }
 0x4b5   : > { %v752_v7 = vpop.f32.mrb[10].mxu1 }
 0x4b6   : > { %v1438_v9 = vpop.f32.mrb[11].mxu1  ;;  %1442 = vmatmul.mubr.msk.bf16.vlgmr.msra.gmra.mrb[12].mxu0 %vm533_vm2, %v755_v4 }
 0x4b7   : > { %1452 = vmatpush3.bf16.xpose.msra.mxu0 %v858_v8  ;;  %1453 = vmatprep.mubr.msk.bf16.mxu0 %vm1736_vm0, %v1735_v0 }
 0x4b8   : > { %1463 = vmatprep.subr.bf16.mxu0 %v1735_v0 }
 0x4be   : > { %1454 = vmatmul.mubr.msk.bf16.vlgmr.msra.gmra.mrb[16].mxu0 %vm533_vm2, %v851_v10 }
 0x4bf   : > { %1465 = vmatprep.mubr.msk.bf16.mxu0 %vm1736_vm0, %v1735_v0  ;;  %1464 = vmatpush3.bf16.msra.mxu0 %v967_v41 }
 0x4c0   : > { %1475 = vmatprep.subr.bf16.mxu0 %v1735_v0 }
 0x516   : > { %v844_v11 = vpop.f32.mrb[12].mxu1 }
 0x517   : > { %v1449_v12 = vpop.f32.mrb[13].mxu1 }
 0x518   : > { %v847_v14 = vpop.f32.mrb[14].mxu1  ;;  %v1364_v12 = vld [vmem:[#allocation6] ss:$0 sm:$0xff] }
 0x519   : > { %v1450_v15 = vpop.f32.mrb[15].mxu1 }
 0x589   : > { %v798_v16 = vpop.f32.mrb[12].mxu0 }
 0x58a   : > { %v2036_v17 = vadd.f32 %v844_v11, %v798_v16  ;;  %v1443_v19 = vpop.f32.mrb[13].mxu0  ;;  %v1178_v16 = vunpack.c.l.bf16 %v1967_v5 }
 0x58b   : > { %v801_v20 = vpop.f32.mrb[14].mxu0 }
 0x58c   : > { %v1444_v21 = vpop.f32.mrb[15].mxu0 }
 0x591   : > { %v894_v22 = vpop.f32.mrb[16].mxu0 }
 0x592   : > { %v1455_v23 = vpop.f32.mrb[17].mxu0  ;;  %v900_v24 = vsel %vm533_vm2, %v894_v22, -inf }
 0x593   : > { %901 = vmax.xlane.f32.xlu0 %v900_v24  ;;  %v897_v25 = vpop.f32.mrb[18].mxu0 }
 0x594   : > { %v1456_v26 = vpop.f32.mrb[19].mxu0 }
 0x5a9   : > { %912 = vrot.lane.b32.xlu0 %v1979_v13, %s1741_s25 }
 0x5ad   : > { %1012 = vrot.lane.b32.xlu0 %v1979_v13, %s1742_s24 }
 0x5b1   : > { %1010 = vrot.lane.b32.xlu0 %v1982_v18, %s1742_s24 }
 0x620   : > { %v902_v27 = vpop.xlane.xlu0 %901 }
 0x621   : > { %v903_v28 = vsub.f32 %v894_v22, %v902_v27 }
 0x623   : > { %v904_v29 = vmul.f32 1.442695, %v903_v28 }
 0x624   : > { %v913_v30 = vpop.permute.xlu0 %912 }
 0x625   : > { %1573 = vpow2.f32 %v904_v29  ;;  %v918_v31 = vsel %vm598_vm3, %v913_v30, 0 }
 0x626   : > { %1458 = vmatpush3.bf16.msra.mxu1 %v918_v31  ;;  %v1365_v31 = vld [vmem:[#allocation7] ss:$0 sm:$0xff] }
 0x627   : > { %1469 = vmatprep.subr.bf16.mxu1 %v1735_v0 }
 0x628   : > { %v1013_v37 = vpop.permute.xlu0 %1012 }
 0x629   : > { %v1018_v38 = vsel %vm533_vm2, %v1013_v37, 0 }
 0x62c   : > { %v1011_v39 = vpop.permute.xlu0 %1010 }
 0x62f   : > { %v1574_v32 = vpop.eup %1573 }
 0x630   : > { %v906_v33 = vsel %vm533_vm2, %v1574_v32, 0.0 }
 0x631   : > { %907 = vadd.xlane.f32.xlu1 %v906_v33  ;;  %v1366_v33 = vld [vmem:[%s2100_s8] ss:$0 sm:$0xff] }
 0x6be   : > { %v908_v34 = vpop.xlane.xlu1 %907 }
 0x6bf   : > { %1575 = vrcp.f32 %v908_v34 }
 0x6c9   : > { %v1576_v35 = vpop.eup %1575 }
 0x6ca   : > { %v910_v36 = vmul.f32 %v1576_v35, %v1574_v32 }
 0x6cc   : > { %v911_v18 = vpack.c.bf16 %v910_v36, %v910_v36 }
 0x6ce   : > { %1460 = vmatmul.mubr.msk.bf16.vlgmr.msra.gmra.mrb[16].mxu1 %vm533_vm2, %v911_v18 }
 0x6cf   : > { %1470 = vmatpush3.bf16.xpose.msra.mxu1 %v1018_v38  ;;  %1471 = vmatprep.mubr.msk.bf16.mxu1 %vm1736_vm0, %v1735_v0 }
 0x6d0   : > { %1481 = vmatprep.subr.bf16.mxu1 %v1735_v0 }
 0x6d6   : > { %1472 = vmatmul.mubr.msk.bf16.vlgmr.msra.gmra.mrb[20].mxu1 %vm533_vm2, %v1011_v39 }
 0x6d7   : > { %1483 = vmatprep.mubr.msk.bf16.mxu1 %vm1736_vm0, %v1735_v0 }
 0x7a1   : > { %v954_v42 = vpop.f32.mrb[16].mxu1 }
 0x7a2   : > { %v960_v43 = vpack.c.bf16 %v954_v42, %v954_v42  ;;  %v1461_v44 = vpop.f32.mrb[17].mxu1 }
 0x7a3   : > { %v957_v45 = vpop.f32.mrb[18].mxu1 }
 0x7a4   : > { %v1462_v46 = vpop.f32.mrb[19].mxu1  ;;  %1466 = vmatmul.mubr.msk.bf16.vlgmr.msra.gmra.mrb[20].mxu0 %vm533_vm2, %v960_v43 }
 0x7a5   : > { %1477 = vmatprep.mubr.msk.bf16.mxu0 %vm1736_vm0, %v1735_v0  ;;  %v1362_v0 = vld [vmem:[%s2097_s5 + $0xc] sm:$0xf] }
 0x7a6   : > { %v1127_v57 = vsel %vm598_vm3, %v1362_v0, 0 }
 0x7a7   : > { %1482 = vmatpush3.bf16.msra.mxu1 %v1127_v57 }
 0x7a9   : > { %v1054_v47 = vpop.f32.mrb[20].mxu1 }
 0x7aa   : > { %v1473_v48 = vpop.f32.mrb[21].mxu1  ;;  %v1060_v49 = vsel %vm533_vm2, %v1054_v47, -inf }
 0x7ab   : > { %1061 = vmax.xlane.f32.xlu0 %v1060_v49  ;;  %v1057_v50 = vpop.f32.mrb[22].mxu1 }
 0x7ac   : > { %v1474_v51 = vpop.f32.mrb[23].mxu1 }
 0x838   : > { %v1062_v52 = vpop.xlane.xlu0 %1061 }
 0x839   : > { %v1063_v53 = vsub.f32 %v1054_v47, %v1062_v52 }
 0x83b   : > { %v1064_v54 = vmul.f32 1.442695, %v1063_v53 }
 0x83d   : > { %1577 = vpow2.f32 %v1064_v54 }
 0x847   : > { %v1578_v55 = vpop.eup %1577 }
 0x848   : > { %v1066_v56 = vsel %vm533_vm2, %v1578_v55, 0.0 }
 0x849   : > { %1067 = vadd.xlane.f32.xlu1 %v1066_v56 }
 0x85a   : > { %1072 = vrot.lane.b32.xlu1 %v1979_v13, %s1743_s29 }
 0x877   : > { %v1003_v58 = vpop.f32.mrb[20].mxu0 }
 0x878   : > { %v1009_v59 = vadd.f32 %v1003_v58, %v2036_v17  ;;  %v1467_v60 = vpop.f32.mrb[21].mxu0 }
 0x879   : > { %v1006_v61 = vpop.f32.mrb[22].mxu0 }
 0x87a   : > { %v1468_v62 = vpop.f32.mrb[23].mxu0 }
 0x8d6   : > { %v1068_v63 = vpop.xlane.xlu1 %1067 }
 0x8d7   : > { %1579 = vrcp.f32 %v1068_v63 }
 0x8da   : > { %v1073_v1 = vpop.permute.xlu1 %1072 }
 0x8db   : > { %v1078_v2 = vsel %vm598_vm3, %v1073_v1, 0 }
 0x8dc   : > { %1476 = vmatpush3.bf16.msra.mxu0 %v1078_v2 }
 0x8e1   : > { %v1580_v13 = vpop.eup %1579 }
 0x8e2   : > { %v1070_v3 = vmul.f32 %v1580_v13, %v1578_v55 }
 0x8e4   : > { %v1071_v4 = vpack.c.bf16 %v1070_v3, %v1070_v3 }
 0x8e6   : > { %1478 = vmatmul.mubr.msk.bf16.vlgmr.msra.gmra.mrb[24].mxu0 %vm533_vm2, %v1071_v4 }
 0x9b9   : > { %v1114_v6 = vpop.f32.mrb[24].mxu0 }
 0x9ba   : > { %v1120_v7 = vpack.c.bf16 %v1114_v6, %v1114_v6  ;;  %v1479_v8 = vpop.f32.mrb[25].mxu0 }
 0x9bb   : > { %v1117_v9 = vpop.f32.mrb[26].mxu0 }
 0x9bc   : > { %v1480_v10 = vpop.f32.mrb[27].mxu0  ;;  %1484 = vmatmul.mubr.msk.bf16.vlgmr.msra.gmra.mrb[24].mxu1 %vm533_vm2, %v1120_v7 }
 0xa8f   : > { %v1163_v11 = vpop.f32.mrb[24].mxu1 }
 0xa90   : > { %v1169_v14 = vadd.f32 %v1163_v11, %v1009_v59  ;;  %v1485_v15 = vpop.f32.mrb[25].mxu1 }
 0xa91   : > { %v1166_v17 = vpop.f32.mrb[26].mxu1 }
 0xa92   : > { %v1177_v19 = vadd.f32 %v1364_v12, %v1169_v14  ;;  %v1486_v20 = vpop.f32.mrb[27].mxu1 }
 0xa94   : > { %v1179_v21 = vadd.f32 %v1178_v16, %v1177_v19 }
 0xa96   : > { %v1182_v22 = vsel %vm424_vm1, %v1179_v21, 0.0 }
 0xa97   : > { %1183 = vadd.xlane.f32.xlu1 %v1182_v22 }
 0xb24   : > { %v1184_v23 = vpop.xlane.xlu1 %1183 }
 0xb25   : > { %v1186_v24 = vmul.f32 0.03125, %v1184_v23 }
 0xb27   : > { %v1187_v25 = vsub.f32 %v1179_v21, %v1186_v24 }
 0xb29   : > { %v1188_v26 = vmul.f32 %v1187_v25, %v1187_v25 }
 0xb2b   : > { %v1189_v27 = vsel %vm424_vm1, %v1188_v26, 0.0 }
 0xb2c   : > { %1190 = vadd.xlane.f32.xlu0 %v1189_v27 }
 0xbb9   : > { %v1191_v28 = vpop.xlane.xlu0 %1190 }
 0xbba   : > { %v1192_v29 = vmul.f32 0.03125, %v1191_v28 }
 0xbbc   : > { %v1193_v30 = vadd.f32 1e-05, %v1192_v29 }
 0xbbe   : > { %1581 = vrsqrt.f32 %v1193_v30 }
 0xbc8   : > { %v1582_v5 = vpop.eup %1581 }
 0xbc9   : > { %v1195_v32 = vmul.f32 %v1582_v5, %v1187_v25 }
 0xbcb   : > { %v1202_v34 = vmul.f32 %v1365_v31, %v1195_v32 }
 0xbcd   : > { %v1209_v35 = vadd.f32 %v1366_v33, %v1202_v34 }
 0xbcf   : > { %v1210_v36 = vpack.c.bf16 %v1209_v35, %v1209_v35 }
 0xbd1   : > { %1212 = vst.msk [vmem:[%s398_s20] sm:$0xf] %vm1211_vm4, %v1210_v36 }
 0xbd2 PF: > { %s22_s11 = sadd.s32 1, %s1729_s11   ;;  %s2113_s30 = smov %s1725_s10 }
 0xbd3   : > { %p19_p8 = scmp.ge.s32.totalorder %s22_s11, 4   ;;  %s2114_s10 = smov %s2116_s17 }
 0xbd5   :  { %21 = sbr.rel (!%p19_p8) target bundleno = 4 (0x4), region = 106 }
 0xbdc   :  { %1238 = vsyncpa [#allocation3], 1 }
 0xbdd   :  { %1240 = vsyncpa [#allocation3 + $0x1], 1 }
 0xbde   :  { %1241 = vsyncpa [#allocation5], 1 }
 0xbdf   :  { %1242 = vsyncpa [#allocation8], 1 }

// kernel: transformer_model_forward.14
= control target key start
LH: loop header
LB: loop body
LE: loop exit
PB: predicated region body
PF: predicated region fallthrough
CT: control target
= control target key end

     0   :  { %s2013_s24 = smov 0   ;;  %s2015_s25 = smov 0   ;;  %s2230_s0 = inlined_call_operand.vmem [shape: bf16[16,32], index: 0, kind: input, shape index: {}]   ;;  %s2231_s1 = inlined_call_operand.vmem [shape: bf16[32,2048], index: 1, kind: input, shape index: {}]   ;;  %s2232_s2 = inlined_call_operand.vmem [shape: f32[1,2048], index: 2, kind: input, shape index: {}]   ;;  %s2233_s3 = inlined_call_operand.vmem [shape: bf16[2048,32], index: 3, kind: input, shape index: {}]   ;;  %s2234_s4 = inlined_call_operand.vmem [shape: f32[1,32], index: 4, kind: input, shape index: {}]   ;;  %s2235_s5 = inlined_call_operand.vmem [shape: f32[1,32], index: 5, kind: input, shape index: {}]   ;;  %s2236_s6 = inlined_call_operand.vmem [shape: f32[1,32], index: 6, kind: input, shape index: {}]   ;;  %s2237_s7 = inlined_call_operand.vmem [shape: bf16[16,32], index: 7, kind: output, shape index: {}]  }
   0x1   :  { %s2017_s26 = smov 0   ;;  %s2019_s27 = smov 0  }
   0x2   :  { %s2021_s28 = smov 0  }
   0x3 LB: > { %s26_s29 = sadd.s32 1, %s1965_s27  ;;  %p69_p1 = scmp.ne.s32.totalorder %s1957_s25, %s1953_s24  ;;  %s1969_s28 = sphi %s2021_s28, %s17_s28   ;;  %s1965_s27 = sphi %s2019_s27, %s2241_s27   ;;  %s1961_s26 = sphi %s2017_s26, %s2240_s26   ;;  %s1957_s25 = sphi %s2015_s25, %s2239_s25   ;;  %s1953_s24 = sphi %s2013_s24, %s2238_s24  }
   0x4   : > { %p27_p0 = scmp.ge.s32.totalorder %s26_s29, 2  ;;  %p70_p2 = scmp.eq.s32.totalorder %s1969_s28, 0 }
   0x5   : > { %s62_s8 = sadd.s32 1, %s1957_s25  ;;  %p1623_p5 = scmp.ge.s32.totalorder %s1969_s28, 2 }
   0x6   : > { %s2243_s29 = smov (%p27_p0, %s26_s29), 0  ;;  %p71_p3 = por %p70_p2, %p69_p1 }
   0x7   : > { %s59_s30 = ssub.s32 %s1965_s27, %s2243_s29  ;;  %254 = sbr.rel (%p1623_p5) target bundleno = 26 (0x1a), region = 32 }
   0x8   : > { %p60_p4 = scmp.eq.s32.totalorder %s59_s30, 0 }
   0xa   : > { %s2048_s9 = scalar_select %p60_p4, %s1957_s25, %s62_s8  }
   0xe   : > { %257 = sbr.rel (!%p71_p3) target bundleno = 26 (0x1a), region = 36  ;;  %s259_s10 = sand.u32 (%p71_p3), 1, %s1957_s25  }
   0xf   : > { %s1728_s11 = sshll.u32 (%p71_p3), %s1965_s27, 5  ;;  %s1624_s12 = sshll.u32 (%p71_p3), %s259_s10, 7 }
  0x10   : > { %s2056_s15 = scalar_lea.vmem (%p71_p3), %s2231_s1, %s1728_s11  ;;  %s261_s16 = scalar_lea.vmem (%p71_p3), [#allocation3], %s1624_s12 }
  0x11   : > { %v277_v0 = vld [vmem:[%s2056_s15] sm:$0xff] (%p71_p3)  ;;  %v279_v1 = vld [vmem:[%s2056_s15 + $0x8] sm:$0xff] (%p71_p3)  ;;  %v281_v2 = vld [vmem:[%s2056_s15 + $0x10] sm:$0xff] (%p71_p3) }
  0x12   : > { %278 = vst [vmem:[%s261_s16] sm:$0xff] (%p71_p3), %v277_v0  ;;  %280 = vst [vmem:[%s261_s16 + $0x8] sm:$0xff] (%p71_p3), %v279_v1  ;;  %v283_v3 = vld [vmem:[%s2056_s15 + $0x18] sm:$0xff] (%p71_p3)  ;;  %v285_v4 = vld [vmem:[%s2056_s15 + $0x40] sm:$0xff] (%p71_p3) }
  0x13   : > { %282 = vst [vmem:[%s261_s16 + $0x10] sm:$0xff] (%p71_p3), %v281_v2  ;;  %v287_v5 = vld [vmem:[%s2056_s15 + $0x48] sm:$0xff] (%p71_p3)  ;;  %284 = vst [vmem:[%s261_s16 + $0x18] sm:$0xff] (%p71_p3), %v283_v3  ;;  %v289_v6 = vld [vmem:[%s2056_s15 + $0x50] sm:$0xff] (%p71_p3) }
  0x14   : > { %286 = vst [vmem:[%s261_s16 + $0x20] sm:$0xff] (%p71_p3), %v285_v4  ;;  %288 = vst [vmem:[%s261_s16 + $0x28] sm:$0xff] (%p71_p3), %v287_v5  ;;  %v291_v7 = vld [vmem:[%s2056_s15 + $0x58] sm:$0xff] (%p71_p3)  ;;  %v293_v8 = vld [vmem:[%s2056_s15 + $0x80] sm:$0xff] (%p71_p3) }
  0x15   : > { %290 = vst [vmem:[%s261_s16 + $0x30] sm:$0xff] %v289_v6  ;;  %292 = vst [vmem:[%s261_s16 + $0x38] sm:$0xff] %v291_v7  ;;  %v295_v9 = vld [vmem:[%s2056_s15 + $0x88] sm:$0xff]  ;;  %v297_v10 = vld [vmem:[%s2056_s15 + $0x90] sm:$0xff] }
  0x16   : > { %294 = vst [vmem:[%s261_s16 + $0x40] sm:$0xff] %v293_v8  ;;  %v299_v11 = vld [vmem:[%s2056_s15 + $0x98] sm:$0xff]  ;;  %296 = vst [vmem:[%s261_s16 + $0x48] sm:$0xff] %v295_v9  ;;  %v301_v12 = vld [vmem:[%s2056_s15 + $0xc0] sm:$0xff] }
  0x17   : > { %298 = vst [vmem:[%s261_s16 + $0x50] sm:$0xff] %v297_v10  ;;  %300 = vst [vmem:[%s261_s16 + $0x58] sm:$0xff] %v299_v11  ;;  %v303_v13 = vld [vmem:[%s2056_s15 + $0xc8] sm:$0xff]  ;;  %v305_v14 = vld [vmem:[%s2056_s15 + $0xd0] sm:$0xff] }
  0x18   : > { %302 = vst [vmem:[%s261_s16 + $0x60] sm:$0xff] %v301_v12  ;;  %304 = vst [vmem:[%s261_s16 + $0x68] sm:$0xff] %v303_v13  ;;  %v307_v15 = vld [vmem:[%s2056_s15 + $0xd8] sm:$0xff] }
  0x19   : > { %306 = vst [vmem:[%s261_s16 + $0x70] sm:$0xff] %v305_v14  ;;  %308 = vst [vmem:[%s261_s16 + $0x78] sm:$0xff] %v307_v15 }
  0x1a PF: > { %p1627_p6 = scmp.ge.s32.totalorder %s1969_s28, 1  ;;  %p330_p7 = scmp.lt.s32.totalorder %s1969_s28, 3 }
  0x1c   : > { %p331_p8 = pnand %p1627_p6, %p330_p7 }
  0x1d   : > { %s337_s17 = sand.u32 (!%p331_p8), 1, %s1953_s24   ;;  %s1629_s18 = sshll.u32 (!%p331_p8), %s1961_s26, 3 }
  0x1e   : > { %334 = sbr.rel (%p331_p8) target bundleno = 865 (0x361), region = 67  ;;  %s1628_s19 = sshll.u32 (!%p331_p8), %s337_s17, 7 }
  0x1f   : > { %p390_p9 = scmp.lt.s32.totalorder (!%p331_p8), %s1629_s18, 15  ;;  %s1630_s20 = sshll.u32 (!%p331_p8), %s1961_s26, 7 }
  0x20   : > { %p395_p10 = scmp.lt.s32.totalorder (!%p331_p8), %s1630_s20, 255  ;;  %s2090_s24 = scalar_lea.vmem (!%p331_p8), [#allocation3], %s1628_s19 }
  0x21   : > { %p1632_p11 = scmp.ne.s32.totalorder (!%p331_p8), %s1961_s26, 0 }
  0x25   : > { %s2245_s18 = smov (!%p390_p9, %s1629_s18), 15  ;;  %s2247_s20 = smov (!%p395_p10, %s1630_s20), 255 }
  0x26   : > { %s392_s23 = scalar_lea.vmem %s2232_s2, %s2245_s18  ;;  %s1631_s30 = sshll.u32 %s2247_s20, 2  ;;  %vm411_vm0 = vcmask (!%p1632_p11), 261120   ;;  %v1971_v16 = vmov (!%p1632_p11), 0.0  }
  0x27   : > { %s2088_s11 = scalar_lea.vmem %s2233_s3, %s1631_s30  ;;  %410 = sbr.rel (%p1632_p11) target bundleno = 46 (0x2e), region = 75  ;;  %412 = vst.msk [vmem:[#allocation2] sm:$0xff] (!%p1632_p11), %vm411_vm0, %v1971_v16  ;;  %413 = vst.msk [vmem:[#allocation2 + $0x8] sm:$0xff] (!%p1632_p11), %vm411_vm0, %v1971_v16 }
  0x2e PF: > { %v416_v17 = vld [vmem:[%s2090_s24] sm:$0xff]  ;;  %v417_v19 = vld [vmem:[%s2090_s24 + $0x8] sm:$0xff]  ;;  %v1972_v25 = vmov 0   ;;  %v418_v32 = vld [vmem:[%s2090_s24 + $0x10] sm:$0xff]  ;;  %vm559_vm1 = vcmask 261120   ;;  %p1718_p12 = scmp.ne.s32.totalorder %s1961_s26, 1 }
  0x2f   : > { %v420_v18 = vld [vmem:[%s2090_s24 + $0x20] sm:$0xff]  ;;  %v421_v21 = vld [vmem:[%s2090_s24 + $0x28] sm:$0xff]  ;;  %595 = vmatprep.mubr.bf16.mxu0 %v1972_v25  ;;  %638 = vmatprep.mubr.bf16.mxu1 %v1972_v25  ;;  %v422_v33 = vld [vmem:[%s2090_s24 + $0x30] sm:$0xff]  ;;  %vm1513_vm2 = vcmask (!%p1718_p12), 257024  }
  0x30   : > { %v1635_v20 = vcombine.high %v416_v17, %v420_v18  ;;  %v1634_v22 = vcombine.low %v416_v17, %v420_v18  ;;  %v424_v23 = vld [vmem:[%s2090_s24 + $0x40] sm:$0xff]  ;;  %v1637_v26 = vcombine.high %v417_v19, %v421_v21  ;;  %v1636_v27 = vcombine.low %v417_v19, %v421_v21  ;;  %v425_v29 = vld [vmem:[%s2090_s24 + $0x48] sm:$0xff]  ;;  %v419_v34 = vld [vmem:[%s2090_s24 + $0x18] sm:$0xff] }
  0x31   : > { %v428_v24 = vld [vmem:[%s2090_s24 + $0x60] sm:$0xff]  ;;  %v429_v30 = vld [vmem:[%s2090_s24 + $0x68] sm:$0xff]  ;;  %v2107_v36 = vld [vmem:[%s2230_s0] sm:$0xff]   ;;  %v1639_v39 = vcombine.high %v418_v32, %v422_v33  ;;  %v1638_v45 = vcombine.low %v418_v32, %v422_v33  ;;  %v434_v21 = vlaneseq }
  0x32   : > { %v1643_v28 = vcombine.high %v424_v23, %v428_v24  ;;  %563 = vmatprep.subr.bf16.mxu0 %v1635_v20  ;;  %v1645_v31 = vcombine.high %v425_v29, %v429_v30  ;;  %606 = vmatprep.subr.bf16.mxu1 %v1637_v26  ;;  %v1642_v35 = vcombine.low %v424_v23, %v428_v24  ;;  %v423_v37 = vld [vmem:[%s2090_s24 + $0x38] sm:$0xff]  ;;  %v426_v40 = vld [vmem:[%s2090_s24 + $0x50] sm:$0xff]  ;;  %v1870_v59 = vld [vmem:[%s2088_s11 + $0x50] sm:$0xff]  }
  0x33   : > { %564 = vmatpush1.bf16.msra.mxu0 %v1634_v22  ;;  %607 = vmatpush1.bf16.msra.mxu1 %v1636_v27  ;;  %v1644_v38 = vcombine.low %v425_v29, %v429_v30  ;;  %v430_v41 = vld [vmem:[%s2090_s24 + $0x70] sm:$0xff]  ;;  %v1641_v42 = vcombine.high %v419_v34, %v423_v37  ;;  %v427_v43 = vld [vmem:[%s2090_s24 + $0x58] sm:$0xff]  ;;  %v1640_v46 = vcombine.low %v419_v34, %v423_v37  ;;  %v1871_v60 = vld [vmem:[%s2088_s11 + $0xd0] sm:$0xff]   ;;  %v435_v22 = vshrl.u32 %v434_v21, 7 }
  0x34   : > { %565 = vmatprep.subr.bf16.mxu0 %v1643_v28  ;;  %608 = vmatprep.subr.bf16.mxu1 %v1645_v31  ;;  %v431_v44 = vld [vmem:[%s2090_s24 + $0x78] sm:$0xff]  ;;  %v1647_v47 = vcombine.high %v426_v40, %v430_v41  ;;  %v1646_v49 = vcombine.low %v426_v40, %v430_v41  ;;  %v1862_v51 = vld [vmem:[%s2088_s11 + $0x40] sm:$0xff]   ;;  %v1872_v61 = vld [vmem:[%s2088_s11 + $0x10] sm:$0xff]  }
  0x35   : > { %v1649_v48 = vcombine.high %v427_v43, %v431_v44  ;;  %v1648_v50 = vcombine.low %v427_v43, %v431_v44  ;;  %v1863_v52 = vld [vmem:[%s2088_s11 + $0xc0] sm:$0xff]   ;;  %v1866_v55 = vld [vmem:[%s2088_s11 + $0x48] sm:$0xff]   ;;  %v1873_v62 = vld [vmem:[%s2088_s11 + $0x90] sm:$0xff]   ;;  %v436_v23 = vsub.s32 0, %v435_v22  ;;  %v440_v26 = vsub.s32 1, %v435_v22 }
  0x36   : > { %v1864_v53 = vld [vmem:[%s2088_s11] sm:$0xff]   ;;  %v1867_v56 = vld [vmem:[%s2088_s11 + $0xc8] sm:$0xff]   ;;  %v1874_v63 = vld [vmem:[%s2088_s11 + $0x58] sm:$0xff]   ;;  %v448_v27 = vsub.s32 3, %v435_v22  ;;  %v452_v32 = vsub.s32 4, %v435_v22  ;;  %v456_v34 = vsub.s32 5, %v435_v22 }
  0x37   : > { %566 = vmatpush1.bf16.msra.mxu0 %v1642_v35  ;;  %609 = vmatpush1.bf16.msra.mxu1 %v1644_v38  ;;  %v1865_v54 = vld [vmem:[%s2088_s11 + $0x80] sm:$0xff]   ;;  %v1868_v57 = vld [vmem:[%s2088_s11 + $0x8] sm:$0xff]   ;;  %v1875_v0 = vld [vmem:[%s2088_s11 + $0xd8] sm:$0xff]   ;;  %v460_v43 = vsub.s32 6, %v435_v22 }
  0x38   : > { %649 = vmatprep.subr.bf16.mxu0 %v1639_v39  ;;  %692 = vmatprep.subr.bf16.mxu1 %v1641_v42  ;;  %v1869_v58 = vld [vmem:[%s2088_s11 + $0x88] sm:$0xff]   ;;  %v1876_v1 = vld [vmem:[%s2088_s11 + $0x18] sm:$0xff]   ;;  %v1878_v3 = vld [vmem:[%s2088_s11 + $0x60] sm:$0xff]  }
  0x39   : > { %v1877_v2 = vld [vmem:[%s2088_s11 + $0x98] sm:$0xff]   ;;  %v1879_v4 = vld [vmem:[%s2088_s11 + $0xe0] sm:$0xff]   ;;  %v1882_v7 = vld [vmem:[%s2088_s11 + $0x68] sm:$0xff]  }
  0x3a   : > { %1650 = vmatmul.mubr.msk.bf16.vlgmr.msra.gmra.mrb[0].mxu0 %vm559_vm1, %v2107_v36  ;;  %1651 = vmatmul.mubr.msk.bf16.vlgmr.msra.gmra.mrb[0].mxu1 %vm559_vm1, %v2107_v36  ;;  %v1880_v5 = vld [vmem:[%s2088_s11 + $0x20] sm:$0xff]   ;;  %v1883_v8 = vld [vmem:[%s2088_s11 + $0xe8] sm:$0xff]   ;;  %v1886_v11 = vld [vmem:[%s2088_s11 + $0x70] sm:$0xff]  }
  0x3b   : > { %650 = vmatpush1.bf16.msra.mxu0 %v1638_v45  ;;  %693 = vmatpush1.bf16.msra.mxu1 %v1640_v46  ;;  %v1881_v6 = vld [vmem:[%s2088_s11 + $0xa0] sm:$0xff]   ;;  %v1884_v9 = vld [vmem:[%s2088_s11 + $0x28] sm:$0xff]   ;;  %v1887_v12 = vld [vmem:[%s2088_s11 + $0xf0] sm:$0xff]  }
  0x3c   : > { %651 = vmatprep.subr.bf16.mxu0 %v1647_v47  ;;  %694 = vmatprep.subr.bf16.mxu1 %v1649_v48  ;;  %v1885_v10 = vld [vmem:[%s2088_s11 + $0xa8] sm:$0xff]   ;;  %v1888_v13 = vld [vmem:[%s2088_s11 + $0x30] sm:$0xff]   ;;  %v1890_v15 = vld [vmem:[%s2088_s11 + $0x78] sm:$0xff]  }
  0x3d   : > { %681 = vmatprep.mubr.bf16.mxu0 %v1972_v25  ;;  %724 = vmatprep.mubr.bf16.mxu1 %v1972_v25  ;;  %v1889_v14 = vld [vmem:[%s2088_s11 + $0xb0] sm:$0xff]   ;;  %v1891_v16 = vld [vmem:[%s2088_s11 + $0xf8] sm:$0xff]   ;;  %v1894_v19 = vld [vmem:[%s2088_s11 + $0x140] sm:$0xff]   ;;  %v444_v25 = vsub.s32 2, %v435_v22 }
  0x3e   : > { %v1892_v17 = vld [vmem:[%s2088_s11 + $0x38] sm:$0xff]   ;;  %v1895_v20 = vld [vmem:[%s2088_s11 + $0x1c0] sm:$0xff]  }
  0x3f   : > { %652 = vmatpush1.bf16.msra.mxu0 %v1646_v49  ;;  %695 = vmatpush1.bf16.msra.mxu1 %v1648_v50  ;;  %v1893_v18 = vld [vmem:[%s2088_s11 + $0xb8] sm:$0xff]   ;;  %v432_v24 = vld [vmem:[%s392_s23] sm:$0xff]  ;;  %v464_v49 = vsub.s32 7, %v435_v22  ;;  %v1900_v22 = vld [vmem:[%s2088_s11 + $0x108] sm:$0xff]  }
  0x40   : > { %1731 = vmatprep.subr.bf16.mxu0 %v1862_v51  ;;  %1753 = vmatprep.subr.bf16.mxu1 %v1863_v52  ;;  %v437_v28 = vrot.slane %v432_v24, %v436_v23  ;;  %v445_v29 = vrot.slane %v432_v24, %v444_v25  ;;  %v441_v30 = vrot.slane %v432_v24, %v440_v26 }
  0x41   : > { %v449_v31 = vrot.slane %v432_v24, %v448_v27  ;;  %v453_v48 = vrot.slane %v432_v24, %v452_v32 }
  0x42   : > { %1652 = vmatmul.mubr.msk.bf16.vlgmr.msra.gmra.mrb[4].mxu0 %vm559_vm1, %v2107_v36  ;;  %1653 = vmatmul.mubr.msk.bf16.vlgmr.msra.gmra.mrb[4].mxu1 %vm559_vm1, %v2107_v36 }
  0x43   : > { %1732 = vmatpush3.bf16.msra.mxu0 %v1864_v53  ;;  %1754 = vmatpush3.bf16.msra.mxu1 %v1865_v54  ;;  %v457_v54 = vrot.slane %v432_v24, %v456_v34 }
  0x44   : > { %1733 = vmatprep.subr.bf16.mxu0 %v1866_v55  ;;  %1755 = vmatprep.subr.bf16.mxu1 %v1867_v56 }
  0x47   : > { %1734 = vmatpush3.bf16.msra.mxu0 %v1868_v57  ;;  %1756 = vmatpush3.bf16.msra.mxu1 %v1869_v58 }
  0x48   : > { %1735 = vmatprep.subr.bf16.mxu0 %v1870_v59  ;;  %1757 = vmatprep.subr.bf16.mxu1 %v1871_v60 }
  0x4b   : > { %1736 = vmatpush3.bf16.msra.mxu0 %v1872_v61  ;;  %1758 = vmatpush3.bf16.msra.mxu1 %v1873_v62  ;;  %v461_v62 = vrot.slane %v432_v24, %v460_v43  ;;  %v1906_v43 = vld [vmem:[%s2088_s11 + $0x158] sm:$0xff]  }
  0x4c   : > { %1737 = vmatprep.subr.bf16.mxu0 %v1874_v63  ;;  %1759 = vmatprep.subr.bf16.mxu1 %v1875_v0 }
  0x4f   : > { %1738 = vmatpush3.bf16.msra.mxu0 %v1876_v1  ;;  %1760 = vmatpush3.bf16.msra.mxu1 %v1877_v2  ;;  %v465_v1 = vrot.slane %v432_v24, %v464_v49  ;;  %v1911_v49 = vld [vmem:[%s2088_s11 + $0x1e0] sm:$0xff]  }
  0x50   : > { %1739 = vmatprep.subr.bf16.mxu0 %v1878_v3  ;;  %1761 = vmatprep.subr.bf16.mxu1 %v1879_v4  ;;  %v1896_v4 = vld [vmem:[%s2088_s11 + $0x100] sm:$0xff]  }
  0x53   : > { %1740 = vmatpush3.bf16.msra.mxu0 %v1880_v5  ;;  %1762 = vmatpush3.bf16.msra.mxu1 %v1881_v6 }
  0x54   : > { %1741 = vmatprep.subr.bf16.mxu0 %v1882_v7  ;;  %1763 = vmatprep.subr.bf16.mxu1 %v1883_v8  ;;  %v1897_v7 = vld [vmem:[%s2088_s11 + $0x180] sm:$0xff]   ;;  %v1898_v8 = vld [vmem:[%s2088_s11 + $0x148] sm:$0xff]  }
  0x57   : > { %1742 = vmatpush3.bf16.msra.mxu0 %v1884_v9  ;;  %1764 = vmatpush3.bf16.msra.mxu1 %v1885_v10 }
  0x58   : > { %1743 = vmatprep.subr.bf16.mxu0 %v1886_v11  ;;  %1765 = vmatprep.subr.bf16.mxu1 %v1887_v12  ;;  %v1899_v12 = vld [vmem:[%s2088_s11 + $0x1c8] sm:$0xff]  }
  0x5b   : > { %1744 = vmatpush3.bf16.msra.mxu0 %v1888_v13  ;;  %1766 = vmatpush3.bf16.msra.mxu1 %v1889_v14 }
  0x5c   : > { %1745 = vmatprep.subr.bf16.mxu0 %v1890_v15  ;;  %1767 = vmatprep.subr.bf16.mxu1 %v1891_v16 }
  0x5f   : > { %1746 = vmatpush3.bf16.msra.mxu0 %v1892_v17  ;;  %1768 = vmatpush3.bf16.msra.mxu1 %v1893_v18 }
  0x60   : > { %1775 = vmatprep.subr.bf16.mxu0 %v1894_v19  ;;  %1797 = vmatprep.subr.bf16.mxu1 %v1895_v20 }
 0x10d   : > { %v597_v33 = vpop.f32.mrb[0].mxu0  ;;  %v640_v37 = vpop.f32.mrb[0].mxu1 }
 0x10e   : > { %v598_v35 = vadd.f32 %v597_v33, %v437_v28  ;;  %v599_v38 = vpop.f32.mrb[1].mxu0  ;;  %v641_v39 = vadd.f32 %v640_v37, %v445_v29  ;;  %v642_v41 = vpop.f32.mrb[1].mxu1  ;;  %v1903_v33 = vld [vmem:[%s2088_s11 + $0x1d0] sm:$0xff]  }
 0x10f   : > { %v600_v40 = vadd.f32 %v599_v38, %v441_v30  ;;  %v601_v42 = vpop.f32.mrb[2].mxu0  ;;  %v643_v44 = vadd.f32 %v642_v41, %v449_v31  ;;  %v644_v46 = vpop.f32.mrb[2].mxu1 }
 0x110   : > { %v602_v45 = vadd.f32 %v601_v42, %v437_v28  ;;  %v603_v47 = vpop.f32.mrb[3].mxu0  ;;  %v737_v50 = vmax.f32 %v641_v39, 0.0  ;;  %v645_v51 = vadd.f32 %v644_v46, %v445_v29  ;;  %v646_v53 = vpop.f32.mrb[3].mxu1  ;;  %v735_v55 = vmax.f32 %v598_v35, 0.0  ;;  %v1901_v28 = vld [vmem:[%s2088_s11 + $0x188] sm:$0xff]   ;;  %v1902_v29 = vld [vmem:[%s2088_s11 + $0x150] sm:$0xff]  }
 0x111   : > { %v604_v52 = vadd.f32 %v603_v47, %v441_v30  ;;  %v738_v56 = vmax.f32 %v643_v44, 0.0  ;;  %v647_v58 = vadd.f32 %v646_v53, %v449_v31  ;;  %v736_v59 = vmax.f32 %v600_v40, 0.0  ;;  %v1904_v39 = vld [vmem:[%s2088_s11 + $0x110] sm:$0xff]   ;;  %v1908_v46 = vld [vmem:[%s2088_s11 + $0x118] sm:$0xff]   ;;  %v1915_v53 = vld [vmem:[%s2088_s11 + $0x1e8] sm:$0xff]  }
 0x112   : > { %v743_v57 = vmax.f32 %v602_v45, 0.0  ;;  %v745_v60 = vmax.f32 %v645_v51, 0.0  ;;  %v1905_v42 = vld [vmem:[%s2088_s11 + $0x190] sm:$0xff]   ;;  %v1907_v45 = vld [vmem:[%s2088_s11 + $0x1d8] sm:$0xff]   ;;  %v1913_v51 = vld [vmem:[%s2088_s11 + $0x1a0] sm:$0xff]  }
 0x113   : > { %v744_v61 = vmax.f32 %v604_v52, 0.0  ;;  %v746_v0 = vmax.f32 %v647_v58, 0.0  ;;  %v1909_v47 = vld [vmem:[%s2088_s11 + $0x198] sm:$0xff]   ;;  %v1914_v52 = vld [vmem:[%s2088_s11 + $0x168] sm:$0xff]   ;;  %v1920_v58 = vld [vmem:[%s2088_s11 + $0x130] sm:$0xff]  }
 0x114   : > { %v753_v63 = vpack.c.bf16 %v743_v57, %v735_v55  ;;  %v755_v2 = vpack.c.bf16 %v745_v60, %v737_v50  ;;  %v1912_v50 = vld [vmem:[%s2088_s11 + $0x120] sm:$0xff]   ;;  %v1917_v55 = vld [vmem:[%s2088_s11 + $0x1a8] sm:$0xff]   ;;  %v1919_v57 = vld [vmem:[%s2088_s11 + $0x1f0] sm:$0xff]  }
 0x115   : > { %v754_v3 = vpack.c.bf16 %v744_v61, %v736_v59  ;;  %v683_v5 = vpop.f32.mrb[4].mxu0  ;;  %v756_v6 = vpack.c.bf16 %v746_v0, %v738_v56  ;;  %v726_v11 = vpop.f32.mrb[4].mxu1  ;;  %v1918_v56 = vld [vmem:[%s2088_s11 + $0x170] sm:$0xff]   ;;  %v1922_v60 = vld [vmem:[%s2088_s11 + $0x178] sm:$0xff]  }
 0x116   : > { %v684_v9 = vadd.f32 %v683_v5, %v453_v48  ;;  %v685_v10 = vpop.f32.mrb[5].mxu0  ;;  %v727_v15 = vadd.f32 %v726_v11, %v461_v62  ;;  %v728_v16 = vpop.f32.mrb[5].mxu1  ;;  %v1921_v59 = vld [vmem:[%s2088_s11 + $0x1b0] sm:$0xff]   ;;  %v1923_v61 = vld [vmem:[%s2088_s11 + $0x1f8] sm:$0xff]  }
 0x117   : > { %1305 = vmatprep.mubr.bf16.mxu0 %v754_v3  ;;  %v686_v13 = vadd.f32 %v685_v10, %v457_v54  ;;  %v687_v14 = vpop.f32.mrb[6].mxu0  ;;  %1346 = vmatprep.mubr.bf16.mxu1 %v756_v6  ;;  %v729_v20 = vadd.f32 %v728_v16, %v465_v1  ;;  %v730_v21 = vpop.f32.mrb[6].mxu1 }
 0x118   : > { %1306 = vmatmul.mubr.bf16.vlgmr.msra.gmra.mrb[8].mxu0 %v753_v63  ;;  %v739_v17 = vmax.f32 %v684_v9, 0.0  ;;  %v688_v18 = vadd.f32 %v687_v14, %v453_v48  ;;  %v689_v19 = vpop.f32.mrb[7].mxu0  ;;  %1347 = vmatmul.mubr.bf16.vlgmr.msra.gmra.mrb[8].mxu1 %v755_v2  ;;  %v741_v24 = vmax.f32 %v727_v15, 0.0  ;;  %v731_v26 = vadd.f32 %v730_v21, %v461_v62  ;;  %v732_v27 = vpop.f32.mrb[7].mxu1  ;;  %v1910_v48 = vld [vmem:[%s2088_s11 + $0x160] sm:$0xff]   ;;  %v1924_v62 = vld [vmem:[%s2088_s11 + $0x138] sm:$0xff]  }
 0x119   : > { %1776 = vmatpush3.bf16.msra.mxu0 %v1896_v4  ;;  %v740_v23 = vmax.f32 %v686_v13, 0.0  ;;  %v690_v25 = vadd.f32 %v689_v19, %v457_v54  ;;  %1798 = vmatpush3.bf16.msra.mxu1 %v1897_v7  ;;  %v742_v31 = vmax.f32 %v729_v20, 0.0  ;;  %v733_v32 = vadd.f32 %v732_v27, %v465_v1  ;;  %v1916_v54 = vld [vmem:[%s2088_s11 + $0x128] sm:$0xff]   ;;  %v1925_v63 = vld [vmem:[%s2088_s11 + $0x1b8] sm:$0xff]  }
 0x11a   : > { %1777 = vmatprep.subr.bf16.mxu0 %v1898_v8  ;;  %v747_v30 = vmax.f32 %v688_v18, 0.0  ;;  %1799 = vmatprep.subr.bf16.mxu1 %v1899_v12  ;;  %v749_v35 = vmax.f32 %v731_v26, 0.0  ;;  %v751_v26 = vld [vmem:[#allocation2] sm:$0xff] }
 0x11b   : > { %v748_v34 = vmax.f32 %v690_v25, 0.0  ;;  %v750_v38 = vmax.f32 %v733_v32, 0.0 }
 0x11c   : > { %v757_v37 = vpack.c.bf16 %v747_v30, %v739_v17  ;;  %v759_v41 = vpack.c.bf16 %v749_v35, %v741_v24  ;;  %v752_v30 = vld [vmem:[#allocation2 + $0x8] sm:$0xff]  ;;  %v1719_v35 = vld [vmem:[%s2234_s4] ss:$0 sm:$0xff] (!%p1718_p12) }
 0x11d   : > { %1778 = vmatpush3.bf16.msra.mxu0 %v1900_v22  ;;  %v758_v40 = vpack.c.bf16 %v748_v34, %v740_v23  ;;  %1800 = vmatpush3.bf16.msra.mxu1 %v1901_v28  ;;  %v760_v44 = vpack.c.bf16 %v750_v38, %v742_v31 }
 0x11e   : > { %1779 = vmatprep.subr.bf16.mxu0 %v1902_v29  ;;  %1801 = vmatprep.subr.bf16.mxu1 %v1903_v33 }
 0x11f   : > { %1387 = vmatprep.mubr.bf16.mxu0 %v758_v40  ;;  %1428 = vmatprep.mubr.bf16.mxu1 %v760_v44 }
 0x121   : > { %1780 = vmatpush3.bf16.msra.mxu0 %v1904_v39  ;;  %1802 = vmatpush3.bf16.msra.mxu1 %v1905_v42  ;;  %v1457_v39 = vunpack.c.h.bf16 (!%p1718_p12), %v2107_v36 }
 0x122   : > { %1781 = vmatprep.subr.bf16.mxu0 %v1906_v43  ;;  %1803 = vmatprep.subr.bf16.mxu1 %v1907_v45 }
 0x125   : > { %1782 = vmatpush3.bf16.msra.mxu0 %v1908_v46  ;;  %1804 = vmatpush3.bf16.msra.mxu1 %v1909_v47 }
 0x126   : > { %1783 = vmatprep.subr.bf16.mxu0 %v1910_v48  ;;  %1805 = vmatprep.subr.bf16.mxu1 %v1911_v49 }
 0x129   : > { %1784 = vmatpush3.bf16.msra.mxu0 %v1912_v50  ;;  %1806 = vmatpush3.bf16.msra.mxu1 %v1913_v51 }
 0x12a   : > { %1785 = vmatprep.subr.bf16.mxu0 %v1914_v52  ;;  %1807 = vmatprep.subr.bf16.mxu1 %v1915_v53 }
 0x12d   : > { %1786 = vmatpush3.bf16.msra.mxu0 %v1916_v54  ;;  %1808 = vmatpush3.bf16.msra.mxu1 %v1917_v55 }
 0x12e   : > { %1787 = vmatprep.subr.bf16.mxu0 %v1918_v56  ;;  %1809 = vmatprep.subr.bf16.mxu1 %v1919_v57 }
 0x131   : > { %1788 = vmatpush3.bf16.msra.mxu0 %v1920_v58  ;;  %1810 = vmatpush3.bf16.msra.mxu1 %v1921_v59 }
 0x132   : > { %1789 = vmatprep.subr.bf16.mxu0 %v1922_v60  ;;  %1811 = vmatprep.subr.bf16.mxu1 %v1923_v61 }
 0x135   : > { %1790 = vmatpush3.bf16.msra.mxu0 %v1924_v62  ;;  %1812 = vmatpush3.bf16.msra.mxu1 %v1925_v63  ;;  %v1720_v62 = vld [vmem:[%s2235_s5] ss:$0 sm:$0xff] (!%p1718_p12) }
 0x138   : > { %1388 = vmatmul.mubr.bf16.vlgmr.msra.gmra.mrb[12].mxu0 %v757_v37  ;;  %1429 = vmatmul.mubr.bf16.vlgmr.msra.gmra.mrb[12].mxu1 %v759_v41  ;;  %v1456_v37 = vunpack.c.l.bf16 (!%p1718_p12), %v2107_v36 }
 0x1eb   : > { %v1747_v0 = vpop.f32.mrb[8].mxu0  ;;  %v1769_v1 = vpop.f32.mrb[8].mxu1 }
 0x1ec   : > { %v1748_v2 = vpop.f32.mrb[9].mxu0  ;;  %v1770_v4 = vpop.f32.mrb[9].mxu1 }
 0x1ed   : > { %v1749_v3 = vadd.f32 %v1748_v2, %v1747_v0  ;;  %v1750_v5 = vpop.f32.mrb[10].mxu0  ;;  %v1771_v6 = vadd.f32 %v1770_v4, %v1769_v1  ;;  %v1772_v7 = vpop.f32.mrb[10].mxu1  ;;  %v1721_v0 = vld [vmem:[%s2236_s6] ss:$0 sm:$0xff] (!%p1718_p12) }
 0x1ee   : > { %v1751_v8 = vpop.f32.mrb[11].mxu0  ;;  %v1773_v10 = vpop.f32.mrb[11].mxu1 }
 0x1ef   : > { %v1752_v9 = vadd.f32 %v1751_v8, %v1750_v5  ;;  %v1349_v11 = vadd.f32 %v1771_v6, %v1749_v3  ;;  %v1774_v12 = vadd.f32 %v1773_v10, %v1772_v7 }
 0x1f1   : > { %v1352_v13 = vadd.f32 %v1774_v12, %v1752_v9 }
 0x20b   : > { %v1791_v14 = vpop.f32.mrb[12].mxu0  ;;  %v1813_v15 = vpop.f32.mrb[12].mxu1 }
 0x20c   : > { %v1792_v16 = vpop.f32.mrb[13].mxu0  ;;  %v1814_v18 = vpop.f32.mrb[13].mxu1 }
 0x20d   : > { %v1793_v17 = vadd.f32 %v1792_v16, %v1791_v14  ;;  %v1794_v19 = vpop.f32.mrb[14].mxu0  ;;  %v1815_v20 = vadd.f32 %v1814_v18, %v1813_v15  ;;  %v1816_v21 = vpop.f32.mrb[14].mxu1 }
 0x20e   : > { %v1795_v22 = vpop.f32.mrb[15].mxu0  ;;  %v1817_v25 = vpop.f32.mrb[15].mxu1 }
 0x20f   : > { %v1390_v23 = vadd.f32 %v1793_v17, %v1349_v11  ;;  %v1796_v24 = vadd.f32 %v1795_v22, %v1794_v19  ;;  %v1818_v27 = vadd.f32 %v1817_v25, %v1816_v21 }
 0x211   : > { %v1431_v28 = vadd.f32 %v1815_v20, %v1390_v23  ;;  %v1393_v29 = vadd.f32 %v1796_v24, %v1352_v13  ;;  %1444 = sbr.rel (%p1718_p12) target bundleno = 865 (0x361), region = 79 }
 0x213   : > { %v1437_v31 = vadd.f32 %v1431_v28, %v751_v26  ;;  %v1434_v32 = vadd.f32 %v1818_v27, %v1393_v29 }
 0x215   : > { %1439 = vst.msk [vmem:[#allocation2] sm:$0xff] %vm559_vm1, %v1437_v31  ;;  %v1438_v33 = vadd.f32 %v1434_v32, %v752_v30 }
 0x217   : > { %1440 = vst.msk [vmem:[#allocation2 + $0x8] sm:$0xff] %vm559_vm1, %v1438_v33 }
 0x21c   : > { %v1445_v34 = vld [vmem:[#allocation2] sm:$0xff] }
 0x21d   : > { %v1454_v40 = vadd.f32 %v1719_v35, %v1445_v34 }
 0x21e   : > { %v1446_v38 = vld [vmem:[#allocation2 + $0x8] sm:$0xff] }
 0x21f   : > { %v1455_v41 = vadd.f32 %v1719_v35, %v1446_v38  ;;  %v1458_v42 = vadd.f32 %v1456_v37, %v1454_v40 }
 0x221   : > { %v1459_v43 = vadd.f32 %v1457_v39, %v1455_v41  ;;  %v1462_v44 = vsel %vm559_vm1, %v1458_v42, 0.0 }
 0x222   : > { %1463 = vadd.xlane.f32.xlu0 %v1462_v44 }
 0x223   : > { %v1465_v45 = vsel %vm559_vm1, %v1459_v43, 0.0 }
 0x226   : > { %1466 = vadd.xlane.f32.xlu0 %v1465_v45 }
 0x2af   : > { %v1464_v46 = vpop.xlane.xlu0 %1463 }
 0x2b0   : > { %v1469_v47 = vmul.f32 0.03125, %v1464_v46 }
 0x2b2   : > { %v1471_v48 = vsub.f32 %v1458_v42, %v1469_v47 }
 0x2b3   : > { %v1467_v49 = vpop.xlane.xlu0 %1466 }
 0x2b4   : > { %v1470_v50 = vmul.f32 0.03125, %v1467_v49  ;;  %v1473_v51 = vmul.f32 %v1471_v48, %v1471_v48 }
 0x2b6   : > { %v1472_v52 = vsub.f32 %v1459_v43, %v1470_v50  ;;  %v1475_v53 = vsel %vm559_vm1, %v1473_v51, 0.0 }
 0x2b7   : > { %1476 = vadd.xlane.f32.xlu1 %v1475_v53 }
 0x2b8   : > { %v1474_v36 = vmul.f32 %v1472_v52, %v1472_v52 }
 0x2ba   : > { %v1478_v54 = vsel %vm559_vm1, %v1474_v36, 0.0 }
 0x2bb   : > { %1479 = vadd.xlane.f32.xlu1 %v1478_v54 }
 0x344   : > { %v1477_v55 = vpop.xlane.xlu1 %1476 }
 0x345   : > { %v1481_v56 = vmul.f32 0.03125, %v1477_v55 }
 0x347   : > { %v1483_v57 = vadd.f32 1e-05, %v1481_v56 }
 0x348   : > { %v1480_v58 = vpop.xlane.xlu1 %1479 }
 0x349   : > { %1927 = vrsqrt.f32 %v1483_v57  ;;  %v1482_v59 = vmul.f32 0.03125, %v1480_v58 }
 0x34b   : > { %v1484_v60 = vadd.f32 1e-05, %v1482_v59 }
 0x34d   : > { %1929 = vrsqrt.f32 %v1484_v60 }
 0x353   : > { %v1928_v61 = vpop.eup %1927 }
 0x354   : > { %v1487_v63 = vmul.f32 %v1928_v61, %v1471_v48 }
 0x356   : > { %v1495_v1 = vmul.f32 %v1720_v62, %v1487_v63 }
 0x357   : > { %v1930_v2 = vpop.eup %1929 }
 0x358   : > { %v1503_v3 = vadd.f32 %v1721_v0, %v1495_v1  ;;  %v1488_v4 = vmul.f32 %v1930_v2, %v1472_v52 }
 0x35a   : > { %v1729_v5 = vpack.c.bf16 %v1503_v3, %v1503_v3  ;;  %v1496_v6 = vmul.f32 %v1720_v62, %v1488_v4 }
 0x35c   : > { %1514 = vst.msk [vmem:[%s2237_s7] sm:$0xf] %vm1513_vm2, %v1729_v5  ;;  %v1504_v7 = vadd.f32 %v1721_v0, %v1496_v6 }
 0x35e   : > { %v1730_v8 = vpack.c.bf16 %v1504_v7, %v1504_v7 }
 0x360   : > { %1515 = vst.msk [vmem:[%s2237_s7 + $0x4] sm:$0xf] %vm1513_vm2, %v1730_v8 }
 0x361 PF: > { %s17_s28 = sadd.s32 1, %s1969_s28   ;;  %s2238_s24 = smov %s1957_s25 }
 0x362   : > { %p14_p13 = scmp.ge.s32.totalorder %s17_s28, 4   ;;  %s2239_s25 = smov %s2048_s9 }
 0x363   : > { %s2240_s26 = smov %s1965_s27  ;;  %s2241_s27 = smov %s2243_s29 }
 0x364   :  { %16 = sbr.rel (!%p14_p13) target bundleno = 3 (0x3), region = 123 }

// kernel: transformer_model_forward.15
= control target key start
LH: loop header
LB: loop body
LE: loop exit
PB: predicated region body
PF: predicated region fallthrough
CT: control target
= control target key end

     0   :  { %s1524_s30 = smov 0   ;;  %s1526_s10 = smov 0   ;;  %s1707_s0 = inlined_call_operand.vmem [shape: bf16[2,8,32], index: 0, kind: input, shape index: {}]   ;;  %s1708_s1 = inlined_call_operand.vmem [shape: bf16[32,32], index: 1, kind: input, shape index: {}]   ;;  %s1709_s2 = inlined_call_operand.vmem [shape: f32[1,32], index: 2, kind: input, shape index: {}]   ;;  %s1710_s3 = inlined_call_operand.vmem [shape: bf16[32,64], index: 3, kind: input, shape index: {}]   ;;  %s1711_s4 = inlined_call_operand.vmem [shape: f32[1,64], index: 4, kind: input, shape index: {}]   ;;  %s1712_s5 = inlined_call_operand.vmem [shape: bf16[4,8,32], index: 5, kind: input, shape index: {}]   ;;  %s1713_s6 = inlined_call_operand.vmem [shape: f32[1,32], index: 6, kind: input, shape index: {}]   ;;  %s1714_s7 = inlined_call_operand.vmem [shape: f32[1,32], index: 7, kind: input, shape index: {}]   ;;  %s1715_s8 = inlined_call_operand.vmem [shape: f32[1,32], index: 8, kind: input, shape index: {}]   ;;  %s1716_s9 = inlined_call_operand.vmem [shape: bf16[2,8,32], index: 9, kind: output, shape index: {}]  }
   0x1   :  { %s1528_s11 = smov 0  }
   0x2 LB: > { %s31_s12 = sadd.s32 1, %s1459_s10  ;;  %p1237_p0 = scmp.ge.s32.totalorder %s1463_s11, 1  ;;  %s1463_s11 = sphi %s1528_s11, %s19_s11   ;;  %s1459_s10 = sphi %s1526_s10, %s1718_s10   ;;  %s1455_s30 = sphi %s1524_s30, %s1717_s30  }
   0x3   : > { %p33_p1 = scmp.ge.s32.totalorder %s31_s12, 2  ;;  %p300_p2 = scmp.lt.s32.totalorder %s1463_s11, 3 }
   0x5   : > { %s1720_s12 = smov (%p33_p1, %s31_s12), 0  ;;  %p301_p3 = pnand %p1237_p0, %p300_p2 }
   0x6   : > { %v1419_v0 = vld [vmem:[%s1710_s3] sm:$0xff] (!%p301_p3)   ;;  %v1465_v1 = vmov (!%p301_p3), 0.0   ;;  %v1420_v2 = vld [vmem:[%s1710_s3 + $0x8] sm:$0xff] (!%p301_p3)   ;;  %vm1466_vm0 = vmmov (!%p301_p3), 0   ;;  %p337_p4 = scmp.lt.s32.totalorder (!%p301_p3), %s1455_s30, 1  ;;  %vm373_vm1 = vcmask (!%p301_p3), 261120  }
   0x7   : > { %304 = sbr.rel (%p301_p3) target bundleno = 2919 (0xb67), region = 56  ;;  %1306 = vmatprep.subr.bf16.mxu1 (!%p301_p3), %v1465_v1  ;;  %1298 = vmatprep.subr.bf16.mxu0 (!%p301_p3), %v1465_v1  ;;  %v1421_v3 = vld [vmem:[%s1708_s1] sm:$0xff] (!%p301_p3)   ;;  %v1422_v4 = vld [vmem:[%s1708_s1 + $0x8] sm:$0xff] (!%p301_p3)   ;;  %vm482_vm2 = vcmask (!%p301_p3), 64512   ;;  %s1467_s29 = smov (!%p301_p3), 120   ;;  %vm547_vm3 = vcmask (!%p301_p3), 1043456  }
   0x8   : > { %1307 = vmatpush3.bf16.msra.mxu1 (!%p301_p3), %v1419_v0  ;;  %1310 = vmatprep.mubr.msk.bf16.mxu1 (!%p301_p3), %vm1466_vm0, %v1465_v1  ;;  %v1244_v6 = vld [vmem:[%s1711_s4] ss:$0 sm:$0xff] (!%p301_p3)  ;;  %s1468_s13 = smov (!%p301_p3), 96   ;;  %s1469_s14 = smov (!%p301_p3), 88   ;;  %v1252_v50 = vld [vmem:[%s1712_s5 + $0x4] sm:$0xf] (!%p301_p3) }
   0x9   : > { %1308 = vmatprep.subr.bf16.mxu1 (!%p301_p3), %v1465_v1  ;;  %1302 = vmatprep.mubr.msk.bf16.mxu0 (!%p301_p3), %vm1466_vm0, %v1465_v1  ;;  %v1240_v8 = vld [vmem:[%s1709_s2] ss:$0 sm:$0xff] (!%p301_p3)  ;;  %s1470_s15 = smov (!%p301_p3), 112   ;;  %v711_v51 = vsel (!%p301_p3), %vm547_vm3, %v1252_v50, 0  ;;  %s1471_s20 = smov (!%p301_p3), 80   ;;  %vm1160_vm4 = vcmask (!%p301_p3), 257024  }
   0xa   : > { %1299 = vmatpush3.bf16.msra.mxu0 (!%p301_p3), %v1421_v3  ;;  %v592_v56 = vld [vmem:[%s1712_s5] sm:$0xf] (!%p301_p3)  ;;  %s1472_s22 = smov (!%p301_p3), 104   ;;  %s1473_s25 = smov (!%p301_p3), 72  }
   0xb   : > { %1300 = vmatprep.subr.bf16.mxu0 (!%p301_p3), %v1465_v1  ;;  %v757_v59 = vsel (!%p301_p3), %vm547_vm3, %v592_v56, 0 }
   0xc   : > { %1309 = vmatpush3.bf16.msra.mxu1 (!%p301_p3), %v1420_v2 }
   0xd   : > { %1320 = vmatprep.subr.bf16.mxu1 (!%p301_p3), %v1465_v1 }
   0xe   : > { %s1722_s30 = smov (!%p337_p4, %s1455_s30), 1  ;;  %1301 = vmatpush3.bf16.msra.mxu0 %v1422_v4 }
   0xf   : > { %s1238_s21 = sshll.u32 %s1722_s30, 2  ;;  %1314 = vmatprep.subr.bf16.mxu0 %v1465_v1 }
  0x10   : > { %s340_s24 = scalar_lea.vmem %s1707_s0, %s1238_s21  ;;  %s347_s19 = scalar_lea.vmem %s1716_s9, %s1238_s21 }
  0x11   : > { %v1571_v5 = vld [vmem:[%s340_s24] sm:$0xf] }
  0x12   : > { %1311 = vmatmul.mubr.msk.bf16.vlgmr.msra.gmra.mrb[0].mxu1 %vm373_vm1, %v1571_v5  ;;  %1303 = vmatmul.mubr.msk.bf16.vlgmr.msra.gmra.mrb[0].mxu0 %vm373_vm1, %v1571_v5 }
  0x13   : > { %1322 = vmatprep.mubr.msk.bf16.mxu1 %vm1466_vm0, %v1465_v1  ;;  %1316 = vmatprep.mubr.msk.bf16.mxu0 %vm1466_vm0, %v1465_v1 }
  0xe5   : > { %v474_v7 = vpop.f32.mrb[0].mxu1  ;;  %v411_v12 = vpop.f32.mrb[0].mxu0 }
  0xe6   : > { %v475_v9 = vadd.f32 %v1244_v6, %v474_v7  ;;  %v1312_v10 = vpop.f32.mrb[1].mxu1  ;;  %v412_v15 = vadd.f32 %v1240_v8, %v411_v12  ;;  %v1304_v16 = vpop.f32.mrb[1].mxu0 }
  0xe7   : > { %v477_v11 = vpop.f32.mrb[2].mxu1  ;;  %v414_v17 = vpop.f32.mrb[2].mxu0 }
  0xe8   : > { %v1588_v13 = vpack.c.bf16 %v475_v9, %v475_v9  ;;  %v1313_v14 = vpop.f32.mrb[3].mxu1  ;;  %v1591_v18 = vpack.c.bf16 %v412_v15, %v412_v15  ;;  %v1305_v20 = vpop.f32.mrb[3].mxu0 }
  0xea   : > { %596 = vrot.lane.b32.xlu0 %v1588_v13, %s1467_s29  ;;  %v487_v19 = vsel %vm482_vm2, %v1588_v13, 0 }
  0xeb   : > { %1315 = vmatpush3.bf16.xpose.msra.mxu0 %v487_v19 }
  0xec   : > { %1326 = vmatprep.subr.bf16.mxu0 %v1465_v1 }
  0xee   : > { %594 = vrot.lane.b32.xlu0 %v1591_v18, %s1467_s29 }
  0xf2   : > { %1317 = vmatmul.mubr.msk.bf16.vlgmr.msra.gmra.mrb[4].mxu0 %vm482_vm2, %v1591_v18 }
  0xf3   : > { %1328 = vmatprep.mubr.msk.bf16.mxu0 %vm1466_vm0, %v1465_v1 }
 0x15c   : > { %v597_v21 = vpop.permute.xlu0 %596 }
 0x15d   : > { %v602_v22 = vsel %vm482_vm2, %v597_v21, 0 }
 0x15e   : > { %1327 = vmatpush3.bf16.xpose.msra.mxu0 %v602_v22 }
 0x15f   : > { %1338 = vmatprep.subr.bf16.mxu0 %v1465_v1 }
 0x160   : > { %v595_v23 = vpop.permute.xlu0 %594 }
 0x165   : > { %1329 = vmatmul.mubr.msk.bf16.vlgmr.msra.gmra.mrb[8].mxu0 %vm482_vm2, %v595_v23 }
 0x166   : > { %1340 = vmatprep.mubr.msk.bf16.mxu0 %vm1466_vm0, %v1465_v1  ;;  %1339 = vmatpush3.bf16.msra.mxu0 %v711_v51 }
 0x167   : > { %1350 = vmatprep.subr.bf16.mxu0 %v1465_v1 }
 0x1c5   : > { %v523_v24 = vpop.f32.mrb[4].mxu0 }
 0x1c6   : > { %v1318_v25 = vpop.f32.mrb[5].mxu0  ;;  %v529_v26 = vsel %vm482_vm2, %v523_v24, -inf }
 0x1c7   : > { %530 = vmax.xlane.f32.xlu1 %v529_v26  ;;  %v526_v27 = vpop.f32.mrb[6].mxu0 }
 0x1c8   : > { %v1319_v28 = vpop.f32.mrb[7].mxu0 }
 0x238   : > { %v638_v29 = vpop.f32.mrb[8].mxu0 }
 0x239   : > { %v1330_v30 = vpop.f32.mrb[9].mxu0  ;;  %v644_v31 = vsel %vm482_vm2, %v638_v29, -inf }
 0x23a   : > { %645 = vmax.xlane.f32.xlu1 %v644_v31  ;;  %v641_v32 = vpop.f32.mrb[10].mxu0 }
 0x23b   : > { %v1331_v33 = vpop.f32.mrb[11].mxu0 }
 0x24b   : > { %542 = vrot.lane.b32.xlu1 %v1588_v13, %s1468_s13 }
 0x254   : > { %v531_v34 = vpop.xlane.xlu1 %530 }
 0x255   : > { %v532_v35 = vsub.f32 %v523_v24, %v531_v34 }
 0x257   : > { %v533_v36 = vmul.f32 1.442695, %v532_v35 }
 0x259   : > { %1423 = vpow2.f32 %v533_v36 }
 0x263   : > { %v1424_v37 = vpop.eup %1423 }
 0x264   : > { %v535_v38 = vsel %vm482_vm2, %v1424_v37, 0.0 }
 0x265   : > { %536 = vadd.xlane.f32.xlu0 %v535_v38 }
 0x2c7   : > { %v646_v39 = vpop.xlane.xlu1 %645 }
 0x2c8   : > { %v647_v40 = vsub.f32 %v638_v29, %v646_v39 }
 0x2ca   : > { %v648_v41 = vmul.f32 1.442695, %v647_v40  ;;  %v1257_v40 = vld [vmem:[%s1712_s5 + $0x8] sm:$0xf] }
 0x2cb   : > { %v543_v42 = vpop.permute.xlu1 %542 }
 0x2cc   : > { %1425 = vpow2.f32 %v648_v41  ;;  %v549_v43 = vsel %vm547_vm3, %v543_v42, 0  ;;  %v916_v41 = vsel %vm547_vm3, %v1257_v40, 0 }
 0x2cd   : > { %1321 = vmatpush3.bf16.msra.mxu1 %v549_v43 }
 0x2ce   : > { %1332 = vmatprep.subr.bf16.mxu1 %v1465_v1 }
 0x2d6   : > { %v1426_v44 = vpop.eup %1425 }
 0x2d7   : > { %v650_v45 = vsel %vm482_vm2, %v1426_v44, 0.0 }
 0x2d8   : > { %651 = vadd.xlane.f32.xlu1 %v650_v45 }
 0x2e9   : > { %656 = vrot.lane.b32.xlu1 %v1588_v13, %s1469_s14 }
 0x2ed   : > { %801 = vrot.lane.b32.xlu1 %v1588_v13, %s1470_s15 }
 0x2f1   : > { %799 = vrot.lane.b32.xlu1 %v1591_v18, %s1470_s15 }
 0x2f2   : > { %v537_v46 = vpop.xlane.xlu0 %536 }
 0x2f3   : > { %1427 = vrcp.f32 %v537_v46 }
 0x2fd   : > { %v1428_v47 = vpop.eup %1427 }
 0x2fe   : > { %v539_v48 = vmul.f32 %v1428_v47, %v1424_v37 }
 0x300   : > { %v540_v49 = vpack.c.bf16 %v539_v48, %v539_v48 }
 0x302   : > { %1323 = vmatmul.mubr.msk.bf16.vlgmr.msra.gmra.mrb[4].mxu1 %vm482_vm2, %v540_v49 }
 0x303   : > { %1334 = vmatprep.mubr.msk.bf16.mxu1 %vm1466_vm0, %v1465_v1 }
 0x365   : > { %v652_v52 = vpop.xlane.xlu1 %651 }
 0x366   : > { %1429 = vrcp.f32 %v652_v52 }
 0x369   : > { %v657_v53 = vpop.permute.xlu1 %656 }
 0x36a   : > { %v662_v54 = vsel %vm547_vm3, %v657_v53, 0 }
 0x36b   : > { %1333 = vmatpush3.bf16.msra.mxu1 %v662_v54 }
 0x36c   : > { %1344 = vmatprep.subr.bf16.mxu1 %v1465_v1 }
 0x36d   : > { %v802_v2 = vpop.permute.xlu1 %801 }
 0x36e   : > { %v807_v8 = vsel %vm482_vm2, %v802_v2, 0 }
 0x370   : > { %v1430_v55 = vpop.eup %1429 }
 0x371   : > { %v654_v57 = vmul.f32 %v1430_v55, %v1426_v44  ;;  %v800_v10 = vpop.permute.xlu1 %799 }
 0x373   : > { %v655_v58 = vpack.c.bf16 %v654_v57, %v654_v57 }
 0x375   : > { %1335 = vmatmul.mubr.msk.bf16.vlgmr.msra.gmra.mrb[8].mxu1 %vm482_vm2, %v655_v58 }
 0x376   : > { %1345 = vmatpush3.bf16.msra.mxu1 %v757_v59  ;;  %1346 = vmatprep.mubr.msk.bf16.mxu1 %vm1466_vm0, %v1465_v1 }
 0x377   : > { %1356 = vmatprep.subr.bf16.mxu1 %v1465_v1 }
 0x3d5   : > { %v585_v60 = vpop.f32.mrb[4].mxu1 }
 0x3d6   : > { %v591_v61 = vpack.c.bf16 %v585_v60, %v585_v60  ;;  %v1324_v62 = vpop.f32.mrb[5].mxu1 }
 0x3d7   : > { %v588_v63 = vpop.f32.mrb[6].mxu1 }
 0x3d8   : > { %v1325_v0 = vpop.f32.mrb[7].mxu1  ;;  %1347 = vmatmul.mubr.msk.bf16.vlgmr.msra.gmra.mrb[12].mxu1 %vm482_vm2, %v591_v61 }
 0x3d9   : > { %1358 = vmatprep.mubr.msk.bf16.mxu1 %vm1466_vm0, %v1465_v1 }
 0x448   : > { %v698_v3 = vpop.f32.mrb[8].mxu1 }
 0x449   : > { %v704_v4 = vpack.c.bf16 %v698_v3, %v698_v3  ;;  %v1336_v6 = vpop.f32.mrb[9].mxu1 }
 0x44a   : > { %v701_v7 = vpop.f32.mrb[10].mxu1 }
 0x44b   : > { %v1337_v9 = vpop.f32.mrb[11].mxu1  ;;  %1341 = vmatmul.mubr.msk.bf16.vlgmr.msra.gmra.mrb[12].mxu0 %vm482_vm2, %v704_v4 }
 0x44c   : > { %1351 = vmatpush3.bf16.xpose.msra.mxu0 %v807_v8  ;;  %1352 = vmatprep.mubr.msk.bf16.mxu0 %vm1466_vm0, %v1465_v1 }
 0x44d   : > { %1362 = vmatprep.subr.bf16.mxu0 %v1465_v1 }
 0x453   : > { %1353 = vmatmul.mubr.msk.bf16.vlgmr.msra.gmra.mrb[16].mxu0 %vm482_vm2, %v800_v10 }
 0x454   : > { %1364 = vmatprep.mubr.msk.bf16.mxu0 %vm1466_vm0, %v1465_v1  ;;  %1363 = vmatpush3.bf16.msra.mxu0 %v916_v41 }
 0x455   : > { %1374 = vmatprep.subr.bf16.mxu0 %v1465_v1 }
 0x4ab   : > { %v793_v11 = vpop.f32.mrb[12].mxu1 }
 0x4ac   : > { %v1348_v12 = vpop.f32.mrb[13].mxu1 }
 0x4ad   : > { %v796_v14 = vpop.f32.mrb[14].mxu1  ;;  %v1263_v12 = vld [vmem:[%s1713_s6] ss:$0 sm:$0xff] }
 0x4ae   : > { %v1349_v15 = vpop.f32.mrb[15].mxu1 }
 0x51e   : > { %v747_v16 = vpop.f32.mrb[12].mxu0 }
 0x51f   : > { %v1645_v17 = vadd.f32 %v793_v11, %v747_v16  ;;  %v1342_v19 = vpop.f32.mrb[13].mxu0  ;;  %v1127_v16 = vunpack.c.l.bf16 %v1571_v5 }
 0x520   : > { %v750_v20 = vpop.f32.mrb[14].mxu0 }
 0x521   : > { %v1343_v21 = vpop.f32.mrb[15].mxu0 }
 0x526   : > { %v843_v22 = vpop.f32.mrb[16].mxu0 }
 0x527   : > { %v1354_v23 = vpop.f32.mrb[17].mxu0  ;;  %v849_v24 = vsel %vm482_vm2, %v843_v22, -inf }
 0x528   : > { %850 = vmax.xlane.f32.xlu0 %v849_v24  ;;  %v846_v25 = vpop.f32.mrb[18].mxu0 }
 0x529   : > { %v1355_v26 = vpop.f32.mrb[19].mxu0 }
 0x53e   : > { %861 = vrot.lane.b32.xlu0 %v1588_v13, %s1471_s20 }
 0x542   : > { %961 = vrot.lane.b32.xlu0 %v1588_v13, %s1472_s22 }
 0x546   : > { %959 = vrot.lane.b32.xlu0 %v1591_v18, %s1472_s22 }
 0x5b5   : > { %v851_v27 = vpop.xlane.xlu0 %850 }
 0x5b6   : > { %v852_v28 = vsub.f32 %v843_v22, %v851_v27 }
 0x5b8   : > { %v853_v29 = vmul.f32 1.442695, %v852_v28 }
 0x5b9   : > { %v862_v30 = vpop.permute.xlu0 %861 }
 0x5ba   : > { %1431 = vpow2.f32 %v853_v29  ;;  %v867_v31 = vsel %vm547_vm3, %v862_v30, 0 }
 0x5bb   : > { %1357 = vmatpush3.bf16.msra.mxu1 %v867_v31  ;;  %v1264_v31 = vld [vmem:[%s1714_s7] ss:$0 sm:$0xff] }
 0x5bc   : > { %1368 = vmatprep.subr.bf16.mxu1 %v1465_v1 }
 0x5bd   : > { %v962_v37 = vpop.permute.xlu0 %961 }
 0x5be   : > { %v967_v38 = vsel %vm482_vm2, %v962_v37, 0 }
 0x5c1   : > { %v960_v39 = vpop.permute.xlu0 %959 }
 0x5c4   : > { %v1432_v32 = vpop.eup %1431 }
 0x5c5   : > { %v855_v33 = vsel %vm482_vm2, %v1432_v32, 0.0 }
 0x5c6   : > { %856 = vadd.xlane.f32.xlu1 %v855_v33  ;;  %v1265_v33 = vld [vmem:[%s1715_s8] ss:$0 sm:$0xff] }
 0x653   : > { %v857_v34 = vpop.xlane.xlu1 %856 }
 0x654   : > { %1433 = vrcp.f32 %v857_v34 }
 0x65e   : > { %v1434_v35 = vpop.eup %1433 }
 0x65f   : > { %v859_v36 = vmul.f32 %v1434_v35, %v1432_v32 }
 0x661   : > { %v860_v18 = vpack.c.bf16 %v859_v36, %v859_v36 }
 0x663   : > { %1359 = vmatmul.mubr.msk.bf16.vlgmr.msra.gmra.mrb[16].mxu1 %vm482_vm2, %v860_v18 }
 0x664   : > { %1369 = vmatpush3.bf16.xpose.msra.mxu1 %v967_v38  ;;  %1370 = vmatprep.mubr.msk.bf16.mxu1 %vm1466_vm0, %v1465_v1 }
 0x665   : > { %1380 = vmatprep.subr.bf16.mxu1 %v1465_v1 }
 0x66b   : > { %1371 = vmatmul.mubr.msk.bf16.vlgmr.msra.gmra.mrb[20].mxu1 %vm482_vm2, %v960_v39 }
 0x66c   : > { %1382 = vmatprep.mubr.msk.bf16.mxu1 %vm1466_vm0, %v1465_v1 }
 0x736   : > { %v903_v42 = vpop.f32.mrb[16].mxu1 }
 0x737   : > { %v909_v43 = vpack.c.bf16 %v903_v42, %v903_v42  ;;  %v1360_v44 = vpop.f32.mrb[17].mxu1 }
 0x738   : > { %v906_v45 = vpop.f32.mrb[18].mxu1 }
 0x739   : > { %v1361_v46 = vpop.f32.mrb[19].mxu1  ;;  %1365 = vmatmul.mubr.msk.bf16.vlgmr.msra.gmra.mrb[20].mxu0 %vm482_vm2, %v909_v43 }
 0x73a   : > { %1376 = vmatprep.mubr.msk.bf16.mxu0 %vm1466_vm0, %v1465_v1  ;;  %v1261_v1 = vld [vmem:[%s1712_s5 + $0xc] sm:$0xf] }
 0x73b   : > { %v1076_v57 = vsel %vm547_vm3, %v1261_v1, 0 }
 0x73c   : > { %1381 = vmatpush3.bf16.msra.mxu1 %v1076_v57 }
 0x73e   : > { %v1003_v47 = vpop.f32.mrb[20].mxu1 }
 0x73f   : > { %v1372_v48 = vpop.f32.mrb[21].mxu1  ;;  %v1009_v49 = vsel %vm482_vm2, %v1003_v47, -inf }
 0x740   : > { %1010 = vmax.xlane.f32.xlu0 %v1009_v49  ;;  %v1006_v50 = vpop.f32.mrb[22].mxu1 }
 0x741   : > { %v1373_v51 = vpop.f32.mrb[23].mxu1 }
 0x7cd   : > { %v1011_v52 = vpop.xlane.xlu0 %1010 }
 0x7ce   : > { %v1012_v53 = vsub.f32 %v1003_v47, %v1011_v52 }
 0x7d0   : > { %v1013_v54 = vmul.f32 1.442695, %v1012_v53 }
 0x7d2   : > { %1435 = vpow2.f32 %v1013_v54 }
 0x7dc   : > { %v1436_v55 = vpop.eup %1435 }
 0x7dd   : > { %v1015_v56 = vsel %vm482_vm2, %v1436_v55, 0.0 }
 0x7de   : > { %1016 = vadd.xlane.f32.xlu1 %v1015_v56 }
 0x7ef   : > { %1021 = vrot.lane.b32.xlu1 %v1588_v13, %s1473_s25 }
 0x80c   : > { %v952_v58 = vpop.f32.mrb[20].mxu0 }
 0x80d   : > { %v958_v59 = vadd.f32 %v952_v58, %v1645_v17  ;;  %v1366_v60 = vpop.f32.mrb[21].mxu0 }
 0x80e   : > { %v955_v61 = vpop.f32.mrb[22].mxu0 }
 0x80f   : > { %v1367_v62 = vpop.f32.mrb[23].mxu0 }
 0x86b   : > { %v1017_v63 = vpop.xlane.xlu1 %1016 }
 0x86c   : > { %1437 = vrcp.f32 %v1017_v63 }
 0x86f   : > { %v1022_v0 = vpop.permute.xlu1 %1021 }
 0x870   : > { %v1027_v2 = vsel %vm547_vm3, %v1022_v0, 0 }
 0x871   : > { %1375 = vmatpush3.bf16.msra.mxu0 %v1027_v2 }
 0x876   : > { %v1438_v13 = vpop.eup %1437 }
 0x877   : > { %v1019_v3 = vmul.f32 %v1438_v13, %v1436_v55 }
 0x879   : > { %v1020_v4 = vpack.c.bf16 %v1019_v3, %v1019_v3 }
 0x87b   : > { %1377 = vmatmul.mubr.msk.bf16.vlgmr.msra.gmra.mrb[24].mxu0 %vm482_vm2, %v1020_v4 }
 0x94e   : > { %v1063_v6 = vpop.f32.mrb[24].mxu0 }
 0x94f   : > { %v1069_v7 = vpack.c.bf16 %v1063_v6, %v1063_v6  ;;  %v1378_v8 = vpop.f32.mrb[25].mxu0 }
 0x950   : > { %v1066_v9 = vpop.f32.mrb[26].mxu0 }
 0x951   : > { %v1379_v10 = vpop.f32.mrb[27].mxu0  ;;  %1383 = vmatmul.mubr.msk.bf16.vlgmr.msra.gmra.mrb[24].mxu1 %vm482_vm2, %v1069_v7 }
 0xa24   : > { %v1112_v11 = vpop.f32.mrb[24].mxu1 }
 0xa25   : > { %v1118_v14 = vadd.f32 %v1112_v11, %v958_v59  ;;  %v1384_v15 = vpop.f32.mrb[25].mxu1 }
 0xa26   : > { %v1115_v17 = vpop.f32.mrb[26].mxu1 }
 0xa27   : > { %v1126_v19 = vadd.f32 %v1263_v12, %v1118_v14  ;;  %v1385_v20 = vpop.f32.mrb[27].mxu1 }
 0xa29   : > { %v1128_v21 = vadd.f32 %v1127_v16, %v1126_v19 }
 0xa2b   : > { %v1131_v22 = vsel %vm373_vm1, %v1128_v21, 0.0 }
 0xa2c   : > { %1132 = vadd.xlane.f32.xlu1 %v1131_v22 }
 0xab9   : > { %v1133_v23 = vpop.xlane.xlu1 %1132 }
 0xaba   : > { %v1135_v24 = vmul.f32 0.03125, %v1133_v23 }
 0xabc   : > { %v1136_v25 = vsub.f32 %v1128_v21, %v1135_v24 }
 0xabe   : > { %v1137_v26 = vmul.f32 %v1136_v25, %v1136_v25 }
 0xac0   : > { %v1138_v27 = vsel %vm373_vm1, %v1137_v26, 0.0 }
 0xac1   : > { %1139 = vadd.xlane.f32.xlu0 %v1138_v27 }
 0xb4e   : > { %v1140_v28 = vpop.xlane.xlu0 %1139 }
 0xb4f   : > { %v1141_v29 = vmul.f32 0.03125, %v1140_v28 }
 0xb51   : > { %v1142_v30 = vadd.f32 1e-05, %v1141_v29 }
 0xb53   : > { %1439 = vrsqrt.f32 %v1142_v30 }
 0xb5d   : > { %v1440_v5 = vpop.eup %1439 }
 0xb5e   : > { %v1144_v32 = vmul.f32 %v1440_v5, %v1136_v25 }
 0xb60   : > { %v1151_v34 = vmul.f32 %v1264_v31, %v1144_v32 }
 0xb62   : > { %v1158_v35 = vadd.f32 %v1265_v33, %v1151_v34 }
 0xb64   : > { %v1159_v36 = vpack.c.bf16 %v1158_v35, %v1158_v35 }
 0xb66   : > { %1161 = vst.msk [vmem:[%s347_s19] sm:$0xf] %vm1160_vm4, %v1159_v36 }
 0xb67 PF: > { %s19_s11 = sadd.s32 1, %s1463_s11   ;;  %s1717_s30 = smov %s1459_s10 }
 0xb68   : > { %p16_p5 = scmp.ge.s32.totalorder %s19_s11, 4   ;;  %s1718_s10 = smov %s1720_s12 }
 0xb6a   :  { %18 = sbr.rel (!%p16_p5) target bundleno = 2 (0x2), region = 89 }

// kernel: transformer_model_forward.18
= control target key start
LH: loop header
LB: loop body
LE: loop exit
PB: predicated region body
PF: predicated region fallthrough
CT: control target
= control target key end

     0   :  { %s1604_s13 = smov 0   ;;  %s1606_s14 = smov 0   ;;  %s1787_s0 = inlined_call_operand.vmem [shape: bf16[2,8,32], index: 0, kind: input, shape index: {}]   ;;  %s1788_s1 = inlined_call_operand.vmem [shape: bf16[2,8,32], index: 1, kind: input, shape index: {}]   ;;  %s1789_s2 = inlined_call_operand.vmem [shape: bf16[32,32], index: 2, kind: input, shape index: {}]   ;;  %s1790_s3 = inlined_call_operand.vmem [shape: f32[1,32], index: 3, kind: input, shape index: {}]   ;;  %s1791_s4 = inlined_call_operand.vmem [shape: bf16[32,64], index: 4, kind: input, shape index: {}]   ;;  %s1792_s5 = inlined_call_operand.vmem [shape: f32[1,64], index: 5, kind: input, shape index: {}]   ;;  %s1793_s6 = inlined_call_operand.vmem [shape: bf16[4,8,32], index: 6, kind: input, shape index: {}]   ;;  %s1794_s7 = inlined_call_operand.vmem [shape: f32[1,32], index: 7, kind: input, shape index: {}]   ;;  %s1795_s8 = inlined_call_operand.vmem [shape: f32[1,32], index: 8, kind: input, shape index: {}]   ;;  %s1796_s9 = inlined_call_operand.vmem [shape: f32[1,32], index: 9, kind: input, shape index: {}]   ;;  %s1797_s10 = inlined_call_operand.vmem [shape: bf16[2,8,32], index: 10, kind: output, shape index: {}]  }
   0x1   :  { %s1608_s15 = smov 0  }
   0x2 LB: > { %s32_s16 = sadd.s32 1, %s1534_s14  ;;  %p1311_p0 = scmp.ge.s32.totalorder %s1538_s15, 1  ;;  %s1538_s15 = sphi %s1608_s15, %s20_s15   ;;  %s1534_s14 = sphi %s1606_s14, %s1799_s14   ;;  %s1530_s13 = sphi %s1604_s13, %s1798_s13  }
   0x3   : > { %p34_p1 = scmp.ge.s32.totalorder %s32_s16, 2  ;;  %p339_p2 = scmp.lt.s32.totalorder %s1538_s15, 3 }
   0x5   : > { %s1801_s16 = smov (%p34_p1, %s32_s16), 0  ;;  %p340_p3 = pnand %p1311_p0, %p339_p2 }
   0x6   : > { %v1494_v0 = vld [vmem:[%s1791_s4] sm:$0xff] (!%p340_p3)   ;;  %v1540_v1 = vmov (!%p340_p3), 0.0   ;;  %v1495_v2 = vld [vmem:[%s1791_s4 + $0x8] sm:$0xff] (!%p340_p3)   ;;  %vm1541_vm0 = vmmov (!%p340_p3), 0   ;;  %p385_p4 = scmp.lt.s32.totalorder (!%p340_p3), %s1530_s13, 1  ;;  %vm429_vm1 = vcmask (!%p340_p3), 261120  }
   0x7   : > { %343 = sbr.rel (%p340_p3) target bundleno = 2919 (0xb67), region = 60  ;;  %1381 = vmatprep.subr.bf16.mxu1 (!%p340_p3), %v1540_v1  ;;  %1373 = vmatprep.subr.bf16.mxu0 (!%p340_p3), %v1540_v1  ;;  %v1496_v3 = vld [vmem:[%s1789_s2] sm:$0xff] (!%p340_p3)   ;;  %v1497_v4 = vld [vmem:[%s1789_s2 + $0x8] sm:$0xff] (!%p340_p3)   ;;  %vm541_vm2 = vcmask (!%p340_p3), 64512   ;;  %s1542_s19 = smov (!%p340_p3), 120   ;;  %vm606_vm3 = vcmask (!%p340_p3), 1043456  }
   0x8   : > { %1382 = vmatpush3.bf16.msra.mxu1 (!%p340_p3), %v1494_v0  ;;  %1385 = vmatprep.mubr.msk.bf16.mxu1 (!%p340_p3), %vm1541_vm0, %v1540_v1  ;;  %v1319_v7 = vld [vmem:[%s1792_s5] ss:$0 sm:$0xff] (!%p340_p3)  ;;  %s1543_s20 = smov (!%p340_p3), 96   ;;  %s1544_s21 = smov (!%p340_p3), 88   ;;  %v1327_v51 = vld [vmem:[%s1793_s6 + $0x4] sm:$0xf] (!%p340_p3) }
   0x9   : > { %1383 = vmatprep.subr.bf16.mxu1 (!%p340_p3), %v1540_v1  ;;  %1377 = vmatprep.mubr.msk.bf16.mxu0 (!%p340_p3), %vm1541_vm0, %v1540_v1  ;;  %v1315_v9 = vld [vmem:[%s1790_s3] ss:$0 sm:$0xff] (!%p340_p3)  ;;  %s1545_s22 = smov (!%p340_p3), 112   ;;  %v770_v52 = vsel (!%p340_p3), %vm606_vm3, %v1327_v51, 0  ;;  %s1547_s29 = smov (!%p340_p3), 104   ;;  %vm1219_vm4 = vcmask (!%p340_p3), 257024  }
   0xa   : > { %1374 = vmatpush3.bf16.msra.mxu0 (!%p340_p3), %v1496_v3  ;;  %v651_v57 = vld [vmem:[%s1793_s6] sm:$0xf] (!%p340_p3)  ;;  %s1548_s12 = smov (!%p340_p3), 72  }
   0xb   : > { %1375 = vmatprep.subr.bf16.mxu0 (!%p340_p3), %v1540_v1  ;;  %v816_v60 = vsel (!%p340_p3), %vm606_vm3, %v651_v57, 0 }
   0xc   : > { %1384 = vmatpush3.bf16.msra.mxu1 (!%p340_p3), %v1495_v2 }
   0xd   : > { %1395 = vmatprep.subr.bf16.mxu1 (!%p340_p3), %v1540_v1 }
   0xe   : > { %s1803_s13 = smov (!%p385_p4, %s1530_s13), 1  ;;  %1376 = vmatpush3.bf16.msra.mxu0 %v1497_v4 }
   0xf   : > { %s1642_s25 = sshll.u32 %s1803_s13, 2  ;;  %1389 = vmatprep.subr.bf16.mxu0 %v1540_v1 }
  0x10   : > { %s395_s28 = scalar_lea.vmem %s1788_s1, %s1642_s25  ;;  %s391_s11 = scalar_lea.vmem %s1787_s0, %s1642_s25 }
  0x11   : > { %v405_v5 = vld [vmem:[%s395_s28] sm:$0xf]  ;;  %s1546_s28 = smov 80   ;;  %s402_s27 = scalar_lea.vmem %s1797_s10, %s1642_s25 }
  0x12   : > { %1386 = vmatmul.mubr.msk.bf16.vlgmr.msra.gmra.mrb[0].mxu1 %vm429_vm1, %v405_v5  ;;  %v1654_v6 = vld [vmem:[%s391_s11] sm:$0xf] }
  0x13   : > { %1397 = vmatprep.mubr.msk.bf16.mxu1 %vm1541_vm0, %v1540_v1  ;;  %1378 = vmatmul.mubr.msk.bf16.vlgmr.msra.gmra.mrb[0].mxu0 %vm429_vm1, %v1654_v6 }
  0x14   : > { %1391 = vmatprep.mubr.msk.bf16.mxu0 %vm1541_vm0, %v1540_v1 }
  0xe5   : > { %v533_v8 = vpop.f32.mrb[0].mxu1 }
  0xe6   : > { %v534_v10 = vadd.f32 %v1319_v7, %v533_v8  ;;  %v1387_v11 = vpop.f32.mrb[1].mxu1  ;;  %v467_v13 = vpop.f32.mrb[0].mxu0 }
  0xe7   : > { %v536_v12 = vpop.f32.mrb[2].mxu1  ;;  %v468_v16 = vadd.f32 %v1315_v9, %v467_v13  ;;  %v1379_v17 = vpop.f32.mrb[1].mxu0 }
  0xe8   : > { %v1669_v14 = vpack.c.bf16 %v534_v10, %v534_v10  ;;  %v1388_v15 = vpop.f32.mrb[3].mxu1  ;;  %v470_v18 = vpop.f32.mrb[2].mxu0 }
  0xe9   : > { %v1672_v19 = vpack.c.bf16 %v468_v16, %v468_v16  ;;  %v1380_v21 = vpop.f32.mrb[3].mxu0 }
  0xea   : > { %655 = vrot.lane.b32.xlu0 %v1669_v14, %s1542_s19  ;;  %v546_v20 = vsel %vm541_vm2, %v1669_v14, 0 }
  0xeb   : > { %1390 = vmatpush3.bf16.xpose.msra.mxu0 %v546_v20 }
  0xec   : > { %1401 = vmatprep.subr.bf16.mxu0 %v1540_v1 }
  0xee   : > { %653 = vrot.lane.b32.xlu0 %v1672_v19, %s1542_s19 }
  0xf2   : > { %1392 = vmatmul.mubr.msk.bf16.vlgmr.msra.gmra.mrb[4].mxu0 %vm541_vm2, %v1672_v19 }
  0xf3   : > { %1403 = vmatprep.mubr.msk.bf16.mxu0 %vm1541_vm0, %v1540_v1 }
 0x15c   : > { %v656_v22 = vpop.permute.xlu0 %655 }
 0x15d   : > { %v661_v23 = vsel %vm541_vm2, %v656_v22, 0 }
 0x15e   : > { %1402 = vmatpush3.bf16.xpose.msra.mxu0 %v661_v23 }
 0x15f   : > { %1413 = vmatprep.subr.bf16.mxu0 %v1540_v1 }
 0x160   : > { %v654_v24 = vpop.permute.xlu0 %653 }
 0x165   : > { %1404 = vmatmul.mubr.msk.bf16.vlgmr.msra.gmra.mrb[8].mxu0 %vm541_vm2, %v654_v24 }
 0x166   : > { %1415 = vmatprep.mubr.msk.bf16.mxu0 %vm1541_vm0, %v1540_v1  ;;  %1414 = vmatpush3.bf16.msra.mxu0 %v770_v52 }
 0x167   : > { %1425 = vmatprep.subr.bf16.mxu0 %v1540_v1 }
 0x1c5   : > { %v582_v25 = vpop.f32.mrb[4].mxu0 }
 0x1c6   : > { %v1393_v26 = vpop.f32.mrb[5].mxu0  ;;  %v588_v27 = vsel %vm541_vm2, %v582_v25, -inf }
 0x1c7   : > { %589 = vmax.xlane.f32.xlu1 %v588_v27  ;;  %v585_v28 = vpop.f32.mrb[6].mxu0 }
 0x1c8   : > { %v1394_v29 = vpop.f32.mrb[7].mxu0 }
 0x238   : > { %v697_v30 = vpop.f32.mrb[8].mxu0 }
 0x239   : > { %v1405_v31 = vpop.f32.mrb[9].mxu0  ;;  %v703_v32 = vsel %vm541_vm2, %v697_v30, -inf }
 0x23a   : > { %704 = vmax.xlane.f32.xlu1 %v703_v32  ;;  %v700_v33 = vpop.f32.mrb[10].mxu0 }
 0x23b   : > { %v1406_v34 = vpop.f32.mrb[11].mxu0 }
 0x24b   : > { %601 = vrot.lane.b32.xlu1 %v1669_v14, %s1543_s20 }
 0x254   : > { %v590_v35 = vpop.xlane.xlu1 %589 }
 0x255   : > { %v591_v36 = vsub.f32 %v582_v25, %v590_v35 }
 0x257   : > { %v592_v37 = vmul.f32 1.442695, %v591_v36 }
 0x259   : > { %1498 = vpow2.f32 %v592_v37 }
 0x263   : > { %v1499_v38 = vpop.eup %1498 }
 0x264   : > { %v594_v39 = vsel %vm541_vm2, %v1499_v38, 0.0 }
 0x265   : > { %595 = vadd.xlane.f32.xlu0 %v594_v39 }
 0x2c7   : > { %v705_v40 = vpop.xlane.xlu1 %704 }
 0x2c8   : > { %v706_v41 = vsub.f32 %v697_v30, %v705_v40 }
 0x2ca   : > { %v707_v42 = vmul.f32 1.442695, %v706_v41  ;;  %v1332_v41 = vld [vmem:[%s1793_s6 + $0x8] sm:$0xf] }
 0x2cb   : > { %v602_v43 = vpop.permute.xlu1 %601 }
 0x2cc   : > { %1500 = vpow2.f32 %v707_v42  ;;  %v608_v44 = vsel %vm606_vm3, %v602_v43, 0  ;;  %v975_v42 = vsel %vm606_vm3, %v1332_v41, 0 }
 0x2cd   : > { %1396 = vmatpush3.bf16.msra.mxu1 %v608_v44 }
 0x2ce   : > { %1407 = vmatprep.subr.bf16.mxu1 %v1540_v1 }
 0x2d6   : > { %v1501_v45 = vpop.eup %1500 }
 0x2d7   : > { %v709_v46 = vsel %vm541_vm2, %v1501_v45, 0.0 }
 0x2d8   : > { %710 = vadd.xlane.f32.xlu1 %v709_v46 }
 0x2e9   : > { %715 = vrot.lane.b32.xlu1 %v1669_v14, %s1544_s21 }
 0x2ed   : > { %860 = vrot.lane.b32.xlu1 %v1669_v14, %s1545_s22 }
 0x2f1   : > { %858 = vrot.lane.b32.xlu1 %v1672_v19, %s1545_s22 }
 0x2f2   : > { %v596_v47 = vpop.xlane.xlu0 %595 }
 0x2f3   : > { %1502 = vrcp.f32 %v596_v47 }
 0x2fd   : > { %v1503_v48 = vpop.eup %1502 }
 0x2fe   : > { %v598_v49 = vmul.f32 %v1503_v48, %v1499_v38 }
 0x300   : > { %v599_v50 = vpack.c.bf16 %v598_v49, %v598_v49 }
 0x302   : > { %1398 = vmatmul.mubr.msk.bf16.vlgmr.msra.gmra.mrb[4].mxu1 %vm541_vm2, %v599_v50 }
 0x303   : > { %1409 = vmatprep.mubr.msk.bf16.mxu1 %vm1541_vm0, %v1540_v1 }
 0x365   : > { %v711_v53 = vpop.xlane.xlu1 %710 }
 0x366   : > { %1504 = vrcp.f32 %v711_v53 }
 0x369   : > { %v716_v54 = vpop.permute.xlu1 %715 }
 0x36a   : > { %v721_v55 = vsel %vm606_vm3, %v716_v54, 0 }
 0x36b   : > { %1408 = vmatpush3.bf16.msra.mxu1 %v721_v55 }
 0x36c   : > { %1419 = vmatprep.subr.bf16.mxu1 %v1540_v1 }
 0x36d   : > { %v861_v3 = vpop.permute.xlu1 %860 }
 0x36e   : > { %v866_v9 = vsel %vm541_vm2, %v861_v3, 0 }
 0x370   : > { %v1505_v56 = vpop.eup %1504 }
 0x371   : > { %v713_v58 = vmul.f32 %v1505_v56, %v1501_v45  ;;  %v859_v11 = vpop.permute.xlu1 %858 }
 0x373   : > { %v714_v59 = vpack.c.bf16 %v713_v58, %v713_v58 }
 0x375   : > { %1410 = vmatmul.mubr.msk.bf16.vlgmr.msra.gmra.mrb[8].mxu1 %vm541_vm2, %v714_v59 }
 0x376   : > { %1420 = vmatpush3.bf16.msra.mxu1 %v816_v60  ;;  %1421 = vmatprep.mubr.msk.bf16.mxu1 %vm1541_vm0, %v1540_v1 }
 0x377   : > { %1431 = vmatprep.subr.bf16.mxu1 %v1540_v1 }
 0x3d5   : > { %v644_v61 = vpop.f32.mrb[4].mxu1 }
 0x3d6   : > { %v650_v62 = vpack.c.bf16 %v644_v61, %v644_v61  ;;  %v1399_v63 = vpop.f32.mrb[5].mxu1 }
 0x3d7   : > { %v647_v0 = vpop.f32.mrb[6].mxu1 }
 0x3d8   : > { %v1400_v2 = vpop.f32.mrb[7].mxu1  ;;  %1422 = vmatmul.mubr.msk.bf16.vlgmr.msra.gmra.mrb[12].mxu1 %vm541_vm2, %v650_v62 }
 0x3d9   : > { %1433 = vmatprep.mubr.msk.bf16.mxu1 %vm1541_vm0, %v1540_v1 }
 0x448   : > { %v757_v4 = vpop.f32.mrb[8].mxu1 }
 0x449   : > { %v763_v5 = vpack.c.bf16 %v757_v4, %v757_v4  ;;  %v1411_v7 = vpop.f32.mrb[9].mxu1 }
 0x44a   : > { %v760_v8 = vpop.f32.mrb[10].mxu1 }
 0x44b   : > { %v1412_v10 = vpop.f32.mrb[11].mxu1  ;;  %1416 = vmatmul.mubr.msk.bf16.vlgmr.msra.gmra.mrb[12].mxu0 %vm541_vm2, %v763_v5 }
 0x44c   : > { %1426 = vmatpush3.bf16.xpose.msra.mxu0 %v866_v9  ;;  %1427 = vmatprep.mubr.msk.bf16.mxu0 %vm1541_vm0, %v1540_v1 }
 0x44d   : > { %1437 = vmatprep.subr.bf16.mxu0 %v1540_v1 }
 0x453   : > { %1428 = vmatmul.mubr.msk.bf16.vlgmr.msra.gmra.mrb[16].mxu0 %vm541_vm2, %v859_v11 }
 0x454   : > { %1439 = vmatprep.mubr.msk.bf16.mxu0 %vm1541_vm0, %v1540_v1  ;;  %1438 = vmatpush3.bf16.msra.mxu0 %v975_v42 }
 0x455   : > { %1449 = vmatprep.subr.bf16.mxu0 %v1540_v1 }
 0x4ab   : > { %v852_v12 = vpop.f32.mrb[12].mxu1 }
 0x4ac   : > { %v1423_v13 = vpop.f32.mrb[13].mxu1 }
 0x4ad   : > { %v855_v15 = vpop.f32.mrb[14].mxu1  ;;  %v1338_v13 = vld [vmem:[%s1794_s7] ss:$0 sm:$0xff] }
 0x4ae   : > { %v1424_v16 = vpop.f32.mrb[15].mxu1 }
 0x51e   : > { %v806_v17 = vpop.f32.mrb[12].mxu0 }
 0x51f   : > { %v1726_v18 = vadd.f32 %v852_v12, %v806_v17  ;;  %v1417_v20 = vpop.f32.mrb[13].mxu0  ;;  %v1186_v17 = vunpack.c.l.bf16 %v1654_v6 }
 0x520   : > { %v809_v21 = vpop.f32.mrb[14].mxu0 }
 0x521   : > { %v1418_v22 = vpop.f32.mrb[15].mxu0 }
 0x526   : > { %v902_v23 = vpop.f32.mrb[16].mxu0 }
 0x527   : > { %v1429_v24 = vpop.f32.mrb[17].mxu0  ;;  %v908_v25 = vsel %vm541_vm2, %v902_v23, -inf }
 0x528   : > { %909 = vmax.xlane.f32.xlu0 %v908_v25  ;;  %v905_v26 = vpop.f32.mrb[18].mxu0 }
 0x529   : > { %v1430_v27 = vpop.f32.mrb[19].mxu0 }
 0x53e   : > { %920 = vrot.lane.b32.xlu0 %v1669_v14, %s1546_s28 }
 0x542   : > { %1020 = vrot.lane.b32.xlu0 %v1669_v14, %s1547_s29 }
 0x546   : > { %1018 = vrot.lane.b32.xlu0 %v1672_v19, %s1547_s29 }
 0x5b5   : > { %v910_v28 = vpop.xlane.xlu0 %909 }
 0x5b6   : > { %v911_v29 = vsub.f32 %v902_v23, %v910_v28 }
 0x5b8   : > { %v912_v30 = vmul.f32 1.442695, %v911_v29 }
 0x5b9   : > { %v921_v31 = vpop.permute.xlu0 %920 }
 0x5ba   : > { %1506 = vpow2.f32 %v912_v30  ;;  %v926_v32 = vsel %vm606_vm3, %v921_v31, 0 }
 0x5bb   : > { %1432 = vmatpush3.bf16.msra.mxu1 %v926_v32  ;;  %v1339_v32 = vld [vmem:[%s1795_s8] ss:$0 sm:$0xff] }
 0x5bc   : > { %1443 = vmatprep.subr.bf16.mxu1 %v1540_v1 }
 0x5bd   : > { %v1021_v38 = vpop.permute.xlu0 %1020 }
 0x5be   : > { %v1026_v39 = vsel %vm541_vm2, %v1021_v38, 0 }
 0x5c1   : > { %v1019_v40 = vpop.permute.xlu0 %1018 }
 0x5c4   : > { %v1507_v33 = vpop.eup %1506 }
 0x5c5   : > { %v914_v34 = vsel %vm541_vm2, %v1507_v33, 0.0 }
 0x5c6   : > { %915 = vadd.xlane.f32.xlu1 %v914_v34  ;;  %v1340_v34 = vld [vmem:[%s1796_s9] ss:$0 sm:$0xff] }
 0x653   : > { %v916_v35 = vpop.xlane.xlu1 %915 }
 0x654   : > { %1508 = vrcp.f32 %v916_v35 }
 0x65e   : > { %v1509_v36 = vpop.eup %1508 }
 0x65f   : > { %v918_v37 = vmul.f32 %v1509_v36, %v1507_v33 }
 0x661   : > { %v919_v19 = vpack.c.bf16 %v918_v37, %v918_v37 }
 0x663   : > { %1434 = vmatmul.mubr.msk.bf16.vlgmr.msra.gmra.mrb[16].mxu1 %vm541_vm2, %v919_v19 }
 0x664   : > { %1444 = vmatpush3.bf16.xpose.msra.mxu1 %v1026_v39  ;;  %1445 = vmatprep.mubr.msk.bf16.mxu1 %vm1541_vm0, %v1540_v1 }
 0x665   : > { %1455 = vmatprep.subr.bf16.mxu1 %v1540_v1 }
 0x66b   : > { %1446 = vmatmul.mubr.msk.bf16.vlgmr.msra.gmra.mrb[20].mxu1 %vm541_vm2, %v1019_v40 }
 0x66c   : > { %1457 = vmatprep.mubr.msk.bf16.mxu1 %vm1541_vm0, %v1540_v1 }
 0x736   : > { %v962_v43 = vpop.f32.mrb[16].mxu1 }
 0x737   : > { %v968_v44 = vpack.c.bf16 %v962_v43, %v962_v43  ;;  %v1435_v45 = vpop.f32.mrb[17].mxu1 }
 0x738   : > { %v965_v46 = vpop.f32.mrb[18].mxu1 }
 0x739   : > { %v1436_v47 = vpop.f32.mrb[19].mxu1  ;;  %1440 = vmatmul.mubr.msk.bf16.vlgmr.msra.gmra.mrb[20].mxu0 %vm541_vm2, %v968_v44 }
 0x73a   : > { %1451 = vmatprep.mubr.msk.bf16.mxu0 %vm1541_vm0, %v1540_v1  ;;  %v1336_v1 = vld [vmem:[%s1793_s6 + $0xc] sm:$0xf] }
 0x73b   : > { %v1135_v58 = vsel %vm606_vm3, %v1336_v1, 0 }
 0x73c   : > { %1456 = vmatpush3.bf16.msra.mxu1 %v1135_v58 }
 0x73e   : > { %v1062_v48 = vpop.f32.mrb[20].mxu1 }
 0x73f   : > { %v1447_v49 = vpop.f32.mrb[21].mxu1  ;;  %v1068_v50 = vsel %vm541_vm2, %v1062_v48, -inf }
 0x740   : > { %1069 = vmax.xlane.f32.xlu0 %v1068_v50  ;;  %v1065_v51 = vpop.f32.mrb[22].mxu1 }
 0x741   : > { %v1448_v52 = vpop.f32.mrb[23].mxu1 }
 0x7cd   : > { %v1070_v53 = vpop.xlane.xlu0 %1069 }
 0x7ce   : > { %v1071_v54 = vsub.f32 %v1062_v48, %v1070_v53 }
 0x7d0   : > { %v1072_v55 = vmul.f32 1.442695, %v1071_v54 }
 0x7d2   : > { %1510 = vpow2.f32 %v1072_v55 }
 0x7dc   : > { %v1511_v56 = vpop.eup %1510 }
 0x7dd   : > { %v1074_v57 = vsel %vm541_vm2, %v1511_v56, 0.0 }
 0x7de   : > { %1075 = vadd.xlane.f32.xlu1 %v1074_v57 }
 0x7ef   : > { %1080 = vrot.lane.b32.xlu1 %v1669_v14, %s1548_s12 }
 0x80c   : > { %v1011_v59 = vpop.f32.mrb[20].mxu0 }
 0x80d   : > { %v1017_v60 = vadd.f32 %v1011_v59, %v1726_v18  ;;  %v1441_v61 = vpop.f32.mrb[21].mxu0 }
 0x80e   : > { %v1014_v62 = vpop.f32.mrb[22].mxu0 }
 0x80f   : > { %v1442_v63 = vpop.f32.mrb[23].mxu0 }
 0x86b   : > { %v1076_v0 = vpop.xlane.xlu1 %1075 }
 0x86c   : > { %1512 = vrcp.f32 %v1076_v0 }
 0x86f   : > { %v1081_v2 = vpop.permute.xlu1 %1080 }
 0x870   : > { %v1086_v3 = vsel %vm606_vm3, %v1081_v2, 0 }
 0x871   : > { %1450 = vmatpush3.bf16.msra.mxu0 %v1086_v3 }
 0x876   : > { %v1513_v14 = vpop.eup %1512 }
 0x877   : > { %v1078_v4 = vmul.f32 %v1513_v14, %v1511_v56 }
 0x879   : > { %v1079_v5 = vpack.c.bf16 %v1078_v4, %v1078_v4 }
 0x87b   : > { %1452 = vmatmul.mubr.msk.bf16.vlgmr.msra.gmra.mrb[24].mxu0 %vm541_vm2, %v1079_v5 }
 0x94e   : > { %v1122_v7 = vpop.f32.mrb[24].mxu0 }
 0x94f   : > { %v1128_v8 = vpack.c.bf16 %v1122_v7, %v1122_v7  ;;  %v1453_v9 = vpop.f32.mrb[25].mxu0 }
 0x950   : > { %v1125_v10 = vpop.f32.mrb[26].mxu0 }
 0x951   : > { %v1454_v11 = vpop.f32.mrb[27].mxu0  ;;  %1458 = vmatmul.mubr.msk.bf16.vlgmr.msra.gmra.mrb[24].mxu1 %vm541_vm2, %v1128_v8 }
 0xa24   : > { %v1171_v12 = vpop.f32.mrb[24].mxu1 }
 0xa25   : > { %v1177_v15 = vadd.f32 %v1171_v12, %v1017_v60  ;;  %v1459_v16 = vpop.f32.mrb[25].mxu1 }
 0xa26   : > { %v1174_v18 = vpop.f32.mrb[26].mxu1 }
 0xa27   : > { %v1185_v20 = vadd.f32 %v1338_v13, %v1177_v15  ;;  %v1460_v21 = vpop.f32.mrb[27].mxu1 }
 0xa29   : > { %v1187_v22 = vadd.f32 %v1186_v17, %v1185_v20 }
 0xa2b   : > { %v1190_v23 = vsel %vm429_vm1, %v1187_v22, 0.0 }
 0xa2c   : > { %1191 = vadd.xlane.f32.xlu1 %v1190_v23 }
 0xab9   : > { %v1192_v24 = vpop.xlane.xlu1 %1191 }
 0xaba   : > { %v1194_v25 = vmul.f32 0.03125, %v1192_v24 }
 0xabc   : > { %v1195_v26 = vsub.f32 %v1187_v22, %v1194_v25 }
 0xabe   : > { %v1196_v27 = vmul.f32 %v1195_v26, %v1195_v26 }
 0xac0   : > { %v1197_v28 = vsel %vm429_vm1, %v1196_v27, 0.0 }
 0xac1   : > { %1198 = vadd.xlane.f32.xlu0 %v1197_v28 }
 0xb4e   : > { %v1199_v29 = vpop.xlane.xlu0 %1198 }
 0xb4f   : > { %v1200_v30 = vmul.f32 0.03125, %v1199_v29 }
 0xb51   : > { %v1201_v31 = vadd.f32 1e-05, %v1200_v30 }
 0xb53   : > { %1514 = vrsqrt.f32 %v1201_v31 }
 0xb5d   : > { %v1515_v6 = vpop.eup %1514 }
 0xb5e   : > { %v1203_v33 = vmul.f32 %v1515_v6, %v1195_v26 }
 0xb60   : > { %v1210_v35 = vmul.f32 %v1339_v32, %v1203_v33 }
 0xb62   : > { %v1217_v36 = vadd.f32 %v1340_v34, %v1210_v35 }
 0xb64   : > { %v1218_v37 = vpack.c.bf16 %v1217_v36, %v1217_v36 }
 0xb66   : > { %1220 = vst.msk [vmem:[%s402_s27] sm:$0xf] %vm1219_vm4, %v1218_v37 }
 0xb67 PF: > { %s20_s15 = sadd.s32 1, %s1538_s15   ;;  %s1798_s13 = smov %s1534_s14 }
 0xb68   : > { %p17_p5 = scmp.ge.s32.totalorder %s20_s15, 4   ;;  %s1799_s14 = smov %s1801_s16 }
 0xb6a   :  { %19 = sbr.rel (!%p17_p5) target bundleno = 2 (0x2), region = 96 }

// kernel: transformer_model_forward.16
= control target key start
LH: loop header
LB: loop body
LE: loop exit
PB: predicated region body
PF: predicated region fallthrough
CT: control target
= control target key end

     0   :  { %s2127_s30 = smov 0   ;;  %s2129_s10 = smov 0   ;;  %s2354_s0 = inlined_call_operand.vmem [shape: bf16[16,32], index: 0, kind: input, shape index: {}]   ;;  %s2355_s1 = inlined_call_operand.vmem [shape: bf16[32,2048], index: 1, kind: input, shape index: {}]   ;;  %s2356_s2 = inlined_call_operand.vmem [shape: f32[1,2048], index: 2, kind: input, shape index: {}]   ;;  %s2357_s3 = inlined_call_operand.vmem [shape: bf16[2048,32], index: 3, kind: input, shape index: {}]   ;;  %s2358_s4 = inlined_call_operand.vmem [shape: f32[1,32], index: 4, kind: input, shape index: {}]   ;;  %s2359_s5 = inlined_call_operand.vmem [shape: f32[1,32], index: 5, kind: input, shape index: {}]   ;;  %s2360_s6 = inlined_call_operand.vmem [shape: f32[1,32], index: 6, kind: input, shape index: {}]   ;;  %s2361_s7 = inlined_call_operand.vmem [shape: f32[1,32], index: 7, kind: input, shape index: {}]   ;;  %s2362_s8 = inlined_call_operand.vmem [shape: f32[1,32], index: 8, kind: input, shape index: {}]   ;;  %s2363_s9 = inlined_call_operand.vmem [shape: bf16[16,32], index: 9, kind: output, shape index: {}]  }
   0x1   :  { %s2131_s11 = smov 0   ;;  %s2133_s12 = smov 0  }
   0x2   :  { %s2135_s13 = smov 0  }
   0x3 LB: > { %s28_s14 = sadd.s32 1, %s2069_s12  ;;  %p71_p1 = scmp.ne.s32.totalorder %s2061_s10, %s2057_s30  ;;  %s2073_s13 = sphi %s2135_s13, %s19_s13   ;;  %s2069_s12 = sphi %s2133_s12, %s2367_s12   ;;  %s2065_s11 = sphi %s2131_s11, %s2366_s11   ;;  %s2061_s10 = sphi %s2129_s10, %s2365_s10   ;;  %s2057_s30 = sphi %s2127_s30, %s2364_s30  }
   0x4   : > { %p29_p0 = scmp.ge.s32.totalorder %s28_s14, 2  ;;  %p72_p2 = scmp.eq.s32.totalorder %s2073_s13, 0 }
   0x5   : > { %s64_s16 = sadd.s32 1, %s2061_s10  ;;  %p1721_p5 = scmp.ge.s32.totalorder %s2073_s13, 2 }
   0x6   : > { %s2369_s14 = smov (%p29_p0, %s28_s14), 0  ;;  %p73_p3 = por %p72_p2, %p71_p1 }
   0x7   : > { %s61_s15 = ssub.s32 %s2069_s12, %s2369_s14  ;;  %304 = sbr.rel (%p1721_p5) target bundleno = 26 (0x1a), region = 40 }
   0x8   : > { %p62_p4 = scmp.eq.s32.totalorder %s61_s15, 0 }
   0xa   : > { %s2162_s17 = scalar_select %p62_p4, %s2061_s10, %s64_s16  }
   0xe   : > { %307 = sbr.rel (!%p73_p3) target bundleno = 26 (0x1a), region = 44  ;;  %s309_s18 = sand.u32 (%p73_p3), 1, %s2061_s10  }
   0xf   : > { %s1828_s19 = sshll.u32 (%p73_p3), %s2069_s12, 5  ;;  %s1722_s20 = sshll.u32 (%p73_p3), %s309_s18, 7 }
  0x10   : > { %s2170_s23 = scalar_lea.vmem (%p73_p3), %s2355_s1, %s1828_s19  ;;  %s311_s24 = scalar_lea.vmem (%p73_p3), [#allocation3], %s1722_s20 }
  0x11   : > { %v327_v0 = vld [vmem:[%s2170_s23] sm:$0xff] (%p73_p3)  ;;  %v329_v1 = vld [vmem:[%s2170_s23 + $0x8] sm:$0xff] (%p73_p3)  ;;  %v331_v2 = vld [vmem:[%s2170_s23 + $0x10] sm:$0xff] (%p73_p3) }
  0x12   : > { %328 = vst [vmem:[%s311_s24] sm:$0xff] (%p73_p3), %v327_v0  ;;  %330 = vst [vmem:[%s311_s24 + $0x8] sm:$0xff] (%p73_p3), %v329_v1  ;;  %v333_v3 = vld [vmem:[%s2170_s23 + $0x18] sm:$0xff] (%p73_p3)  ;;  %v335_v4 = vld [vmem:[%s2170_s23 + $0x40] sm:$0xff] (%p73_p3) }
  0x13   : > { %332 = vst [vmem:[%s311_s24 + $0x10] sm:$0xff] (%p73_p3), %v331_v2  ;;  %v337_v5 = vld [vmem:[%s2170_s23 + $0x48] sm:$0xff] (%p73_p3)  ;;  %334 = vst [vmem:[%s311_s24 + $0x18] sm:$0xff] (%p73_p3), %v333_v3  ;;  %v339_v6 = vld [vmem:[%s2170_s23 + $0x50] sm:$0xff] (%p73_p3) }
  0x14   : > { %336 = vst [vmem:[%s311_s24 + $0x20] sm:$0xff] (%p73_p3), %v335_v4  ;;  %338 = vst [vmem:[%s311_s24 + $0x28] sm:$0xff] (%p73_p3), %v337_v5  ;;  %v341_v7 = vld [vmem:[%s2170_s23 + $0x58] sm:$0xff] (%p73_p3)  ;;  %v343_v8 = vld [vmem:[%s2170_s23 + $0x80] sm:$0xff] (%p73_p3) }
  0x15   : > { %340 = vst [vmem:[%s311_s24 + $0x30] sm:$0xff] %v339_v6  ;;  %342 = vst [vmem:[%s311_s24 + $0x38] sm:$0xff] %v341_v7  ;;  %v345_v9 = vld [vmem:[%s2170_s23 + $0x88] sm:$0xff]  ;;  %v347_v10 = vld [vmem:[%s2170_s23 + $0x90] sm:$0xff] }
  0x16   : > { %344 = vst [vmem:[%s311_s24 + $0x40] sm:$0xff] %v343_v8  ;;  %v349_v11 = vld [vmem:[%s2170_s23 + $0x98] sm:$0xff]  ;;  %346 = vst [vmem:[%s311_s24 + $0x48] sm:$0xff] %v345_v9  ;;  %v351_v12 = vld [vmem:[%s2170_s23 + $0xc0] sm:$0xff] }
  0x17   : > { %348 = vst [vmem:[%s311_s24 + $0x50] sm:$0xff] %v347_v10  ;;  %350 = vst [vmem:[%s311_s24 + $0x58] sm:$0xff] %v349_v11  ;;  %v353_v13 = vld [vmem:[%s2170_s23 + $0xc8] sm:$0xff]  ;;  %v355_v14 = vld [vmem:[%s2170_s23 + $0xd0] sm:$0xff] }
  0x18   : > { %352 = vst [vmem:[%s311_s24 + $0x60] sm:$0xff] %v351_v12  ;;  %354 = vst [vmem:[%s311_s24 + $0x68] sm:$0xff] %v353_v13  ;;  %v357_v15 = vld [vmem:[%s2170_s23 + $0xd8] sm:$0xff] }
  0x19   : > { %356 = vst [vmem:[%s311_s24 + $0x70] sm:$0xff] %v355_v14  ;;  %358 = vst [vmem:[%s311_s24 + $0x78] sm:$0xff] %v357_v15 }
  0x1a PF: > { %p1725_p6 = scmp.ge.s32.totalorder %s2073_s13, 1  ;;  %p380_p7 = scmp.lt.s32.totalorder %s2073_s13, 3 }
  0x1c   : > { %p381_p8 = pnand %p1725_p6, %p380_p7 }
  0x1d   : > { %s387_s25 = sand.u32 (!%p381_p8), 1, %s2057_s30   ;;  %s1727_s26 = sshll.u32 (!%p381_p8), %s2065_s11, 3 }
  0x1e   : > { %384 = sbr.rel (%p381_p8) target bundleno = 1178 (0x49a), region = 75  ;;  %s1726_s27 = sshll.u32 (!%p381_p8), %s387_s25, 7 }
  0x1f   : > { %p444_p9 = scmp.lt.s32.totalorder (!%p381_p8), %s1727_s26, 15  ;;  %s1728_s28 = sshll.u32 (!%p381_p8), %s2065_s11, 7 }
  0x20   : > { %p449_p10 = scmp.lt.s32.totalorder (!%p381_p8), %s1728_s28, 255  ;;  %s2204_s30 = scalar_lea.vmem (!%p381_p8), [#allocation3], %s1726_s27 }
  0x21   : > { %p1730_p11 = scmp.ne.s32.totalorder (!%p381_p8), %s2065_s11, 0 }
  0x25   : > { %s2371_s26 = smov (!%p444_p9, %s1727_s26), 15  ;;  %s2373_s28 = smov (!%p449_p10, %s1728_s28), 255 }
  0x26   : > { %s446_s16 = scalar_lea.vmem %s2356_s2, %s2371_s26  ;;  %s1729_s18 = sshll.u32 %s2373_s28, 2  ;;  %vm465_vm0 = vcmask (!%p1730_p11), 261120   ;;  %v2075_v16 = vmov (!%p1730_p11), 0.0  }
  0x27   : > { %s2202_s21 = scalar_lea.vmem %s2357_s3, %s1729_s18  ;;  %464 = sbr.rel (%p1730_p11) target bundleno = 46 (0x2e), region = 83  ;;  %466 = vst.msk [vmem:[#allocation2] sm:$0xff] (!%p1730_p11), %vm465_vm0, %v2075_v16  ;;  %467 = vst.msk [vmem:[#allocation2 + $0x8] sm:$0xff] (!%p1730_p11), %vm465_vm0, %v2075_v16 }
  0x2e PF: > { %v470_v17 = vld [vmem:[%s2204_s30] sm:$0xff]  ;;  %v471_v19 = vld [vmem:[%s2204_s30 + $0x8] sm:$0xff]  ;;  %v2076_v25 = vmov 0   ;;  %v472_v32 = vld [vmem:[%s2204_s30 + $0x10] sm:$0xff]  ;;  %vm613_vm1 = vcmask 261120   ;;  %p1816_p12 = scmp.ne.s32.totalorder %s2065_s11, 1 }
  0x2f   : > { %v474_v18 = vld [vmem:[%s2204_s30 + $0x20] sm:$0xff]  ;;  %v475_v21 = vld [vmem:[%s2204_s30 + $0x28] sm:$0xff]  ;;  %649 = vmatprep.mubr.bf16.mxu0 %v2076_v25  ;;  %692 = vmatprep.mubr.bf16.mxu1 %v2076_v25  ;;  %v476_v33 = vld [vmem:[%s2204_s30 + $0x30] sm:$0xff]  ;;  %vm1611_vm2 = vcmask (!%p1816_p12), 257024  }
  0x30   : > { %v1733_v20 = vcombine.high %v470_v17, %v474_v18  ;;  %v1732_v22 = vcombine.low %v470_v17, %v474_v18  ;;  %v478_v23 = vld [vmem:[%s2204_s30 + $0x40] sm:$0xff]  ;;  %v1735_v26 = vcombine.high %v471_v19, %v475_v21  ;;  %v1734_v27 = vcombine.low %v471_v19, %v475_v21  ;;  %v479_v29 = vld [vmem:[%s2204_s30 + $0x48] sm:$0xff]  ;;  %v473_v34 = vld [vmem:[%s2204_s30 + $0x18] sm:$0xff] }
  0x31   : > { %v482_v24 = vld [vmem:[%s2204_s30 + $0x60] sm:$0xff]  ;;  %v483_v30 = vld [vmem:[%s2204_s30 + $0x68] sm:$0xff]  ;;  %v2221_v36 = vld [vmem:[%s2354_s0] sm:$0xff]   ;;  %v1737_v39 = vcombine.high %v472_v32, %v476_v33  ;;  %v1736_v45 = vcombine.low %v472_v32, %v476_v33  ;;  %v488_v21 = vlaneseq }
  0x32   : > { %v1741_v28 = vcombine.high %v478_v23, %v482_v24  ;;  %617 = vmatprep.subr.bf16.mxu0 %v1733_v20  ;;  %v1743_v31 = vcombine.high %v479_v29, %v483_v30  ;;  %660 = vmatprep.subr.bf16.mxu1 %v1735_v26  ;;  %v1740_v35 = vcombine.low %v478_v23, %v482_v24  ;;  %v477_v37 = vld [vmem:[%s2204_s30 + $0x38] sm:$0xff]  ;;  %v480_v40 = vld [vmem:[%s2204_s30 + $0x50] sm:$0xff]  ;;  %v1970_v59 = vld [vmem:[%s2202_s21 + $0x50] sm:$0xff]  }
  0x33   : > { %618 = vmatpush1.bf16.msra.mxu0 %v1732_v22  ;;  %661 = vmatpush1.bf16.msra.mxu1 %v1734_v27  ;;  %v1742_v38 = vcombine.low %v479_v29, %v483_v30  ;;  %v484_v41 = vld [vmem:[%s2204_s30 + $0x70] sm:$0xff]  ;;  %v1739_v42 = vcombine.high %v473_v34, %v477_v37  ;;  %v481_v43 = vld [vmem:[%s2204_s30 + $0x58] sm:$0xff]  ;;  %v1738_v46 = vcombine.low %v473_v34, %v477_v37  ;;  %v1971_v60 = vld [vmem:[%s2202_s21 + $0xd0] sm:$0xff]   ;;  %v489_v22 = vshrl.u32 %v488_v21, 7 }
  0x34   : > { %619 = vmatprep.subr.bf16.mxu0 %v1741_v28  ;;  %662 = vmatprep.subr.bf16.mxu1 %v1743_v31  ;;  %v485_v44 = vld [vmem:[%s2204_s30 + $0x78] sm:$0xff]  ;;  %v1745_v47 = vcombine.high %v480_v40, %v484_v41  ;;  %v1744_v49 = vcombine.low %v480_v40, %v484_v41  ;;  %v1962_v51 = vld [vmem:[%s2202_s21 + $0x40] sm:$0xff]   ;;  %v1972_v61 = vld [vmem:[%s2202_s21 + $0x10] sm:$0xff]  }
  0x35   : > { %v1747_v48 = vcombine.high %v481_v43, %v485_v44  ;;  %v1746_v50 = vcombine.low %v481_v43, %v485_v44  ;;  %v1963_v52 = vld [vmem:[%s2202_s21 + $0xc0] sm:$0xff]   ;;  %v1966_v55 = vld [vmem:[%s2202_s21 + $0x48] sm:$0xff]   ;;  %v1973_v62 = vld [vmem:[%s2202_s21 + $0x90] sm:$0xff]   ;;  %v490_v23 = vsub.s32 0, %v489_v22  ;;  %v494_v26 = vsub.s32 1, %v489_v22 }
  0x36   : > { %v1964_v53 = vld [vmem:[%s2202_s21] sm:$0xff]   ;;  %v1967_v56 = vld [vmem:[%s2202_s21 + $0xc8] sm:$0xff]   ;;  %v1974_v63 = vld [vmem:[%s2202_s21 + $0x58] sm:$0xff]   ;;  %v502_v27 = vsub.s32 3, %v489_v22  ;;  %v506_v32 = vsub.s32 4, %v489_v22  ;;  %v510_v34 = vsub.s32 5, %v489_v22 }
  0x37   : > { %620 = vmatpush1.bf16.msra.mxu0 %v1740_v35  ;;  %663 = vmatpush1.bf16.msra.mxu1 %v1742_v38  ;;  %v1965_v54 = vld [vmem:[%s2202_s21 + $0x80] sm:$0xff]   ;;  %v1968_v57 = vld [vmem:[%s2202_s21 + $0x8] sm:$0xff]   ;;  %v1975_v0 = vld [vmem:[%s2202_s21 + $0xd8] sm:$0xff]   ;;  %v514_v43 = vsub.s32 6, %v489_v22 }
  0x38   : > { %703 = vmatprep.subr.bf16.mxu0 %v1737_v39  ;;  %746 = vmatprep.subr.bf16.mxu1 %v1739_v42  ;;  %v1969_v58 = vld [vmem:[%s2202_s21 + $0x88] sm:$0xff]   ;;  %v1976_v1 = vld [vmem:[%s2202_s21 + $0x18] sm:$0xff]   ;;  %v1978_v3 = vld [vmem:[%s2202_s21 + $0x60] sm:$0xff]  }
  0x39   : > { %v1977_v2 = vld [vmem:[%s2202_s21 + $0x98] sm:$0xff]   ;;  %v1979_v4 = vld [vmem:[%s2202_s21 + $0xe0] sm:$0xff]   ;;  %v1982_v7 = vld [vmem:[%s2202_s21 + $0x68] sm:$0xff]  }
  0x3a   : > { %1748 = vmatmul.mubr.msk.bf16.vlgmr.msra.gmra.mrb[0].mxu0 %vm613_vm1, %v2221_v36  ;;  %1749 = vmatmul.mubr.msk.bf16.vlgmr.msra.gmra.mrb[0].mxu1 %vm613_vm1, %v2221_v36  ;;  %v1980_v5 = vld [vmem:[%s2202_s21 + $0x20] sm:$0xff]   ;;  %v1983_v8 = vld [vmem:[%s2202_s21 + $0xe8] sm:$0xff]   ;;  %v1986_v11 = vld [vmem:[%s2202_s21 + $0x70] sm:$0xff]  }
  0x3b   : > { %704 = vmatpush1.bf16.msra.mxu0 %v1736_v45  ;;  %747 = vmatpush1.bf16.msra.mxu1 %v1738_v46  ;;  %v1981_v6 = vld [vmem:[%s2202_s21 + $0xa0] sm:$0xff]   ;;  %v1984_v9 = vld [vmem:[%s2202_s21 + $0x28] sm:$0xff]   ;;  %v1987_v12 = vld [vmem:[%s2202_s21 + $0xf0] sm:$0xff]  }
  0x3c   : > { %705 = vmatprep.subr.bf16.mxu0 %v1745_v47  ;;  %748 = vmatprep.subr.bf16.mxu1 %v1747_v48  ;;  %v1985_v10 = vld [vmem:[%s2202_s21 + $0xa8] sm:$0xff]   ;;  %v1988_v13 = vld [vmem:[%s2202_s21 + $0x30] sm:$0xff]   ;;  %v1990_v15 = vld [vmem:[%s2202_s21 + $0x78] sm:$0xff]  }
  0x3d   : > { %735 = vmatprep.mubr.bf16.mxu0 %v2076_v25  ;;  %778 = vmatprep.mubr.bf16.mxu1 %v2076_v25  ;;  %v1989_v14 = vld [vmem:[%s2202_s21 + $0xb0] sm:$0xff]   ;;  %v1991_v16 = vld [vmem:[%s2202_s21 + $0xf8] sm:$0xff]   ;;  %v1994_v19 = vld [vmem:[%s2202_s21 + $0x140] sm:$0xff]   ;;  %v498_v25 = vsub.s32 2, %v489_v22 }
  0x3e   : > { %v1992_v17 = vld [vmem:[%s2202_s21 + $0x38] sm:$0xff]   ;;  %v1995_v20 = vld [vmem:[%s2202_s21 + $0x1c0] sm:$0xff]  }
  0x3f   : > { %706 = vmatpush1.bf16.msra.mxu0 %v1744_v49  ;;  %749 = vmatpush1.bf16.msra.mxu1 %v1746_v50  ;;  %v1993_v18 = vld [vmem:[%s2202_s21 + $0xb8] sm:$0xff]   ;;  %v486_v24 = vld [vmem:[%s446_s16] sm:$0xff]  ;;  %v518_v49 = vsub.s32 7, %v489_v22  ;;  %v2000_v22 = vld [vmem:[%s2202_s21 + $0x108] sm:$0xff]  }
  0x40   : > { %1831 = vmatprep.subr.bf16.mxu0 %v1962_v51  ;;  %1853 = vmatprep.subr.bf16.mxu1 %v1963_v52  ;;  %v491_v28 = vrot.slane %v486_v24, %v490_v23  ;;  %v499_v29 = vrot.slane %v486_v24, %v498_v25  ;;  %v495_v30 = vrot.slane %v486_v24, %v494_v26 }
  0x41   : > { %v503_v31 = vrot.slane %v486_v24, %v502_v27  ;;  %v507_v48 = vrot.slane %v486_v24, %v506_v32 }
  0x42   : > { %1750 = vmatmul.mubr.msk.bf16.vlgmr.msra.gmra.mrb[4].mxu0 %vm613_vm1, %v2221_v36  ;;  %1751 = vmatmul.mubr.msk.bf16.vlgmr.msra.gmra.mrb[4].mxu1 %vm613_vm1, %v2221_v36 }
  0x43   : > { %1832 = vmatpush3.bf16.msra.mxu0 %v1964_v53  ;;  %1854 = vmatpush3.bf16.msra.mxu1 %v1965_v54  ;;  %v511_v54 = vrot.slane %v486_v24, %v510_v34 }
  0x44   : > { %1833 = vmatprep.subr.bf16.mxu0 %v1966_v55  ;;  %1855 = vmatprep.subr.bf16.mxu1 %v1967_v56 }
  0x47   : > { %1834 = vmatpush3.bf16.msra.mxu0 %v1968_v57  ;;  %1856 = vmatpush3.bf16.msra.mxu1 %v1969_v58 }
  0x48   : > { %1835 = vmatprep.subr.bf16.mxu0 %v1970_v59  ;;  %1857 = vmatprep.subr.bf16.mxu1 %v1971_v60 }
  0x4b   : > { %1836 = vmatpush3.bf16.msra.mxu0 %v1972_v61  ;;  %1858 = vmatpush3.bf16.msra.mxu1 %v1973_v62  ;;  %v515_v62 = vrot.slane %v486_v24, %v514_v43  ;;  %v2006_v43 = vld [vmem:[%s2202_s21 + $0x158] sm:$0xff]  }
  0x4c   : > { %1837 = vmatprep.subr.bf16.mxu0 %v1974_v63  ;;  %1859 = vmatprep.subr.bf16.mxu1 %v1975_v0 }
  0x4f   : > { %1838 = vmatpush3.bf16.msra.mxu0 %v1976_v1  ;;  %1860 = vmatpush3.bf16.msra.mxu1 %v1977_v2  ;;  %v519_v1 = vrot.slane %v486_v24, %v518_v49  ;;  %v2011_v49 = vld [vmem:[%s2202_s21 + $0x1e0] sm:$0xff]  }
  0x50   : > { %1839 = vmatprep.subr.bf16.mxu0 %v1978_v3  ;;  %1861 = vmatprep.subr.bf16.mxu1 %v1979_v4  ;;  %v1996_v4 = vld [vmem:[%s2202_s21 + $0x100] sm:$0xff]  }
  0x53   : > { %1840 = vmatpush3.bf16.msra.mxu0 %v1980_v5  ;;  %1862 = vmatpush3.bf16.msra.mxu1 %v1981_v6 }
  0x54   : > { %1841 = vmatprep.subr.bf16.mxu0 %v1982_v7  ;;  %1863 = vmatprep.subr.bf16.mxu1 %v1983_v8  ;;  %v1997_v7 = vld [vmem:[%s2202_s21 + $0x180] sm:$0xff]   ;;  %v1998_v8 = vld [vmem:[%s2202_s21 + $0x148] sm:$0xff]  }
  0x57   : > { %1842 = vmatpush3.bf16.msra.mxu0 %v1984_v9  ;;  %1864 = vmatpush3.bf16.msra.mxu1 %v1985_v10 }
  0x58   : > { %1843 = vmatprep.subr.bf16.mxu0 %v1986_v11  ;;  %1865 = vmatprep.subr.bf16.mxu1 %v1987_v12  ;;  %v1999_v12 = vld [vmem:[%s2202_s21 + $0x1c8] sm:$0xff]  }
  0x5b   : > { %1844 = vmatpush3.bf16.msra.mxu0 %v1988_v13  ;;  %1866 = vmatpush3.bf16.msra.mxu1 %v1989_v14 }
  0x5c   : > { %1845 = vmatprep.subr.bf16.mxu0 %v1990_v15  ;;  %1867 = vmatprep.subr.bf16.mxu1 %v1991_v16 }
  0x5f   : > { %1846 = vmatpush3.bf16.msra.mxu0 %v1992_v17  ;;  %1868 = vmatpush3.bf16.msra.mxu1 %v1993_v18 }
  0x60   : > { %1875 = vmatprep.subr.bf16.mxu0 %v1994_v19  ;;  %1897 = vmatprep.subr.bf16.mxu1 %v1995_v20 }
 0x10d   : > { %v651_v33 = vpop.f32.mrb[0].mxu0  ;;  %v694_v37 = vpop.f32.mrb[0].mxu1 }
 0x10e   : > { %v652_v35 = vadd.f32 %v651_v33, %v491_v28  ;;  %v653_v38 = vpop.f32.mrb[1].mxu0  ;;  %v695_v39 = vadd.f32 %v694_v37, %v499_v29  ;;  %v696_v41 = vpop.f32.mrb[1].mxu1  ;;  %v2003_v33 = vld [vmem:[%s2202_s21 + $0x1d0] sm:$0xff]  }
 0x10f   : > { %v654_v40 = vadd.f32 %v653_v38, %v495_v30  ;;  %v655_v42 = vpop.f32.mrb[2].mxu0  ;;  %v697_v44 = vadd.f32 %v696_v41, %v503_v31  ;;  %v698_v46 = vpop.f32.mrb[2].mxu1 }
 0x110   : > { %v656_v45 = vadd.f32 %v655_v42, %v491_v28  ;;  %v657_v47 = vpop.f32.mrb[3].mxu0  ;;  %v791_v50 = vmax.f32 %v695_v39, 0.0  ;;  %v699_v51 = vadd.f32 %v698_v46, %v499_v29  ;;  %v700_v53 = vpop.f32.mrb[3].mxu1  ;;  %v789_v55 = vmax.f32 %v652_v35, 0.0  ;;  %v2001_v28 = vld [vmem:[%s2202_s21 + $0x188] sm:$0xff]   ;;  %v2002_v29 = vld [vmem:[%s2202_s21 + $0x150] sm:$0xff]  }
 0x111   : > { %v658_v52 = vadd.f32 %v657_v47, %v495_v30  ;;  %v792_v56 = vmax.f32 %v697_v44, 0.0  ;;  %v701_v58 = vadd.f32 %v700_v53, %v503_v31  ;;  %v790_v59 = vmax.f32 %v654_v40, 0.0  ;;  %v2004_v39 = vld [vmem:[%s2202_s21 + $0x110] sm:$0xff]   ;;  %v2008_v46 = vld [vmem:[%s2202_s21 + $0x118] sm:$0xff]   ;;  %v2015_v53 = vld [vmem:[%s2202_s21 + $0x1e8] sm:$0xff]  }
 0x112   : > { %v797_v57 = vmax.f32 %v656_v45, 0.0  ;;  %v799_v60 = vmax.f32 %v699_v51, 0.0  ;;  %v2005_v42 = vld [vmem:[%s2202_s21 + $0x190] sm:$0xff]   ;;  %v2007_v45 = vld [vmem:[%s2202_s21 + $0x1d8] sm:$0xff]   ;;  %v2013_v51 = vld [vmem:[%s2202_s21 + $0x1a0] sm:$0xff]  }
 0x113   : > { %v798_v61 = vmax.f32 %v658_v52, 0.0  ;;  %v800_v0 = vmax.f32 %v701_v58, 0.0  ;;  %v2009_v47 = vld [vmem:[%s2202_s21 + $0x198] sm:$0xff]   ;;  %v2014_v52 = vld [vmem:[%s2202_s21 + $0x168] sm:$0xff]   ;;  %v2020_v58 = vld [vmem:[%s2202_s21 + $0x130] sm:$0xff]  }
 0x114   : > { %v807_v63 = vpack.c.bf16 %v797_v57, %v789_v55  ;;  %v809_v2 = vpack.c.bf16 %v799_v60, %v791_v50  ;;  %v2012_v50 = vld [vmem:[%s2202_s21 + $0x120] sm:$0xff]   ;;  %v2017_v55 = vld [vmem:[%s2202_s21 + $0x1a8] sm:$0xff]   ;;  %v2019_v57 = vld [vmem:[%s2202_s21 + $0x1f0] sm:$0xff]  }
 0x115   : > { %v808_v3 = vpack.c.bf16 %v798_v61, %v790_v59  ;;  %v737_v5 = vpop.f32.mrb[4].mxu0  ;;  %v810_v6 = vpack.c.bf16 %v800_v0, %v792_v56  ;;  %v780_v11 = vpop.f32.mrb[4].mxu1  ;;  %v2018_v56 = vld [vmem:[%s2202_s21 + $0x170] sm:$0xff]   ;;  %v2022_v60 = vld [vmem:[%s2202_s21 + $0x178] sm:$0xff]  }
 0x116   : > { %v738_v9 = vadd.f32 %v737_v5, %v507_v48  ;;  %v739_v10 = vpop.f32.mrb[5].mxu0  ;;  %v781_v15 = vadd.f32 %v780_v11, %v515_v62  ;;  %v782_v16 = vpop.f32.mrb[5].mxu1  ;;  %v2021_v59 = vld [vmem:[%s2202_s21 + $0x1b0] sm:$0xff]   ;;  %v2023_v61 = vld [vmem:[%s2202_s21 + $0x1f8] sm:$0xff]  }
 0x117   : > { %1359 = vmatprep.mubr.bf16.mxu0 %v808_v3  ;;  %v740_v13 = vadd.f32 %v739_v10, %v511_v54  ;;  %v741_v14 = vpop.f32.mrb[6].mxu0  ;;  %1400 = vmatprep.mubr.bf16.mxu1 %v810_v6  ;;  %v783_v20 = vadd.f32 %v782_v16, %v519_v1  ;;  %v784_v21 = vpop.f32.mrb[6].mxu1 }
 0x118   : > { %1360 = vmatmul.mubr.bf16.vlgmr.msra.gmra.mrb[8].mxu0 %v807_v63  ;;  %v793_v17 = vmax.f32 %v738_v9, 0.0  ;;  %v742_v18 = vadd.f32 %v741_v14, %v507_v48  ;;  %v743_v19 = vpop.f32.mrb[7].mxu0  ;;  %1401 = vmatmul.mubr.bf16.vlgmr.msra.gmra.mrb[8].mxu1 %v809_v2  ;;  %v795_v24 = vmax.f32 %v781_v15, 0.0  ;;  %v785_v26 = vadd.f32 %v784_v21, %v515_v62  ;;  %v786_v27 = vpop.f32.mrb[7].mxu1  ;;  %v2010_v48 = vld [vmem:[%s2202_s21 + $0x160] sm:$0xff]   ;;  %v2024_v62 = vld [vmem:[%s2202_s21 + $0x138] sm:$0xff]  }
 0x119   : > { %1876 = vmatpush3.bf16.msra.mxu0 %v1996_v4  ;;  %v794_v23 = vmax.f32 %v740_v13, 0.0  ;;  %v744_v25 = vadd.f32 %v743_v19, %v511_v54  ;;  %1898 = vmatpush3.bf16.msra.mxu1 %v1997_v7  ;;  %v796_v31 = vmax.f32 %v783_v20, 0.0  ;;  %v787_v32 = vadd.f32 %v786_v27, %v519_v1  ;;  %v2016_v54 = vld [vmem:[%s2202_s21 + $0x128] sm:$0xff]   ;;  %v2025_v63 = vld [vmem:[%s2202_s21 + $0x1b8] sm:$0xff]  }
 0x11a   : > { %1877 = vmatprep.subr.bf16.mxu0 %v1998_v8  ;;  %v801_v30 = vmax.f32 %v742_v18, 0.0  ;;  %1899 = vmatprep.subr.bf16.mxu1 %v1999_v12  ;;  %v803_v35 = vmax.f32 %v785_v26, 0.0  ;;  %v805_v26 = vld [vmem:[#allocation2] sm:$0xff] }
 0x11b   : > { %v802_v34 = vmax.f32 %v744_v25, 0.0  ;;  %v804_v38 = vmax.f32 %v787_v32, 0.0 }
 0x11c   : > { %v811_v37 = vpack.c.bf16 %v801_v30, %v793_v17  ;;  %v813_v41 = vpack.c.bf16 %v803_v35, %v795_v24  ;;  %v806_v30 = vld [vmem:[#allocation2 + $0x8] sm:$0xff]  ;;  %v1817_v35 = vld [vmem:[%s2358_s4] ss:$0 sm:$0xff] (!%p1816_p12) }
 0x11d   : > { %1878 = vmatpush3.bf16.msra.mxu0 %v2000_v22  ;;  %v812_v40 = vpack.c.bf16 %v802_v34, %v794_v23  ;;  %1900 = vmatpush3.bf16.msra.mxu1 %v2001_v28  ;;  %v814_v44 = vpack.c.bf16 %v804_v38, %v796_v31 }
 0x11e   : > { %1879 = vmatprep.subr.bf16.mxu0 %v2002_v29  ;;  %1901 = vmatprep.subr.bf16.mxu1 %v2003_v33 }
 0x11f   : > { %1441 = vmatprep.mubr.bf16.mxu0 %v812_v40  ;;  %1482 = vmatprep.mubr.bf16.mxu1 %v814_v44 }
 0x121   : > { %1880 = vmatpush3.bf16.msra.mxu0 %v2004_v39  ;;  %1902 = vmatpush3.bf16.msra.mxu1 %v2005_v42  ;;  %v1511_v39 = vunpack.c.h.bf16 (!%p1816_p12), %v2221_v36 }
 0x122   : > { %1881 = vmatprep.subr.bf16.mxu0 %v2006_v43  ;;  %1903 = vmatprep.subr.bf16.mxu1 %v2007_v45 }
 0x125   : > { %1882 = vmatpush3.bf16.msra.mxu0 %v2008_v46  ;;  %1904 = vmatpush3.bf16.msra.mxu1 %v2009_v47 }
 0x126   : > { %1883 = vmatprep.subr.bf16.mxu0 %v2010_v48  ;;  %1905 = vmatprep.subr.bf16.mxu1 %v2011_v49 }
 0x129   : > { %1884 = vmatpush3.bf16.msra.mxu0 %v2012_v50  ;;  %1906 = vmatpush3.bf16.msra.mxu1 %v2013_v51 }
 0x12a   : > { %1885 = vmatprep.subr.bf16.mxu0 %v2014_v52  ;;  %1907 = vmatprep.subr.bf16.mxu1 %v2015_v53 }
 0x12d   : > { %1886 = vmatpush3.bf16.msra.mxu0 %v2016_v54  ;;  %1908 = vmatpush3.bf16.msra.mxu1 %v2017_v55 }
 0x12e   : > { %1887 = vmatprep.subr.bf16.mxu0 %v2018_v56  ;;  %1909 = vmatprep.subr.bf16.mxu1 %v2019_v57 }
 0x131   : > { %1888 = vmatpush3.bf16.msra.mxu0 %v2020_v58  ;;  %1910 = vmatpush3.bf16.msra.mxu1 %v2021_v59 }
 0x132   : > { %1889 = vmatprep.subr.bf16.mxu0 %v2022_v60  ;;  %1911 = vmatprep.subr.bf16.mxu1 %v2023_v61 }
 0x135   : > { %1890 = vmatpush3.bf16.msra.mxu0 %v2024_v62  ;;  %1912 = vmatpush3.bf16.msra.mxu1 %v2025_v63  ;;  %v1818_v62 = vld [vmem:[%s2359_s5] ss:$0 sm:$0xff] (!%p1816_p12) }
 0x138   : > { %1442 = vmatmul.mubr.bf16.vlgmr.msra.gmra.mrb[12].mxu0 %v811_v37  ;;  %1483 = vmatmul.mubr.bf16.vlgmr.msra.gmra.mrb[12].mxu1 %v813_v41  ;;  %v1510_v37 = vunpack.c.l.bf16 (!%p1816_p12), %v2221_v36 }
 0x1eb   : > { %v1847_v0 = vpop.f32.mrb[8].mxu0  ;;  %v1869_v1 = vpop.f32.mrb[8].mxu1 }
 0x1ec   : > { %v1848_v2 = vpop.f32.mrb[9].mxu0  ;;  %v1870_v4 = vpop.f32.mrb[9].mxu1 }
 0x1ed   : > { %v1849_v3 = vadd.f32 %v1848_v2, %v1847_v0  ;;  %v1850_v5 = vpop.f32.mrb[10].mxu0  ;;  %v1871_v6 = vadd.f32 %v1870_v4, %v1869_v1  ;;  %v1872_v7 = vpop.f32.mrb[10].mxu1  ;;  %v1819_v0 = vld [vmem:[%s2360_s6] ss:$0 sm:$0xff] (!%p1816_p12) }
 0x1ee   : > { %v1851_v8 = vpop.f32.mrb[11].mxu0  ;;  %v1873_v10 = vpop.f32.mrb[11].mxu1 }
 0x1ef   : > { %v1852_v9 = vadd.f32 %v1851_v8, %v1850_v5  ;;  %v1403_v11 = vadd.f32 %v1871_v6, %v1849_v3  ;;  %v1874_v12 = vadd.f32 %v1873_v10, %v1872_v7 }
 0x1f1   : > { %v1406_v13 = vadd.f32 %v1874_v12, %v1852_v9 }
 0x20b   : > { %v1891_v14 = vpop.f32.mrb[12].mxu0  ;;  %v1913_v15 = vpop.f32.mrb[12].mxu1 }
 0x20c   : > { %v1892_v16 = vpop.f32.mrb[13].mxu0  ;;  %v1914_v18 = vpop.f32.mrb[13].mxu1 }
 0x20d   : > { %v1893_v17 = vadd.f32 %v1892_v16, %v1891_v14  ;;  %v1894_v19 = vpop.f32.mrb[14].mxu0  ;;  %v1915_v20 = vadd.f32 %v1914_v18, %v1913_v15  ;;  %v1916_v21 = vpop.f32.mrb[14].mxu1 }
 0x20e   : > { %v1895_v22 = vpop.f32.mrb[15].mxu0  ;;  %v1917_v25 = vpop.f32.mrb[15].mxu1 }
 0x20f   : > { %v1444_v23 = vadd.f32 %v1893_v17, %v1403_v11  ;;  %v1896_v24 = vadd.f32 %v1895_v22, %v1894_v19  ;;  %v1918_v27 = vadd.f32 %v1917_v25, %v1916_v21 }
 0x211   : > { %v1485_v28 = vadd.f32 %v1915_v20, %v1444_v23  ;;  %v1447_v29 = vadd.f32 %v1896_v24, %v1406_v13  ;;  %1498 = sbr.rel (%p1816_p12) target bundleno = 1178 (0x49a), region = 87 }
 0x213   : > { %v1491_v31 = vadd.f32 %v1485_v28, %v805_v26  ;;  %v1488_v32 = vadd.f32 %v1918_v27, %v1447_v29  ;;  %v1820_v26 = vld [vmem:[%s2361_s7] ss:$0 sm:$0xff] (!%p1816_p12) }
 0x214   : > { %v1821_v28 = vld [vmem:[%s2362_s8] ss:$0 sm:$0xff] (!%p1816_p12) }
 0x215   : > { %1493 = vst.msk [vmem:[#allocation2] sm:$0xff] %vm613_vm1, %v1491_v31  ;;  %v1492_v33 = vadd.f32 %v1488_v32, %v806_v30 }
 0x217   : > { %1494 = vst.msk [vmem:[#allocation2 + $0x8] sm:$0xff] %vm613_vm1, %v1492_v33 }
 0x21c   : > { %v1499_v34 = vld [vmem:[#allocation2] sm:$0xff] }
 0x21d   : > { %v1508_v40 = vadd.f32 %v1817_v35, %v1499_v34 }
 0x21e   : > { %v1500_v38 = vld [vmem:[#allocation2 + $0x8] sm:$0xff] }
 0x21f   : > { %v1509_v41 = vadd.f32 %v1817_v35, %v1500_v38  ;;  %v1512_v42 = vadd.f32 %v1510_v37, %v1508_v40 }
 0x221   : > { %v1513_v43 = vadd.f32 %v1511_v39, %v1509_v41  ;;  %v1516_v44 = vsel %vm613_vm1, %v1512_v42, 0.0 }
 0x222   : > { %1517 = vadd.xlane.f32.xlu0 %v1516_v44 }
 0x223   : > { %v1519_v45 = vsel %vm613_vm1, %v1513_v43, 0.0 }
 0x226   : > { %1520 = vadd.xlane.f32.xlu0 %v1519_v45 }
 0x2af   : > { %v1518_v46 = vpop.xlane.xlu0 %1517 }
 0x2b0   : > { %v1523_v47 = vmul.f32 0.03125, %v1518_v46 }
 0x2b2   : > { %v1525_v48 = vsub.f32 %v1512_v42, %v1523_v47 }
 0x2b3   : > { %v1521_v49 = vpop.xlane.xlu0 %1520 }
 0x2b4   : > { %v1524_v50 = vmul.f32 0.03125, %v1521_v49  ;;  %v1527_v51 = vmul.f32 %v1525_v48, %v1525_v48 }
 0x2b6   : > { %v1526_v52 = vsub.f32 %v1513_v43, %v1524_v50  ;;  %v1529_v53 = vsel %vm613_vm1, %v1527_v51, 0.0 }
 0x2b7   : > { %1530 = vadd.xlane.f32.xlu1 %v1529_v53 }
 0x2b8   : > { %v1528_v36 = vmul.f32 %v1526_v52, %v1526_v52 }
 0x2ba   : > { %v1532_v54 = vsel %vm613_vm1, %v1528_v36, 0.0 }
 0x2bb   : > { %1533 = vadd.xlane.f32.xlu1 %v1532_v54 }
 0x344   : > { %v1531_v55 = vpop.xlane.xlu1 %1530 }
 0x345   : > { %v1535_v56 = vmul.f32 0.03125, %v1531_v55 }
 0x347   : > { %v1537_v57 = vadd.f32 1e-05, %v1535_v56 }
 0x348   : > { %v1534_v58 = vpop.xlane.xlu1 %1533 }
 0x349   : > { %2027 = vrsqrt.f32 %v1537_v57  ;;  %v1536_v59 = vmul.f32 0.03125, %v1534_v58 }
 0x34b   : > { %v1538_v60 = vadd.f32 1e-05, %v1536_v59 }
 0x34d   : > { %2029 = vrsqrt.f32 %v1538_v60 }
 0x353   : > { %v2028_v61 = vpop.eup %2027 }
 0x354   : > { %v1541_v63 = vmul.f32 %v2028_v61, %v1525_v48 }
 0x356   : > { %v1549_v1 = vmul.f32 %v1818_v62, %v1541_v63 }
 0x357   : > { %v2030_v2 = vpop.eup %2029 }
 0x358   : > { %v1557_v3 = vadd.f32 %v1819_v0, %v1549_v1  ;;  %v1542_v4 = vmul.f32 %v2030_v2, %v1526_v52 }
 0x35a   : > { %v1561_v5 = vsel %vm613_vm1, %v1557_v3, 0.0  ;;  %v1550_v6 = vmul.f32 %v1818_v62, %v1542_v4 }
 0x35b   : > { %1562 = vadd.xlane.f32.xlu0 %v1561_v5 }
 0x35c   : > { %v1558_v7 = vadd.f32 %v1819_v0, %v1550_v6 }
 0x35e   : > { %v1564_v8 = vsel %vm613_vm1, %v1558_v7, 0.0 }
 0x35f   : > { %1565 = vadd.xlane.f32.xlu1 %v1564_v8 }
 0x3e8   : > { %v1563_v9 = vpop.xlane.xlu0 %1562 }
 0x3e9   : > { %v1567_v10 = vmul.f32 0.03125, %v1563_v9 }
 0x3eb   : > { %v1569_v11 = vsub.f32 %v1557_v3, %v1567_v10 }
 0x3ec   : > { %v1566_v12 = vpop.xlane.xlu1 %1565 }
 0x3ed   : > { %v1568_v13 = vmul.f32 0.03125, %v1566_v12  ;;  %v1571_v14 = vmul.f32 %v1569_v11, %v1569_v11 }
 0x3ef   : > { %v1570_v15 = vsub.f32 %v1558_v7, %v1568_v13  ;;  %v1573_v16 = vsel %vm613_vm1, %v1571_v14, 0.0 }
 0x3f0   : > { %1574 = vadd.xlane.f32.xlu0 %v1573_v16 }
 0x3f1   : > { %v1572_v17 = vmul.f32 %v1570_v15, %v1570_v15 }
 0x3f3   : > { %v1576_v18 = vsel %vm613_vm1, %v1572_v17, 0.0 }
 0x3f4   : > { %1577 = vadd.xlane.f32.xlu1 %v1576_v18 }
 0x47d   : > { %v1575_v19 = vpop.xlane.xlu0 %1574 }
 0x47e   : > { %v1579_v20 = vmul.f32 0.03125, %v1575_v19 }
 0x480   : > { %v1581_v21 = vadd.f32 1e-05, %v1579_v20 }
 0x481   : > { %v1578_v22 = vpop.xlane.xlu1 %1577 }
 0x482   : > { %2031 = vrsqrt.f32 %v1581_v21  ;;  %v1580_v23 = vmul.f32 0.03125, %v1578_v22 }
 0x484   : > { %v1582_v24 = vadd.f32 1e-05, %v1580_v23 }
 0x486   : > { %2033 = vrsqrt.f32 %v1582_v24 }
 0x48c   : > { %v2032_v25 = vpop.eup %2031 }
 0x48d   : > { %v1585_v27 = vmul.f32 %v2032_v25, %v1569_v11 }
 0x48f   : > { %v1593_v29 = vmul.f32 %v1820_v26, %v1585_v27 }
 0x490   : > { %v2034_v30 = vpop.eup %2033 }
 0x491   : > { %v1601_v31 = vadd.f32 %v1821_v28, %v1593_v29  ;;  %v1586_v32 = vmul.f32 %v2034_v30, %v1570_v15 }
 0x493   : > { %v1829_v33 = vpack.c.bf16 %v1601_v31, %v1601_v31  ;;  %v1594_v34 = vmul.f32 %v1820_v26, %v1586_v32 }
 0x495   : > { %1612 = vst.msk [vmem:[%s2363_s9] sm:$0xf] %vm1611_vm2, %v1829_v33  ;;  %v1602_v35 = vadd.f32 %v1821_v28, %v1594_v34 }
 0x497   : > { %v1830_v37 = vpack.c.bf16 %v1602_v35, %v1602_v35 }
 0x499   : > { %1613 = vst.msk [vmem:[%s2363_s9 + $0x4] sm:$0xf] %vm1611_vm2, %v1830_v37 }
 0x49a PF: > { %s19_s13 = sadd.s32 1, %s2073_s13   ;;  %s2364_s30 = smov %s2061_s10 }
 0x49b   : > { %p16_p13 = scmp.ge.s32.totalorder %s19_s13, 4   ;;  %s2365_s10 = smov %s2162_s17 }
 0x49c   : > { %s2366_s11 = smov %s2069_s12  ;;  %s2367_s12 = smov %s2369_s14 }
 0x49d   :  { %18 = sbr.rel (!%p16_p13) target bundleno = 3 (0x3), region = 131 }

// kernel: transformer_model_forward.23
= control target key start
LH: loop header
LB: loop body
LE: loop exit
PB: predicated region body
PF: predicated region fallthrough
CT: control target
= control target key end

     0   :  { %vm26_vm0 = vcmask 254976   ;;  %s250_s0 = inlined_call_operand.vmem [shape: bf16[2,32], index: 0, kind: input, shape index: {}]   ;;  %s251_s1 = inlined_call_operand.vmem [shape: f32[1,32], index: 1, kind: input, shape index: {}]   ;;  %s252_s2 = inlined_call_operand.vmem [shape: f32[1,32], index: 2, kind: input, shape index: {}]   ;;  %s253_s3 = inlined_call_operand.vmem [shape: bf16[32,8], index: 3, kind: input, shape index: {}]   ;;  %s254_s4 = inlined_call_operand.vmem [shape: f32[1,8], index: 4, kind: input, shape index: {}]   ;;  %s255_s5 = inlined_call_operand.hbm [shape: f32[2,8], index: 5, kind: output, shape index: {}]  }
   0x1   :  { %v22_v0 = vld [vmem:[%s250_s0] sm:$0x1] }
   0x2   :  { %v23_v1 = vunpack.c.l.bf16 %v22_v0 }
   0x3   :  { %10 = vsyncpa [#allocation3], 0  ;;  %v159_v8 = vld [vmem:[%s253_s3] sm:$0xff]   ;;  %v187_v9 = vmov 0.0   ;;  %v160_v10 = vld [vmem:[%s253_s3 + $0x8] sm:$0xff]   ;;  %vm188_vm1 = vmmov 0  }
   0x4   :  { %v27_v2 = vsel %vm26_vm0, %v23_v1, 0.0  ;;  %148 = vmatprep.subr.bf16.mxu0 %v187_v9  ;;  %152 = vmatprep.mubr.msk.bf16.mxu0 %vm188_vm1, %v187_v9  ;;  %v139_v15 = vld [vmem:[%s251_s1] ss:$0 sm:$0xff]  ;;  %vm79_vm2 = vcmask 261120   ;;  %s189_s28 = smov [#allocation2]   ;;  %vm123_vm3 = vcmask 58368  }
   0x5   :  { %28 = vadd.xlane.f32.xlu0 %v27_v2  ;;  %149 = vmatpush3.bf16.msra.mxu0 %v159_v8  ;;  %v140_v17 = vld [vmem:[%s252_s2] ss:$0 sm:$0xff]  ;;  %s131_s29 = sshll.u32 %s189_s28, 4  ;;  %s132_s29 = int_to_ptr.vmem [resolvable:$true] %s131_s29 }
   0x6   :  { %150 = vmatprep.subr.bf16.mxu0 %v187_v9  ;;  %v141_v21 = vld [vmem:[%s254_s4] ss:$0 sm:$0xff]  ;;  %s163_s1 = scalar_lea.vmem %s132_s29, 32  ;;  %p168_p1 = scmp.lt.s32.totalorder %s132_s29, %s132_s29 }
   0x7   :  { %p164_p0 = scmp.ne.s32.totalorder %s132_s29, %s163_s1  ;;  %p169_p2 = scmp.lt.s32.totalorder %s163_s1, %s163_s1 }
   0x9   :  { %151 = vmatpush3.bf16.msra.mxu0 %v160_v10  ;;  %p170_p3 = por %p169_p2, %p168_p1 }
   0xb   :  { %p171_p4 = pnand %p170_p3, %p164_p0 }
  0x92   :  { %v29_v3 = vpop.xlane.xlu0 %28 }
  0x93   :  { %v31_v4 = vmul.f32 0.03125, %v29_v3 }
  0x95   :  { %v32_v5 = vsub.f32 %v23_v1, %v31_v4 }
  0x97   :  { %v33_v6 = vmul.f32 %v32_v5, %v32_v5 }
  0x99   :  { %v34_v7 = vsel %vm26_vm0, %v33_v6, 0.0 }
  0x9a   :  { %35 = vadd.xlane.f32.xlu0 %v34_v7 }
 0x127   :  { %v36_v11 = vpop.xlane.xlu0 %35 }
 0x128   :  { %v37_v12 = vmul.f32 0.03125, %v36_v11 }
 0x12a   :  { %v38_v13 = vadd.f32 1e-05, %v37_v12 }
 0x12c   :  { %161 = vrsqrt.f32 %v38_v13 }
 0x136   :  { %v162_v14 = vpop.eup %161 }
 0x137   :  { %v40_v16 = vmul.f32 %v162_v14, %v32_v5 }
 0x139   :  { %v47_v18 = vmul.f32 %v139_v15, %v40_v16 }
 0x13b   :  { %v54_v19 = vadd.f32 %v140_v17, %v47_v18 }
 0x13d   :  { %v55_v20 = vpack.c.bf16 %v54_v19, %v54_v19 }
 0x13f   :  { %153 = vmatmul.mubr.msk.bf16.vlgmr.msra.gmra.mrb[0].mxu0 %vm79_vm2, %v55_v20 }
 0x212   :  { %v117_v22 = vpop.f32.mrb[0].mxu0 }
 0x213   :  { %v118_v23 = vadd.f32 %v141_v21, %v117_v22  ;;  %v154_v24 = vpop.f32.mrb[1].mxu0 }
 0x214   :  { %v120_v25 = vpop.f32.mrb[2].mxu0 }
 0x215   :  { %v155_v26 = vpop.f32.mrb[3].mxu0  ;;  %124 = vst.msk [vmem:[#allocation2] sm:$0x3] %vm123_vm3, %v118_v23 }
 0x216   :  { %174 = shalt.err (!%p171_p4)
}
 0x217   :  { %s175_s4 = scalar_lea.hbm %s255_s5, 32 }
 0x218   :  { %p176_p5 = scmp.ne.s32.totalorder %s255_s5, %s175_s4  ;;  %p179_p6 = scmp.lt.u32.totalorder %s175_s4, %s255_s5 }
 0x21a   :  { %p181_p7 = pnand %p179_p6, %p176_p5 }
 0x21c   :  { %184 = shalt.err (!%p181_p7)
}
 0x21d   :  { %134 = dma.vmem_to_hbm [thread:$0]  %s132_s29, 32, %s255_s5, [#allocation3]  }
 0x21e   :  { %185 = dma.done.wait [#allocation3], 32  }
 0x21f   :  { %186 = vsyncadd [#allocation3], 4294967264 }
 0x220   :  { %138 = vsyncpa [#allocation3], 1 }

</bundles_post_ra>
